<compile_context>
chip_gen: v7x
topology: tpu7x:2x2x1
jax: 0.10.0
libtpu: 0.0.40
codegen_flags: <defaults>
</compile_context>

<pallas_src>
import jax
import jax.numpy as jnp
from jax.experimental import pallas as pl
from jax.experimental.pallas import tpu as pltpu

BN_EPS = 1e-5
C = 64            # channel width of every layer
WO = 4            # conv1 output width  (input W=10, kernel 4, stride 2)
LANES = WO * C    # 256: fused (w, c) lane axis
NUM_BLOCKS = 4
NUM_CLASSES = 12
OUT_PAD = 128     # head output padded to one full lane register


# ------------------------------ fused kernel ---------------------------------

def _ds_cnn_kernel(a_ref, b1_ref, bias1_ref, msh_ref, qcat_ref, dwb_ref,
                   pww_ref, pwb_ref, fcw_ref, fcb_ref, o_ref):
    """Whole DS_CNN forward for one sample; activations stay resident in VMEM."""
    f32 = jnp.float32

    # Conv2d(1,64,(10,4),(2,2),pad 0) + BN + ReLU as a single matmul:
    # a_ref[0] is the row-unfolded input (Ho,100); the stride-2 W-unfold and the
    # folded BN scale are baked into b1 (100,256).  Result layout: (h, w*64+c).
    y = jnp.dot(a_ref[0], b1_ref[...], preferred_element_type=f32)
    y = jnp.maximum(y + bias1_ref[...], 0.0)                          # (Ho, 256) f32
    # Dropout(0.2)/Dropout(0.4): identity at inference.

    m_up = msh_ref[0]   # (Ho,Ho): (m_up @ v)[h] = v[h-1]  (zero row at the edge)
    m_dn = msh_ref[1]   # (Ho,Ho): (m_dn @ v)[h] = v[h+1]  (zero row at the edge)

    for blk in range(NUM_BLOCKS):
        # Depthwise 3x3 'same' + BN + ReLU.
        # qcat[blk] = [Q0 | Q1 | Q2]; Q_dh applies the dw-taps + per-channel weight
        # (+ BN scale) on the fused (w,c) lane axis.  The dh-taps are the two tiny
        # shift matmuls below -> no sublane slicing / relayout of the activation.
        z = jnp.dot(y.astype(jnp.bfloat16), qcat_ref[blk],
                    preferred_element_type=f32)                       # (Ho, 768)
        d = (jnp.dot(m_up, z[:, 0:LANES], preferred_element_type=f32)
             + z[:, LANES:2 * LANES]
             + jnp.dot(m_dn, z[:, 2 * LANES:3 * LANES],
                       preferred_element_type=f32))
        d = jnp.maximum(d + dwb_ref[blk], 0.0)
        # Pointwise 1x1 conv + BN + ReLU: block-diagonal (256,256) matmul keeps the
        # lane-dense layout (no reshape between depthwise and pointwise).
        p = jnp.dot(d.astype(jnp.bfloat16), pww_ref[blk],
                    preferred_element_type=f32)
        y = jnp.maximum(p + pwb_ref[blk], 0.0)

    # Head: mean over (H,W) + Linear(64,12).  1/(H*W) and the tiling of the FC
    # weight over the W groups are folded into fcw; output padded to 128 lanes.
    s = jnp.sum(y, axis=0, keepdims=True)                             # (1, 256)
    logits = jnp.dot(s.astype(jnp.bfloat16), fcw_ref[...],
                     preferred_element_type=f32) + fcb_ref[...]       # (1, 128)
    o_ref[0] = logits


def ds_cnn_fused(a, packed):
    n, ho, _ = a.shape
    assert packed['msh'].shape[1] == ho
    w2 = lambda i: (0, 0)
    w3 = lambda i: (0, 0, 0)
    out = pl.pallas_call(
        _ds_cnn_kernel,
        out_shape=jax.ShapeDtypeStruct((n, 1, OUT_PAD), jnp.float32),
        grid=(n,),
        in_specs=[
            pl.BlockSpec((1, ho, 100), lambda i: (i, 0, 0)),            # unfolded input
            pl.BlockSpec((100, LANES), w2),                             # conv1 weight
            pl.BlockSpec((1, LANES), w2),                               # conv1 bias
            pl.BlockSpec((2, ho, ho), w3),                              # H-shift matrices
            pl.BlockSpec((NUM_BLOCKS, LANES, 3 * LANES), w3),           # depthwise weights
            pl.BlockSpec((NUM_BLOCKS, 1, LANES), w3),                   # depthwise bias
            pl.BlockSpec((NUM_BLOCKS, LANES, LANES), w3),               # pointwise weights
            pl.BlockSpec((NUM_BLOCKS, 1, LANES), w3),                   # pointwise bias
            pl.BlockSpec((LANES, OUT_PAD), w2),                         # fc weight (padded)
            pl.BlockSpec((1, OUT_PAD), w2),                             # fc bias (padded)
        ],
        out_specs=pl.BlockSpec((1, 1, OUT_PAD), lambda i: (i, 0, 0)),
        compiler_params=pltpu.CompilerParams(
            dimension_semantics=("parallel",)),
    )(a, packed['b1'], packed['bias1'], packed['msh'], packed['qcat'],
      packed['dwb'], packed['pww'], packed['pwb'], packed['fcw'], packed['fcb'])
    return out[:, 0, :NUM_CLASSES]


# --------------------------- weight packing (once) ----------------------------

def fold_bn(conv_bias, bn):
    gamma, beta, mean, var = bn
    s = gamma / jnp.sqrt(var + BN_EPS)
    return s, (conv_bias - mean) * s + beta


def pack_params(params, input_hw=(49, 10)):
    """Fold eval-mode BN and re-express every layer as lane-dense matmul weights."""
    h_in, w_in = input_hw
    assert w_in == 10, "the (W*C)=256 lane layout assumes 10 MFCC coefficients"
    ho = (h_in - 10) // 2 + 1
    f32, bf16 = jnp.float32, jnp.bfloat16

    # conv1 as (Ho,100)@(100,256): B[kh*10+j, ow*64+c] = W1[c,kh,j-2ow]*scale[c].
    s1, t1 = fold_bn(params['conv1_b'], params['bn1'])
    w1 = params['conv1_w'][:, 0].astype(f32)                    # (64,10,4) [c,kh,kw]
    b1 = jnp.zeros((10, 10, WO, C), f32)                        # [kh, j, ow, c]
    for ow in range(WO):
        for kw in range(4):
            b1 = b1.at[:, 2 * ow + kw, ow, :].set((w1[:, :, kw] * s1[:, None]).T)
    b1 = b1.reshape(100, LANES).astype(bf16)
    bias1 = jnp.tile(t1, WO).reshape(1, LANES).astype(f32)

    # H-shift matrices for the depthwise 3-tap in H ('same' zero padding).
    msh = jnp.stack([jnp.eye(ho, ho, -1, dtype=f32),
                     jnp.eye(ho, ho, 1, dtype=f32)])            # (2, Ho, Ho)
    # W-shift (zero padded) selection matrices: S_dw[w',w] = 1 iff w' = w+dw-1.
    s_w = [jnp.eye(WO, WO, 1 - dw, dtype=f32) for dw in range(3)]

    qcat, dwb, pww, pwb = [], [], [], []
    for blk in params['blocks']:
        sd, td = fold_bn(blk['dw_b'], blk['dw_bn'])
        wd = jnp.transpose(blk['dw_w'][:, 0], (1, 2, 0)).astype(f32)   # (3,3,64)[dh,dw,c]
        qs = [sum(jnp.kron(s_w[dw], jnp.diag(wd[dh, dw] * sd)) for dw in range(3))
              for dh in range(3)]                               # 3 x (256,256)
        qcat.append(jnp.concatenate(qs, axis=1))                # (256,768)
        dwb.append(jnp.tile(td, WO))

        sp, tp = fold_bn(blk['pw_b'], blk['pw_bn'])
        wp = blk['pw_w'][:, :, 0, 0].T.astype(f32) * sp[None, :]       # (ci,co)
        pww.append(jnp.kron(jnp.eye(WO, dtype=f32), wp))        # (256,256) block-diag
        pwb.append(jnp.tile(tp, WO))

    return dict(
        b1=b1,
        bias1=bias1,
        msh=msh,
        qcat=jnp.stack(qcat).astype(bf16),                      # (4,256,768)
        dwb=jnp.stack(dwb).reshape(NUM_BLOCKS, 1, LANES).astype(f32),
        pww=jnp.stack(pww).astype(bf16),                        # (4,256,256)
        pwb=jnp.stack(pwb).reshape(NUM_BLOCKS, 1, LANES).astype(f32),
        fcw=jnp.pad(jnp.tile(params['fc_w'].T / float(ho * WO), (WO, 1)),
                    ((0, 0), (0, OUT_PAD - NUM_CLASSES))).astype(bf16),
        fcb=jnp.pad(params['fc_b'], (0, OUT_PAD - NUM_CLASSES)
                    ).reshape(1, OUT_PAD).astype(f32),
    )


# ------------------------------- forward --------------------------------------

@jax.jit
def ds_cnn_forward(x_nchw, packed):
    """x_nchw: (N, 1, 49, 10) -> logits (N, 12) (eval-mode semantics)."""
    x = x_nchw[:, 0].astype(jnp.float32)                        # (N, H, 10)
    h = x.shape[1]
    ho = (h - 10) // 2 + 1
    # Row-unfold for conv1: a[n, oh, kh*10 + j] = x[n, 2*oh + kh, j]
    # (the stride-2 unfold over W is baked into the packed conv1 weight).
    a = jnp.concatenate([x[:, kh:kh + 2 * ho - 1:2, :] for kh in range(10)],
                        axis=-1).astype(jnp.bfloat16)           # (N, Ho, 100)
    return ds_cnn_fused(a, packed)


# ------------------------------ parameters -------------------------------------

def init_params(key):
    def nrm(k, shape, scale=0.1):
        return scale * jax.random.normal(k, shape, dtype=jnp.float32)

    def bn_params(k):
        k1, k2, k3, k4 = jax.random.split(k, 4)
        gamma = 1.0 + 0.1 * jax.random.normal(k1, (64,), jnp.float32)
        beta = 0.1 * jax.random.normal(k2, (64,), jnp.float32)
        mean = 0.1 * jax.random.normal(k3, (64,), jnp.float32)
        var = 0.5 + jax.random.uniform(k4, (64,), jnp.float32)
        return (gamma, beta, mean, var)

    keys = iter(jax.random.split(key, 64))
    params = {
        'conv1_w': nrm(next(keys), (64, 1, 10, 4)),   # Conv2d(1,64,(10,4))
        'conv1_b': nrm(next(keys), (64,)),
        'bn1': bn_params(next(keys)),
        'blocks': [],
        'fc_w': nrm(next(keys), (12, 64)),            # Linear(64,12)
        'fc_b': nrm(next(keys), (12,)),
    }
    for _ in range(NUM_BLOCKS):
        params['blocks'].append({
            'dw_w': nrm(next(keys), (64, 1, 3, 3)),   # depthwise Conv2d(64,64,3,groups=64)
            'dw_b': nrm(next(keys), (64,)),
            'dw_bn': bn_params(next(keys)),
            'pw_w': nrm(next(keys), (64, 64, 1, 1)),  # pointwise Conv2d(64,64,1)
            'pw_b': nrm(next(keys), (64,)),
            'pw_bn': bn_params(next(keys)),
        })
    return params


if __name__ == "__main__":
    key = jax.random.PRNGKey(0)
    pkey, xkey = jax.random.split(key)
    params = init_params(pkey)
    packed = pack_params(params, input_hw=(49, 10))
    # Typical keyword-spotting MFCC input: (batch=2, 1 channel, 49 frames, 10 coeffs).
    x = jax.random.normal(xkey, (2, 1, 49, 10), dtype=jnp.float32)

    out = ds_cnn_forward(x, packed)
    out = jax.block_until_ready(out)
    assert out.shape == (2, 12) and out.dtype == jnp.float32
    assert bool(jnp.isfinite(out).all())
    print("KERNEL_OK")
</pallas_src>

<mosaic_0001>
module attributes {stable_mosaic.version = 11 : i64} {
  func.func @_ds_cnn_kernel(%arg0: i32, %arg1: memref<1x20x100xbf16, #tpu.memory_space<vmem>>, %arg2: memref<100x256xbf16, #tpu.memory_space<vmem>>, %arg3: memref<1x256xf32, #tpu.memory_space<vmem>>, %arg4: memref<2x20x20xf32, #tpu.memory_space<vmem>>, %arg5: memref<4x256x768xbf16, #tpu.memory_space<vmem>>, %arg6: memref<4x1x256xf32, #tpu.memory_space<vmem>>, %arg7: memref<4x256x256xbf16, #tpu.memory_space<vmem>>, %arg8: memref<4x1x256xf32, #tpu.memory_space<vmem>>, %arg9: memref<256x128xbf16, #tpu.memory_space<vmem>>, %arg10: memref<1x128xf32, #tpu.memory_space<vmem>>, %arg11: memref<1x1x128xf32, #tpu.memory_space<vmem>>) attributes {dimension_semantics = [#tpu.dimension_semantics<parallel>], iteration_bounds = array<i64: 2>, scalar_prefetch = 0 : i64, scratch_operands = 0 : i64, tpu.core_type = #tpu.core_type<tc>, window_params = [{transform_indices = @transform_0, window_bounds = array<i64: 1, 20, 100>}, {pipeline_mode = #tpu.pipeline_mode<synchronous>, transform_indices = @transform_1, window_bounds = array<i64: 100, 256>}, {pipeline_mode = #tpu.pipeline_mode<synchronous>, transform_indices = @transform_2, window_bounds = array<i64: 1, 256>}, {pipeline_mode = #tpu.pipeline_mode<synchronous>, transform_indices = @transform_3, window_bounds = array<i64: 2, 20, 20>}, {pipeline_mode = #tpu.pipeline_mode<synchronous>, transform_indices = @transform_4, window_bounds = array<i64: 4, 256, 768>}, {pipeline_mode = #tpu.pipeline_mode<synchronous>, transform_indices = @transform_5, window_bounds = array<i64: 4, 1, 256>}, {pipeline_mode = #tpu.pipeline_mode<synchronous>, transform_indices = @transform_6, window_bounds = array<i64: 4, 256, 256>}, {pipeline_mode = #tpu.pipeline_mode<synchronous>, transform_indices = @transform_7, window_bounds = array<i64: 4, 1, 256>}, {pipeline_mode = #tpu.pipeline_mode<synchronous>, transform_indices = @transform_8, window_bounds = array<i64: 256, 128>}, {pipeline_mode = #tpu.pipeline_mode<synchronous>, transform_indices = @transform_9, window_bounds = array<i64: 1, 128>}, {transform_indices = @transform_10, window_bounds = array<i64: 1, 1, 128>}]} {
    %c0 = arith.constant 0 : index
    %c0_0 = arith.constant 0 : index
    %c0_1 = arith.constant 0 : index
    %0 = vector.load %arg1[%c0, %c0_0, %c0_1] : memref<1x20x100xbf16, #tpu.memory_space<vmem>>, vector<1x20x100xbf16>
    %1 = vector.shape_cast %0 : vector<1x20x100xbf16> to vector<20x100xbf16>
    %c0_2 = arith.constant 0 : index
    %c0_3 = arith.constant 0 : index
    %2 = vector.load %arg2[%c0_2, %c0_3] : memref<100x256xbf16, #tpu.memory_space<vmem>>, vector<100x256xbf16>
    %cst = arith.constant dense<0.000000e+00> : vector<20x256xf32>
    %3 = tpu.matmul %1, %2, %cst {dimension_numbers = #tpu.dot_dimension_numbers<[1], [0], [0], [1], [0, 0, 1, 1], [], []>} : vector<20x100xbf16>, vector<100x256xbf16>, vector<20x256xf32> -> vector<20x256xf32>
    %c0_4 = arith.constant 0 : index
    %c0_5 = arith.constant 0 : index
    %4 = vector.load %arg3[%c0_4, %c0_5] : memref<1x256xf32, #tpu.memory_space<vmem>>, vector<1x256xf32>
    %5 = vector.broadcast %4 : vector<1x256xf32> to vector<20x256xf32>
    %6 = arith.addf %3, %5 : vector<20x256xf32>
    %cst_6 = arith.constant 0.000000e+00 : f32
    %7 = vector.broadcast %cst_6 : f32 to vector<20x256xf32>
    %8 = arith.maximumf %6, %7 : vector<20x256xf32>
    %c0_7 = arith.constant 0 : index
    %c0_8 = arith.constant 0 : index
    %c0_9 = arith.constant 0 : index
    %9 = vector.load %arg4[%c0_7, %c0_8, %c0_9] : memref<2x20x20xf32, #tpu.memory_space<vmem>>, vector<1x20x20xf32>
    %10 = vector.shape_cast %9 : vector<1x20x20xf32> to vector<20x20xf32>
    %c1 = arith.constant 1 : index
    %c0_10 = arith.constant 0 : index
    %c0_11 = arith.constant 0 : index
    %11 = vector.load %arg4[%c1, %c0_10, %c0_11] : memref<2x20x20xf32, #tpu.memory_space<vmem>>, vector<1x20x20xf32>
    %12 = vector.shape_cast %11 : vector<1x20x20xf32> to vector<20x20xf32>
    %13 = arith.truncf %8 : vector<20x256xf32> to vector<20x256xbf16>
    %c0_12 = arith.constant 0 : index
    %c0_13 = arith.constant 0 : index
    %c0_14 = arith.constant 0 : index
    %14 = vector.load %arg5[%c0_12, %c0_13, %c0_14] : memref<4x256x768xbf16, #tpu.memory_space<vmem>>, vector<1x256x768xbf16>
    %15 = vector.shape_cast %14 : vector<1x256x768xbf16> to vector<256x768xbf16>
    %cst_15 = arith.constant dense<0.000000e+00> : vector<20x768xf32>
    %16 = tpu.matmul %13, %15, %cst_15 {dimension_numbers = #tpu.dot_dimension_numbers<[1], [0], [0], [1], [0, 0, 1, 1], [], []>} : vector<20x256xbf16>, vector<256x768xbf16>, vector<20x768xf32> -> vector<20x768xf32>
    %17 = vector.extract_strided_slice %16 {offsets = [0, 0], sizes = [20, 256], strides = [1, 1]} : vector<20x768xf32> to vector<20x256xf32>
    %cst_16 = arith.constant dense<0.000000e+00> : vector<20x256xf32>
    %18 = tpu.matmul %10, %17, %cst_16 {dimension_numbers = #tpu.dot_dimension_numbers<[1], [0], [0], [1], [0, 0, 1, 1], [], []>} : vector<20x20xf32>, vector<20x256xf32>, vector<20x256xf32> -> vector<20x256xf32>
    %19 = vector.extract_strided_slice %16 {offsets = [0, 256], sizes = [20, 256], strides = [1, 1]} : vector<20x768xf32> to vector<20x256xf32>
    %20 = arith.addf %18, %19 : vector<20x256xf32>
    %21 = vector.extract_strided_slice %16 {offsets = [0, 512], sizes = [20, 256], strides = [1, 1]} : vector<20x768xf32> to vector<20x256xf32>
    %cst_17 = arith.constant dense<0.000000e+00> : vector<20x256xf32>
    %22 = tpu.matmul %12, %21, %cst_17 {dimension_numbers = #tpu.dot_dimension_numbers<[1], [0], [0], [1], [0, 0, 1, 1], [], []>} : vector<20x20xf32>, vector<20x256xf32>, vector<20x256xf32> -> vector<20x256xf32>
    %23 = arith.addf %20, %22 : vector<20x256xf32>
    %c0_18 = arith.constant 0 : index
    %c0_19 = arith.constant 0 : index
    %c0_20 = arith.constant 0 : index
    %24 = vector.load %arg6[%c0_18, %c0_19, %c0_20] : memref<4x1x256xf32, #tpu.memory_space<vmem>>, vector<1x1x256xf32>
    %25 = vector.shape_cast %24 : vector<1x1x256xf32> to vector<1x256xf32>
    %26 = vector.broadcast %25 : vector<1x256xf32> to vector<20x256xf32>
    %27 = arith.addf %23, %26 : vector<20x256xf32>
    %cst_21 = arith.constant 0.000000e+00 : f32
    %28 = vector.broadcast %cst_21 : f32 to vector<20x256xf32>
    %29 = arith.maximumf %27, %28 : vector<20x256xf32>
    %30 = arith.truncf %29 : vector<20x256xf32> to vector<20x256xbf16>
    %c0_22 = arith.constant 0 : index
    %c0_23 = arith.constant 0 : index
    %c0_24 = arith.constant 0 : index
    %31 = vector.load %arg7[%c0_22, %c0_23, %c0_24] : memref<4x256x256xbf16, #tpu.memory_space<vmem>>, vector<1x256x256xbf16>
    %32 = vector.shape_cast %31 : vector<1x256x256xbf16> to vector<256x256xbf16>
    %cst_25 = arith.constant dense<0.000000e+00> : vector<20x256xf32>
    %33 = tpu.matmul %30, %32, %cst_25 {dimension_numbers = #tpu.dot_dimension_numbers<[1], [0], [0], [1], [0, 0, 1, 1], [], []>} : vector<20x256xbf16>, vector<256x256xbf16>, vector<20x256xf32> -> vector<20x256xf32>
    %c0_26 = arith.constant 0 : index
    %c0_27 = arith.constant 0 : index
    %c0_28 = arith.constant 0 : index
    %34 = vector.load %arg8[%c0_26, %c0_27, %c0_28] : memref<4x1x256xf32, #tpu.memory_space<vmem>>, vector<1x1x256xf32>
    %35 = vector.shape_cast %34 : vector<1x1x256xf32> to vector<1x256xf32>
    %36 = vector.broadcast %35 : vector<1x256xf32> to vector<20x256xf32>
    %37 = arith.addf %33, %36 : vector<20x256xf32>
    %cst_29 = arith.constant 0.000000e+00 : f32
    %38 = vector.broadcast %cst_29 : f32 to vector<20x256xf32>
    %39 = arith.maximumf %37, %38 : vector<20x256xf32>
    %40 = arith.truncf %39 : vector<20x256xf32> to vector<20x256xbf16>
    %c1_30 = arith.constant 1 : index
    %c0_31 = arith.constant 0 : index
    %c0_32 = arith.constant 0 : index
    %41 = vector.load %arg5[%c1_30, %c0_31, %c0_32] : memref<4x256x768xbf16, #tpu.memory_space<vmem>>, vector<1x256x768xbf16>
    %42 = vector.shape_cast %41 : vector<1x256x768xbf16> to vector<256x768xbf16>
    %cst_33 = arith.constant dense<0.000000e+00> : vector<20x768xf32>
    %43 = tpu.matmul %40, %42, %cst_33 {dimension_numbers = #tpu.dot_dimension_numbers<[1], [0], [0], [1], [0, 0, 1, 1], [], []>} : vector<20x256xbf16>, vector<256x768xbf16>, vector<20x768xf32> -> vector<20x768xf32>
    %44 = vector.extract_strided_slice %43 {offsets = [0, 0], sizes = [20, 256], strides = [1, 1]} : vector<20x768xf32> to vector<20x256xf32>
    %cst_34 = arith.constant dense<0.000000e+00> : vector<20x256xf32>
    %45 = tpu.matmul %10, %44, %cst_34 {dimension_numbers = #tpu.dot_dimension_numbers<[1], [0], [0], [1], [0, 0, 1, 1], [], []>} : vector<20x20xf32>, vector<20x256xf32>, vector<20x256xf32> -> vector<20x256xf32>
    %46 = vector.extract_strided_slice %43 {offsets = [0, 256], sizes = [20, 256], strides = [1, 1]} : vector<20x768xf32> to vector<20x256xf32>
    %47 = arith.addf %45, %46 : vector<20x256xf32>
    %48 = vector.extract_strided_slice %43 {offsets = [0, 512], sizes = [20, 256], strides = [1, 1]} : vector<20x768xf32> to vector<20x256xf32>
    %cst_35 = arith.constant dense<0.000000e+00> : vector<20x256xf32>
    %49 = tpu.matmul %12, %48, %cst_35 {dimension_numbers = #tpu.dot_dimension_numbers<[1], [0], [0], [1], [0, 0, 1, 1], [], []>} : vector<20x20xf32>, vector<20x256xf32>, vector<20x256xf32> -> vector<20x256xf32>
    %50 = arith.addf %47, %49 : vector<20x256xf32>
    %c1_36 = arith.constant 1 : index
    %c0_37 = arith.constant 0 : index
    %c0_38 = arith.constant 0 : index
    %51 = vector.load %arg6[%c1_36, %c0_37, %c0_38] : memref<4x1x256xf32, #tpu.memory_space<vmem>>, vector<1x1x256xf32>
    %52 = vector.shape_cast %51 : vector<1x1x256xf32> to vector<1x256xf32>
    %53 = vector.broadcast %52 : vector<1x256xf32> to vector<20x256xf32>
    %54 = arith.addf %50, %53 : vector<20x256xf32>
    %cst_39 = arith.constant 0.000000e+00 : f32
    %55 = vector.broadcast %cst_39 : f32 to vector<20x256xf32>
    %56 = arith.maximumf %54, %55 : vector<20x256xf32>
    %57 = arith.truncf %56 : vector<20x256xf32> to vector<20x256xbf16>
    %c1_40 = arith.constant 1 : index
    %c0_41 = arith.constant 0 : index
    %c0_42 = arith.constant 0 : index
    %58 = vector.load %arg7[%c1_40, %c0_41, %c0_42] : memref<4x256x256xbf16, #tpu.memory_space<vmem>>, vector<1x256x256xbf16>
    %59 = vector.shape_cast %58 : vector<1x256x256xbf16> to vector<256x256xbf16>
    %cst_43 = arith.constant dense<0.000000e+00> : vector<20x256xf32>
    %60 = tpu.matmul %57, %59, %cst_43 {dimension_numbers = #tpu.dot_dimension_numbers<[1], [0], [0], [1], [0, 0, 1, 1], [], []>} : vector<20x256xbf16>, vector<256x256xbf16>, vector<20x256xf32> -> vector<20x256xf32>
    %c1_44 = arith.constant 1 : index
    %c0_45 = arith.constant 0 : index
    %c0_46 = arith.constant 0 : index
    %61 = vector.load %arg8[%c1_44, %c0_45, %c0_46] : memref<4x1x256xf32, #tpu.memory_space<vmem>>, vector<1x1x256xf32>
    %62 = vector.shape_cast %61 : vector<1x1x256xf32> to vector<1x256xf32>
    %63 = vector.broadcast %62 : vector<1x256xf32> to vector<20x256xf32>
    %64 = arith.addf %60, %63 : vector<20x256xf32>
    %cst_47 = arith.constant 0.000000e+00 : f32
    %65 = vector.broadcast %cst_47 : f32 to vector<20x256xf32>
    %66 = arith.maximumf %64, %65 : vector<20x256xf32>
    %67 = arith.truncf %66 : vector<20x256xf32> to vector<20x256xbf16>
    %c2 = arith.constant 2 : index
    %c0_48 = arith.constant 0 : index
    %c0_49 = arith.constant 0 : index
    %68 = vector.load %arg5[%c2, %c0_48, %c0_49] : memref<4x256x768xbf16, #tpu.memory_space<vmem>>, vector<1x256x768xbf16>
    %69 = vector.shape_cast %68 : vector<1x256x768xbf16> to vector<256x768xbf16>
    %cst_50 = arith.constant dense<0.000000e+00> : vector<20x768xf32>
    %70 = tpu.matmul %67, %69, %cst_50 {dimension_numbers = #tpu.dot_dimension_numbers<[1], [0], [0], [1], [0, 0, 1, 1], [], []>} : vector<20x256xbf16>, vector<256x768xbf16>, vector<20x768xf32> -> vector<20x768xf32>
    %71 = vector.extract_strided_slice %70 {offsets = [0, 0], sizes = [20, 256], strides = [1, 1]} : vector<20x768xf32> to vector<20x256xf32>
    %cst_51 = arith.constant dense<0.000000e+00> : vector<20x256xf32>
    %72 = tpu.matmul %10, %71, %cst_51 {dimension_numbers = #tpu.dot_dimension_numbers<[1], [0], [0], [1], [0, 0, 1, 1], [], []>} : vector<20x20xf32>, vector<20x256xf32>, vector<20x256xf32> -> vector<20x256xf32>
    %73 = vector.extract_strided_slice %70 {offsets = [0, 256], sizes = [20, 256], strides = [1, 1]} : vector<20x768xf32> to vector<20x256xf32>
    %74 = arith.addf %72, %73 : vector<20x256xf32>
    %75 = vector.extract_strided_slice %70 {offsets = [0, 512], sizes = [20, 256], strides = [1, 1]} : vector<20x768xf32> to vector<20x256xf32>
    %cst_52 = arith.constant dense<0.000000e+00> : vector<20x256xf32>
    %76 = tpu.matmul %12, %75, %cst_52 {dimension_numbers = #tpu.dot_dimension_numbers<[1], [0], [0], [1], [0, 0, 1, 1], [], []>} : vector<20x20xf32>, vector<20x256xf32>, vector<20x256xf32> -> vector<20x256xf32>
    %77 = arith.addf %74, %76 : vector<20x256xf32>
    %c2_53 = arith.constant 2 : index
    %c0_54 = arith.constant 0 : index
    %c0_55 = arith.constant 0 : index
    %78 = vector.load %arg6[%c2_53, %c0_54, %c0_55] : memref<4x1x256xf32, #tpu.memory_space<vmem>>, vector<1x1x256xf32>
    %79 = vector.shape_cast %78 : vector<1x1x256xf32> to vector<1x256xf32>
    %80 = vector.broadcast %79 : vector<1x256xf32> to vector<20x256xf32>
    %81 = arith.addf %77, %80 : vector<20x256xf32>
    %cst_56 = arith.constant 0.000000e+00 : f32
    %82 = vector.broadcast %cst_56 : f32 to vector<20x256xf32>
    %83 = arith.maximumf %81, %82 : vector<20x256xf32>
    %84 = arith.truncf %83 : vector<20x256xf32> to vector<20x256xbf16>
    %c2_57 = arith.constant 2 : index
    %c0_58 = arith.constant 0 : index
    %c0_59 = arith.constant 0 : index
    %85 = vector.load %arg7[%c2_57, %c0_58, %c0_59] : memref<4x256x256xbf16, #tpu.memory_space<vmem>>, vector<1x256x256xbf16>
    %86 = vector.shape_cast %85 : vector<1x256x256xbf16> to vector<256x256xbf16>
    %cst_60 = arith.constant dense<0.000000e+00> : vector<20x256xf32>
    %87 = tpu.matmul %84, %86, %cst_60 {dimension_numbers = #tpu.dot_dimension_numbers<[1], [0], [0], [1], [0, 0, 1, 1], [], []>} : vector<20x256xbf16>, vector<256x256xbf16>, vector<20x256xf32> -> vector<20x256xf32>
    %c2_61 = arith.constant 2 : index
    %c0_62 = arith.constant 0 : index
    %c0_63 = arith.constant 0 : index
    %88 = vector.load %arg8[%c2_61, %c0_62, %c0_63] : memref<4x1x256xf32, #tpu.memory_space<vmem>>, vector<1x1x256xf32>
    %89 = vector.shape_cast %88 : vector<1x1x256xf32> to vector<1x256xf32>
    %90 = vector.broadcast %89 : vector<1x256xf32> to vector<20x256xf32>
    %91 = arith.addf %87, %90 : vector<20x256xf32>
    %cst_64 = arith.constant 0.000000e+00 : f32
    %92 = vector.broadcast %cst_64 : f32 to vector<20x256xf32>
    %93 = arith.maximumf %91, %92 : vector<20x256xf32>
    %94 = arith.truncf %93 : vector<20x256xf32> to vector<20x256xbf16>
    %c3 = arith.constant 3 : index
    %c0_65 = arith.constant 0 : index
    %c0_66 = arith.constant 0 : index
    %95 = vector.load %arg5[%c3, %c0_65, %c0_66] : memref<4x256x768xbf16, #tpu.memory_space<vmem>>, vector<1x256x768xbf16>
    %96 = vector.shape_cast %95 : vector<1x256x768xbf16> to vector<256x768xbf16>
    %cst_67 = arith.constant dense<0.000000e+00> : vector<20x768xf32>
    %97 = tpu.matmul %94, %96, %cst_67 {dimension_numbers = #tpu.dot_dimension_numbers<[1], [0], [0], [1], [0, 0, 1, 1], [], []>} : vector<20x256xbf16>, vector<256x768xbf16>, vector<20x768xf32> -> vector<20x768xf32>
    %98 = vector.extract_strided_slice %97 {offsets = [0, 0], sizes = [20, 256], strides = [1, 1]} : vector<20x768xf32> to vector<20x256xf32>
    %cst_68 = arith.constant dense<0.000000e+00> : vector<20x256xf32>
    %99 = tpu.matmul %10, %98, %cst_68 {dimension_numbers = #tpu.dot_dimension_numbers<[1], [0], [0], [1], [0, 0, 1, 1], [], []>} : vector<20x20xf32>, vector<20x256xf32>, vector<20x256xf32> -> vector<20x256xf32>
    %100 = vector.extract_strided_slice %97 {offsets = [0, 256], sizes = [20, 256], strides = [1, 1]} : vector<20x768xf32> to vector<20x256xf32>
    %101 = arith.addf %99, %100 : vector<20x256xf32>
    %102 = vector.extract_strided_slice %97 {offsets = [0, 512], sizes = [20, 256], strides = [1, 1]} : vector<20x768xf32> to vector<20x256xf32>
    %cst_69 = arith.constant dense<0.000000e+00> : vector<20x256xf32>
    %103 = tpu.matmul %12, %102, %cst_69 {dimension_numbers = #tpu.dot_dimension_numbers<[1], [0], [0], [1], [0, 0, 1, 1], [], []>} : vector<20x20xf32>, vector<20x256xf32>, vector<20x256xf32> -> vector<20x256xf32>
    %104 = arith.addf %101, %103 : vector<20x256xf32>
    %c3_70 = arith.constant 3 : index
    %c0_71 = arith.constant 0 : index
    %c0_72 = arith.constant 0 : index
    %105 = vector.load %arg6[%c3_70, %c0_71, %c0_72] : memref<4x1x256xf32, #tpu.memory_space<vmem>>, vector<1x1x256xf32>
    %106 = vector.shape_cast %105 : vector<1x1x256xf32> to vector<1x256xf32>
    %107 = vector.broadcast %106 : vector<1x256xf32> to vector<20x256xf32>
    %108 = arith.addf %104, %107 : vector<20x256xf32>
    %cst_73 = arith.constant 0.000000e+00 : f32
    %109 = vector.broadcast %cst_73 : f32 to vector<20x256xf32>
    %110 = arith.maximumf %108, %109 : vector<20x256xf32>
    %111 = arith.truncf %110 : vector<20x256xf32> to vector<20x256xbf16>
    %c3_74 = arith.constant 3 : index
    %c0_75 = arith.constant 0 : index
    %c0_76 = arith.constant 0 : index
    %112 = vector.load %arg7[%c3_74, %c0_75, %c0_76] : memref<4x256x256xbf16, #tpu.memory_space<vmem>>, vector<1x256x256xbf16>
    %113 = vector.shape_cast %112 : vector<1x256x256xbf16> to vector<256x256xbf16>
    %cst_77 = arith.constant dense<0.000000e+00> : vector<20x256xf32>
    %114 = tpu.matmul %111, %113, %cst_77 {dimension_numbers = #tpu.dot_dimension_numbers<[1], [0], [0], [1], [0, 0, 1, 1], [], []>} : vector<20x256xbf16>, vector<256x256xbf16>, vector<20x256xf32> -> vector<20x256xf32>
    %c3_78 = arith.constant 3 : index
    %c0_79 = arith.constant 0 : index
    %c0_80 = arith.constant 0 : index
    %115 = vector.load %arg8[%c3_78, %c0_79, %c0_80] : memref<4x1x256xf32, #tpu.memory_space<vmem>>, vector<1x1x256xf32>
    %116 = vector.shape_cast %115 : vector<1x1x256xf32> to vector<1x256xf32>
    %117 = vector.broadcast %116 : vector<1x256xf32> to vector<20x256xf32>
    %118 = arith.addf %114, %117 : vector<20x256xf32>
    %cst_81 = arith.constant 0.000000e+00 : f32
    %119 = vector.broadcast %cst_81 : f32 to vector<20x256xf32>
    %120 = arith.maximumf %118, %119 : vector<20x256xf32>
    %cst_82 = arith.constant dense<0.000000e+00> : vector<256xf32>
    %121 = vector.multi_reduction <add>, %120, %cst_82 [0] : vector<20x256xf32> to vector<256xf32>
    %122 = vector.shape_cast %121 : vector<256xf32> to vector<1x256xf32>
    %123 = arith.truncf %122 : vector<1x256xf32> to vector<1x256xbf16>
    %c0_83 = arith.constant 0 : index
    %c0_84 = arith.constant 0 : index
    %124 = vector.load %arg9[%c0_83, %c0_84] : memref<256x128xbf16, #tpu.memory_space<vmem>>, vector<256x128xbf16>
    %cst_85 = arith.constant dense<0.000000e+00> : vector<1x128xf32>
    %125 = tpu.matmul %123, %124, %cst_85 {dimension_numbers = #tpu.dot_dimension_numbers<[1], [0], [0], [1], [0, 0, 1, 1], [], []>} : vector<1x256xbf16>, vector<256x128xbf16>, vector<1x128xf32> -> vector<1x128xf32>
    %c0_86 = arith.constant 0 : index
    %c0_87 = arith.constant 0 : index
    %126 = vector.load %arg10[%c0_86, %c0_87] : memref<1x128xf32, #tpu.memory_space<vmem>>, vector<1x128xf32>
    %127 = arith.addf %125, %126 : vector<1x128xf32>
    %c0_88 = arith.constant 0 : index
    %c0_89 = arith.constant 0 : index
    %c0_90 = arith.constant 0 : index
    %128 = vector.load %arg11[%c0_88, %c0_89, %c0_90] : memref<1x1x128xf32, #tpu.memory_space<vmem>>, vector<1x1x128xf32>
    %129 = vector.shape_cast %128 : vector<1x1x128xf32> to vector<1x128xf32>
    %130 = vector.shape_cast %127 : vector<1x128xf32> to vector<1x1x128xf32>
    tpu.vector_store %arg11[%c0_88, %c0_89, %c0_90], %130 {strides = array<i32>} : memref<1x1x128xf32, #tpu.memory_space<vmem>>, vector<1x1x128xf32>,
    return
  }
  func.func @transform_0(%arg0: i32) -> (i32, i32, i32) {
    %c0_i32 = arith.constant 0 : i32
    %c0_i32_0 = arith.constant 0 : i32
    %c0_i32_1 = arith.constant 0 : i32
    return %arg0, %c0_i32, %c0_i32_0 : i32, i32, i32
  }
  func.func @transform_1(%arg0: i32) -> (i32, i32) {
    %c0_i32 = arith.constant 0 : i32
    %c0_i32_0 = arith.constant 0 : i32
    %c0_i32_1 = arith.constant 0 : i32
    return %c0_i32, %c0_i32_0 : i32, i32
  }
  func.func @transform_2(%arg0: i32) -> (i32, i32) {
    %c0_i32 = arith.constant 0 : i32
    %c0_i32_0 = arith.constant 0 : i32
    %c0_i32_1 = arith.constant 0 : i32
    return %c0_i32, %c0_i32_0 : i32, i32
  }
  func.func @transform_3(%arg0: i32) -> (i32, i32, i32) {
    %c0_i32 = arith.constant 0 : i32
    %c0_i32_0 = arith.constant 0 : i32
    %c0_i32_1 = arith.constant 0 : i32
    %c0_i32_2 = arith.constant 0 : i32
    return %c0_i32, %c0_i32_0, %c0_i32_1 : i32, i32, i32
  }
  func.func @transform_4(%arg0: i32) -> (i32, i32, i32) {
    %c0_i32 = arith.constant 0 : i32
    %c0_i32_0 = arith.constant 0 : i32
    %c0_i32_1 = arith.constant 0 : i32
    %c0_i32_2 = arith.constant 0 : i32
    return %c0_i32, %c0_i32_0, %c0_i32_1 : i32, i32, i32
  }
  func.func @transform_5(%arg0: i32) -> (i32, i32, i32) {
    %c0_i32 = arith.constant 0 : i32
    %c0_i32_0 = arith.constant 0 : i32
    %c0_i32_1 = arith.constant 0 : i32
    %c0_i32_2 = arith.constant 0 : i32
    return %c0_i32, %c0_i32_0, %c0_i32_1 : i32, i32, i32
  }
  func.func @transform_6(%arg0: i32) -> (i32, i32, i32) {
    %c0_i32 = arith.constant 0 : i32
    %c0_i32_0 = arith.constant 0 : i32
    %c0_i32_1 = arith.constant 0 : i32
    %c0_i32_2 = arith.constant 0 : i32
    return %c0_i32, %c0_i32_0, %c0_i32_1 : i32, i32, i32
  }
  func.func @transform_7(%arg0: i32) -> (i32, i32, i32) {
    %c0_i32 = arith.constant 0 : i32
    %c0_i32_0 = arith.constant 0 : i32
    %c0_i32_1 = arith.constant 0 : i32
    %c0_i32_2 = arith.constant 0 : i32
    return %c0_i32, %c0_i32_0, %c0_i32_1 : i32, i32, i32
  }
  func.func @transform_8(%arg0: i32) -> (i32, i32) {
    %c0_i32 = arith.constant 0 : i32
    %c0_i32_0 = arith.constant 0 : i32
    %c0_i32_1 = arith.constant 0 : i32
    return %c0_i32, %c0_i32_0 : i32, i32
  }
  func.func @transform_9(%arg0: i32) -> (i32, i32) {
    %c0_i32 = arith.constant 0 : i32
    %c0_i32_0 = arith.constant 0 : i32
    %c0_i32_1 = arith.constant 0 : i32
    return %c0_i32, %c0_i32_0 : i32, i32
  }
  func.func @transform_10(%arg0: i32) -> (i32, i32, i32) {
    %c0_i32 = arith.constant 0 : i32
    %c0_i32_0 = arith.constant 0 : i32
    %c0_i32_1 = arith.constant 0 : i32
    return %arg0, %c0_i32, %c0_i32_0 : i32, i32, i32
  }
}

</mosaic_0001>

<bundles_post_ra>
// kernel: ds_cnn_forward.1
= control target key start
LH: loop header
LB: loop body
LE: loop exit
PB: predicated region body
PF: predicated region fallthrough
CT: control target
= control target key end

     0   :  { %s8434_s0 = inlined_call_operand.vmem [shape: bf16[2,20,100], index: 0, kind: input, shape index: {}]   ;;  %s8435_s1 = inlined_call_operand.hbm [shape: bf16[100,256], index: 1, kind: input, shape index: {}]   ;;  %s8436_s2 = inlined_call_operand.hbm [shape: f32[1,256], index: 2, kind: input, shape index: {}]   ;;  %s8437_s3 = inlined_call_operand.vmem [shape: f32[2,20,20], index: 3, kind: input, shape index: {}]   ;;  %s8438_s4 = inlined_call_operand.hbm [shape: bf16[4,256,768], index: 4, kind: input, shape index: {}]   ;;  %s8439_s5 = inlined_call_operand.hbm [shape: f32[4,1,256], index: 5, kind: input, shape index: {}]   ;;  %s8440_s6 = inlined_call_operand.hbm [shape: bf16[4,256,256], index: 6, kind: input, shape index: {}]   ;;  %s8441_s7 = inlined_call_operand.hbm [shape: f32[4,1,256], index: 7, kind: input, shape index: {}]   ;;  %s8442_s8 = inlined_call_operand.hbm [shape: bf16[256,128], index: 8, kind: input, shape index: {}]   ;;  %s8443_s9 = inlined_call_operand.hbm [shape: f32[1,128], index: 9, kind: input, shape index: {}]   ;;  %s8444_s10 = inlined_call_operand.hbm [shape: f32[2,1,128], index: 10, kind: output, shape index: {}]  }
   0x1   :  { %8454 = sst [smem:[#allocation27_spill]] %s8435_s1 }
   0x2   :  { %8455 = sst [smem:[#allocation28_spill]] %s8436_s2 }
   0x3   :  { %8456 = sst [smem:[#allocation29_spill]] %s8439_s5 }
   0x4   :  { %8457 = sst [smem:[#allocation30_spill]] %s8441_s7 }
   0x5   :  { %15 = vsyncpa [#allocation3], 0 }
   0x6   :  { %16 = vsyncpa [#allocation6], 0 }
   0x7   :  { %17 = vsyncpa [#allocation9], 0 }
   0x8   :  { %18 = vsyncpa [#allocation12], 0 }
   0x9   :  { %19 = vsyncpa [#allocation15], 0 }
   0xa   :  { %20 = vsyncpa [#allocation4], 0 }
   0xb   :  { %22 = vsyncpa [#allocation4 + $0x1], 0  ;;  %s7836_s13 = smov 0   ;;  %s7838_s14 = smov 0  }
   0xc   :  { %s7840_s15 = smov 0   ;;  %s7842_s16 = smov 0  }
   0xd LB: > { %8458 = sst [smem:[#allocation23_spill]] %s7756_s15  ;;  %s7857_s17 = sadd.s32 4294967295, %s7760_s16   ;;  %s7760_s16 = sphi %s7842_s16, %s8487_s16   ;;  %s7756_s15 = sphi %s7840_s15, %s8489_s15   ;;  %s7752_s14 = sphi %s7838_s14, %s8491_s14   ;;  %s7748_s13 = sphi %s7836_s13, %s8490_s13  }
   0xe   : > { %s5843_s18 = sadd.s32 4294967294, %s7760_s16   ;;  %s7861_s19 = sadd.s32 1, %s7760_s16  }
   0xf   : > { %8459 = sst [smem:[#allocation24_spill]] %s7861_s19  ;;  %s250_s20 = sadd.s32 1, %s7756_s15 }
  0x10   : > { %s247_s21 = ssub.s32 %s7760_s16, %s7861_s19  ;;  %p260_p0 = scmp.ne.s32.totalorder %s7756_s15, %s7752_s14 }
  0x11   : > { %p248_p1 = scmp.eq.s32.totalorder %s247_s21, 0  ;;  %p261_p2 = scmp.eq.s32.totalorder %s7857_s17, 1 }
  0x12   : > { %p266_p3 = scmp.ne.s32.totalorder %s7752_s14, %s7748_s13  ;;  %p267_p4 = scmp.eq.s32.totalorder %s5843_s18, 1 }
  0x13   : > { %s7872_s22 = scalar_select %p248_p1, %s7756_s15, %s250_s20  }
  0x14   : > { %p7874_p5 = por %p261_p2, %p260_p0  ;;  %p7878_p6 = por %p267_p4, %p266_p3 }
  0x15   : > { %8460 = sst [smem:[#allocation25_spill]] %s7872_s22  ;;  %p5844_p7 = scmp.ge.s32.totalorder %s7760_s16, 1 }
  0x16   : > { %s8461_s23 = scalar_select %p7874_p5, 1, 0 }
  0x17   : > { %s8462_s24 = scalar_select %p7878_p6, 1, 0 }
  0x18   : > { %p274_p8 = scmp.lt.s32.totalorder %s7760_s16, 3  ;;  %p8446_p9 = scmp.eq.s32.totalorder %s7857_s17, 0 }
  0x19   : > { %8463 = sst [smem:[#allocation26_spill]] %s8462_s24  ;;  %s7762_s26 = smov [#allocation5]  }
  0x1a   : > { %p7885_p10 = pnand %p5844_p7, %p274_p8  ;;  %s300_s27 = sshll.u32 %s7762_s26, 4  ;;  %s301_s27 = int_to_ptr.vmem [resolvable:$true] %s300_s27 }
  0x1b   : > { %s7763_s28 = smov [#allocation8]   ;;  %s7764_s11 = smov [#allocation11]  }
  0x1c   : > { %s8464_s25 = scalar_select %p7885_p10, 1, 0 }
  0x1d   : > { %p6546_p11 = pneg %p7885_p10  ;;  %s326_s29 = sshll.u32 %s7763_s28, 4  ;;  %s7897_s29 = int_to_ptr.vmem [resolvable:$true] %s326_s29 }
  0x1e   : > { %s7899_s12 = sshll.u32 %s7764_s11, 4  ;;  %s8466_s2 = sld [smem:[#allocation28_spill]]  ;;  %s353_s12 = int_to_ptr.vmem [resolvable:$true] %s7899_s12 }
  0x1f   : > { %p7893_p12 = pnand %p8446_p9, %p6546_p11 }
  0x21   : > { %p7909_p0 = pneg %p7893_p12 }
  0x24   : > { %s7454_s21 = scalar_lea.hbm %s8466_s2, 32 }
  0x25   : > { %p7455_p13 = scmp.ne.s32.totalorder %s8466_s2, %s7454_s21  ;;  %p7461_p3 = scmp.lt.u32.totalorder %s7454_s21, %s8466_s2 }
  0x27   : > { %p7457_p1 = pnand %p7909_p0, %p7455_p13 }
  0x29   : > { %p7458_p2 = pneg %p7457_p1 }
  0x2b   : > { %p7463_p4 = pnand %p7461_p3, %p7458_p2 }
  0x2d   : > { %7466 = shalt.err (!%p7463_p4)
}
  0x2e   : > { %s7467_s18 = scalar_lea.vmem %s301_s27, 32  ;;  %p7475_p9 = scmp.lt.s32.totalorder %s301_s27, %s301_s27 }
  0x2f   : > { %p7468_p7 = scmp.ne.s32.totalorder %s301_s27, %s7467_s18  ;;  %p7476_p6 = scmp.lt.s32.totalorder %s7467_s18, %s7467_s18 }
  0x31   : > { %p7470_p8 = pnand %p7468_p7, %p7909_p0  ;;  %p7477_p5 = por %p7476_p6, %p7475_p9 }
  0x33   : > { %p7471_p11 = pneg %p7470_p8 }
  0x35   : > { %p7478_p10 = pnand %p7477_p5, %p7471_p11 }
  0x37   : > { %7481 = shalt.err (!%p7478_p10)
}
  0x38   : > { %6552 = dma.hbm_to_vmem [thread:$0]  (!%p7893_p12), %s8466_s2, 32, %s301_s27, [#allocation6]  }
  0x39   : > { %s8468_s5 = sld [smem:[#allocation29_spill]] }
  0x3f   : > { %s7482_s26 = scalar_lea.hbm %s8468_s5, 128 }
  0x40   : > { %p7483_p13 = scmp.ne.s32.totalorder %s8468_s5, %s7482_s26  ;;  %p7489_p5 = scmp.lt.u32.totalorder %s7482_s26, %s8468_s5 }
  0x42   : > { %p7485_p1 = pnand %p7483_p13, %p7909_p0 }
  0x44   : > { %p7486_p6 = pneg %p7485_p1 }
  0x46   : > { %p7491_p9 = pnand %p7489_p5, %p7486_p6 }
  0x48   : > { %7494 = shalt.err (!%p7491_p9)
}
  0x49   : > { %s7495_s27 = scalar_lea.vmem %s7897_s29, 128  ;;  %p7503_p4 = scmp.lt.s32.totalorder %s7897_s29, %s7897_s29 }
  0x4a   : > { %p7496_p10 = scmp.ne.s32.totalorder %s7897_s29, %s7495_s27  ;;  %p7504_p7 = scmp.lt.s32.totalorder %s7495_s27, %s7495_s27 }
  0x4c   : > { %p7498_p2 = pnand %p7496_p10, %p7909_p0  ;;  %p7505_p8 = por %p7504_p7, %p7503_p4 }
  0x4e   : > { %p7499_p3 = pneg %p7498_p2 }
  0x50   : > { %p7506_p11 = pnand %p7505_p8, %p7499_p3 }
  0x52   : > { %7509 = shalt.err (!%p7506_p11)
}
  0x53   : > { %s7765_s19 = smov 32   ;;  %s7766_s24 = smov 2  }
  0x54   : > { %6558 = dma.hbm_to_vmem [thread:$0]  (!%p7893_p12), %s8468_s5, 128, %s7897_s29, [#allocation9], %s7765_s19, %s7765_s19, %s7766_s24  }
  0x55   : > { %s8469_s7 = sld [smem:[#allocation30_spill]] }
  0x5b   : > { %s7510_s26 = scalar_lea.hbm %s8469_s7, 128 }
  0x5c   : > { %p7511_p13 = scmp.ne.s32.totalorder %s8469_s7, %s7510_s26  ;;  %p7517_p5 = scmp.lt.u32.totalorder %s7510_s26, %s8469_s7 }
  0x5e   : > { %p7513_p1 = pnand %p7511_p13, %p7909_p0 }
  0x60   : > { %p7514_p6 = pneg %p7513_p1 }
  0x62   : > { %p7519_p9 = pnand %p7517_p5, %p7514_p6 }
  0x64   : > { %7522 = shalt.err (!%p7519_p9)
}
  0x65   : > { %s7523_s22 = scalar_lea.vmem %s353_s12, 128  ;;  %p7531_p4 = scmp.lt.s32.totalorder %s353_s12, %s353_s12 }
  0x66   : > { %p7524_p10 = scmp.ne.s32.totalorder %s353_s12, %s7523_s22  ;;  %p7532_p7 = scmp.lt.s32.totalorder %s7523_s22, %s7523_s22 }
  0x68   : > { %p7526_p2 = pnand %p7524_p10, %p7909_p0  ;;  %p7533_p8 = por %p7532_p7, %p7531_p4 }
  0x6a   : > { %p7527_p3 = pneg %p7526_p2 }
  0x6c   : > { %p7534_p11 = pnand %p7533_p8, %p7527_p3 }
  0x6e   : > { %7537 = shalt.err (!%p7534_p11)
}
  0x6f   : > { %6564 = dma.hbm_to_vmem [thread:$0]  (!%p7893_p12), %s8469_s7, 128, %s353_s12, [#allocation12], %s7765_s19, %s7765_s19, %s7766_s24  }
  0x70   : > { %s7767_s2 = smov [#allocation2]   ;;  %s8470_s1 = sld [smem:[#allocation27_spill]] }
  0x71   : > { %s286_s15 = sshll.u32 %s7767_s2, 4  ;;  %s287_s15 = int_to_ptr.vmem [resolvable:$true] %s286_s15 }
  0x76   : > { %s7538_s11 = scalar_lea.hbm %s8470_s1, 1664 }
  0x77   : > { %p7539_p13 = scmp.ne.s32.totalorder %s8470_s1, %s7538_s11  ;;  %p7545_p5 = scmp.lt.u32.totalorder %s7538_s11, %s8470_s1 }
  0x79   : > { %p7541_p1 = pnand %p7539_p13, %p7909_p0 }
  0x7b   : > { %p7542_p6 = pneg %p7541_p1 }
  0x7d   : > { %p7547_p9 = pnand %p7545_p5, %p7542_p6 }
  0x7f   : > { %7550 = shalt.err (!%p7547_p9)
}
  0x80   : > { %s7551_s12 = scalar_lea.vmem %s287_s15, 1664  ;;  %p7559_p4 = scmp.lt.s32.totalorder %s287_s15, %s287_s15 }
  0x81   : > { %p7552_p10 = scmp.ne.s32.totalorder %s287_s15, %s7551_s12  ;;  %p7560_p7 = scmp.lt.s32.totalorder %s7551_s12, %s7551_s12 }
  0x83   : > { %p7554_p2 = pnand %p7552_p10, %p7909_p0  ;;  %p7561_p8 = por %p7560_p7, %p7559_p4 }
  0x85   : > { %p7555_p3 = pneg %p7554_p2 }
  0x87   : > { %p7562_p11 = pnand %p7561_p8, %p7555_p3 }
  0x89   : > { %7565 = shalt.err (!%p7562_p11)
}
  0x8a   : > { %s8452_s19 = smov 128   ;;  %s8453_s24 = smov 8  }
  0x8b   : > { %6549 = dma.hbm_to_vmem [thread:$0]  (!%p7893_p12), %s8470_s1, 1664, %s287_s15, [#allocation3], %s8452_s19, %s8452_s19, %s8453_s24  }
  0x8c   : > { %s7770_s20 = smov [#allocation7]   ;;  %s7566_s11 = scalar_lea.hbm %s8438_s4, 49152 }
  0x8d   : > { %s313_s2 = sshll.u32 %s7770_s20, 4  ;;  %p7567_p13 = scmp.ne.s32.totalorder %s8438_s4, %s7566_s11  ;;  %s314_s2 = int_to_ptr.vmem [resolvable:$true] %s313_s2 }
  0x8e   : > { %p7573_p5 = scmp.lt.u32.totalorder %s7566_s11, %s8438_s4 }
  0x8f   : > { %p7569_p1 = pnand %p7567_p13, %p7909_p0 }
  0x91   : > { %p7570_p6 = pneg %p7569_p1 }
  0x93   : > { %p7575_p9 = pnand %p7573_p5, %p7570_p6 }
  0x95   : > { %7578 = shalt.err (!%p7575_p9)
}
  0x96   : > { %s7579_s15 = scalar_lea.vmem %s314_s2, 49152  ;;  %p7587_p4 = scmp.lt.s32.totalorder %s314_s2, %s314_s2 }
  0x97   : > { %p7580_p10 = scmp.ne.s32.totalorder %s314_s2, %s7579_s15  ;;  %p7588_p7 = scmp.lt.s32.totalorder %s7579_s15, %s7579_s15 }
  0x99   : > { %p7582_p2 = pnand %p7580_p10, %p7909_p0  ;;  %p7589_p8 = por %p7588_p7, %p7587_p4 }
  0x9b   : > { %p7583_p3 = pneg %p7582_p2 }
  0x9d   : > { %p7590_p11 = pnand %p7589_p8, %p7583_p3 }
  0x9f   : > { %7593 = shalt.err (!%p7590_p11)
}
  0xa0   : > { %s7771_s5 = smov 384   ;;  %s7772_s29 = smov 24  }
  0xa1   : > { %6555 = dma.hbm_to_vmem [thread:$0]  (!%p7893_p12), %s8438_s4, 49152, %s314_s2, [#allocation6], %s7771_s5, %s7771_s5, %s7772_s29  }
  0xa2   : > { %s7773_s26 = smov [#allocation10]   ;;  %s7774_s18 = smov [#allocation13]  }
  0xa3   : > { %s339_s11 = sshll.u32 %s7773_s26, 4  ;;  %s365_s27 = sshll.u32 %s7774_s18, 4  ;;  %s340_s11 = int_to_ptr.vmem [resolvable:$true] %s339_s11  ;;  %s366_s27 = int_to_ptr.vmem [resolvable:$true] %s365_s27 }
  0xa4   : > { %s7594_s15 = scalar_lea.hbm %s8440_s6, 16384 }
  0xa5   : > { %p7595_p13 = scmp.ne.s32.totalorder %s8440_s6, %s7594_s15  ;;  %p7601_p5 = scmp.lt.u32.totalorder %s7594_s15, %s8440_s6 }
  0xa7   : > { %p7597_p1 = pnand %p7595_p13, %p7909_p0 }
  0xa9   : > { %p7598_p6 = pneg %p7597_p1 }
  0xab   : > { %p7603_p9 = pnand %p7601_p5, %p7598_p6 }
  0xad   : > { %7606 = shalt.err (!%p7603_p9)
}
  0xae   : > { %s7607_s2 = scalar_lea.vmem %s340_s11, 16384  ;;  %p7615_p4 = scmp.lt.s32.totalorder %s340_s11, %s340_s11 }
  0xaf   : > { %p7608_p10 = scmp.ne.s32.totalorder %s340_s11, %s7607_s2  ;;  %p7616_p7 = scmp.lt.s32.totalorder %s7607_s2, %s7607_s2 }
  0xb1   : > { %p7610_p2 = pnand %p7608_p10, %p7909_p0  ;;  %p7617_p8 = por %p7616_p7, %p7615_p4 }
  0xb3   : > { %p7611_p3 = pneg %p7610_p2 }
  0xb5   : > { %p7618_p11 = pnand %p7617_p8, %p7611_p3 }
  0xb7   : > { %7621 = shalt.err (!%p7618_p11)
}
  0xb8   : > { %s8471_s19 = smov 8   ;;  %s8472_s24 = smov 128  }
  0xb9   : > { %6561 = dma.hbm_to_vmem [thread:$0]  (!%p7893_p12), %s8440_s6, 16384, %s340_s11, [#allocation9], %s8472_s24, %s8472_s24, %s8471_s19  }
  0xba   : > { %s7622_s20 = scalar_lea.hbm %s8442_s8, 2048 }
  0xbb   : > { %p7623_p13 = scmp.ne.s32.totalorder %s8442_s8, %s7622_s20  ;;  %p7629_p5 = scmp.lt.u32.totalorder %s7622_s20, %s8442_s8 }
  0xbd   : > { %p7625_p1 = pnand %p7623_p13, %p7909_p0 }
  0xbf   : > { %p7626_p6 = pneg %p7625_p1 }
  0xc1   : > { %p7631_p9 = pnand %p7629_p5, %p7626_p6 }
  0xc3   : > { %7634 = shalt.err (!%p7631_p9)
}
  0xc4   : > { %s7635_s12 = scalar_lea.vmem %s366_s27, 2048  ;;  %p7643_p4 = scmp.lt.s32.totalorder %s366_s27, %s366_s27 }
  0xc5   : > { %p7636_p10 = scmp.ne.s32.totalorder %s366_s27, %s7635_s12  ;;  %p7644_p7 = scmp.lt.s32.totalorder %s7635_s12, %s7635_s12 }
  0xc7   : > { %p7638_p2 = pnand %p7636_p10, %p7909_p0  ;;  %p7645_p8 = por %p7644_p7, %p7643_p4 }
  0xc9   : > { %p7639_p3 = pneg %p7638_p2 }
  0xcb   : > { %p7646_p11 = pnand %p7645_p8, %p7639_p3 }
  0xcd   : > { %7649 = shalt.err (!%p7646_p11)
}
  0xce   : > { %s7775_s11 = smov 64   ;;  %s7776_s15 = smov 4  }
  0xcf   : > { %6567 = dma.hbm_to_vmem [thread:$0]  (!%p7893_p12), %s8442_s8, 2048, %s366_s27, [#allocation12], %s7775_s11, %s7775_s11, %s7776_s15  }
  0xd0   : > { %s7777_s24 = smov [#allocation14]   ;;  %s7650_s29 = scalar_lea.hbm %s8443_s9, 16 }
  0xd1   : > { %s379_s1 = sshll.u32 %s7777_s24, 4  ;;  %p7651_p13 = scmp.ne.s32.totalorder %s8443_s9, %s7650_s29  ;;  %s380_s1 = int_to_ptr.vmem [resolvable:$true] %s379_s1 }
  0xd2   : > { %p7657_p5 = scmp.lt.u32.totalorder %s7650_s29, %s8443_s9 }
  0xd3   : > { %p7653_p1 = pnand %p7651_p13, %p7909_p0 }
  0xd5   : > { %p7654_p6 = pneg %p7653_p1 }
  0xd7   : > { %p7659_p9 = pnand %p7657_p5, %p7654_p6 }
  0xd9   : > { %7662 = shalt.err (!%p7659_p9)
}
  0xda   : > { %s7663_s27 = scalar_lea.vmem %s380_s1, 16  ;;  %s7670_s22 = scalar_lea.vmem %s380_s1, 32 }
  0xdb   : > { %p7664_p10 = scmp.ne.s32.totalorder %s380_s1, %s7663_s27  ;;  %p7671_p4 = scmp.lt.s32.totalorder %s380_s1, %s380_s1 }
  0xdc   : > { %p7672_p7 = scmp.lt.s32.totalorder %s7670_s22, %s7663_s27 }
  0xdd   : > { %p7666_p2 = pnand %p7664_p10, %p7909_p0 }
  0xde   : > { %p7673_p8 = por %p7672_p7, %p7671_p4 }
  0xdf   : > { %p7667_p3 = pneg %p7666_p2 }
  0xe1   : > { %p7674_p11 = pnand %p7673_p8, %p7667_p3 }
  0xe3   : > { %7677 = shalt.err (!%p7674_p11)
}
  0xe4   : > { %6570 = dma.hbm_to_vmem [thread:$0]  (!%p7893_p12), %s8443_s9, 16, %s380_s1, [#allocation15]  }
  0xe5   : > { %p8473_p13 = scmp.ne.s32.totalorder %s8464_s25, 0 }
  0xe6   : > { %p8474_p1 = scmp.eq.s32.totalorder (!%p8473_p13), %s7857_s17, 0 }
  0xe7   : > { %400 = sbr.rel (%p8473_p13) target bundleno = 3695 (0xe6f), region = 60 }
  0xee   : > { %7723 = dma.done.wait (%p8474_p1), [#allocation3], 1664   ;;  %p8475_p0 = pmov %p8474_p1 }
  0xf0   : > { %7725 = vsyncadd (%p8475_p0), [#allocation3], 4294965632  ;;  %p8476_p6 = pmov %p8475_p0 }
  0xf1   : > { %p8477_p5 = pmov %p8475_p0 }
  0xf2   : > { %7727 = dma.done.wait (%p8476_p6), [#allocation6], 49184  }
  0xf3   : > { %7729 = vsyncadd (%p8477_p5), [#allocation6], 4294918112  ;;  %p8478_p9 = pmov %p8475_p0 }
  0xf4   : > { %p8479_p12 = pmov %p8475_p0 }
  0xf5   : > { %7731 = dma.done.wait (%p8478_p9), [#allocation9], 16512  }
  0xf6   : > { %7733 = vsyncadd (%p8479_p12), [#allocation9], 4294950784  ;;  %p8480_p10 = pmov %p8475_p0 }
  0xf7   : > { %p8481_p2 = pmov %p8475_p0 }
  0xf8   : > { %7735 = dma.done.wait (%p8480_p10), [#allocation12], 2176  }
  0xf9   : > { %7737 = vsyncadd (%p8481_p2), [#allocation12], 4294965120  ;;  %p8482_p3 = pmov %p8475_p0 }
  0xfa   : > { %p8483_p4 = pmov %p8475_p0 }
  0xfb   : > { %7739 = dma.done.wait (%p8482_p3), [#allocation15], 16  }
  0xfc   : > { %7741 = vsyncadd (%p8483_p4), [#allocation15], 4294967280  ;;  %v7778_v0 = vmov 0   ;;  %p465_p7 = scmp.lt.s32.totalorder %s7857_s17, 1  ;;  %v6642_v1 = vld [vmem:[#allocation2 + $0x4] ss:$8 sps:$4 sm:$0xff]  }
  0xfd   : > { %618 = vmatprep.mubr.bf16.mxu0 %v7778_v0  ;;  %v6644_v2 = vld [vmem:[#allocation2] ss:$8 sps:$4 sm:$0xff]   ;;  %586 = vmatprep.subr.bf16.mxu0 %v6642_v1  ;;  %v6645_v3 = vld [vmem:[#allocation2 + $0x14] ss:$8 sps:$4 sm:$0xff]   ;;  %v6647_v4 = vld [vmem:[#allocation2 + $0x10] ss:$8 sps:$4 sm:$0xff]  }
  0xfe   : > { %s466_s25 = scalar_select %p465_p7, %s7857_s17, 1  ;;  %587 = vmatpush1.bf16.msra.mxu0 %v6644_v2  ;;  %v6648_v5 = vld [vmem:[#allocation2 + $0x24] ss:$8 sps:$4 sm:$0xff]   ;;  %v6650_v6 = vld [vmem:[#allocation2 + $0x20] ss:$8 sps:$4 sm:$0xff]   ;;  %vm579_vm0 = vcmask 1041408  }
  0xff   : > { %588 = vmatprep.subr.bf16.mxu0 %v6645_v3  ;;  %v6651_v7 = vld [vmem:[#allocation2 + $0x34] ss:$8 sps:$4 sm:$0xff]   ;;  %v6653_v8 = vld [vmem:[#allocation2 + $0x30] ss:$8 sps:$4 sm:$0xff]   ;;  %v6666_v10 = vld [vmem:[#allocation7] ss:$24 sps:$4 sm:$0xff]  }
 0x100   : > { %s6511_s30 = smul.u32 12, %s466_s25  ;;  %v6664_v9 = vld [vmem:[#allocation7 + $0x4] ss:$24 sps:$4 sm:$0xff]   ;;  %v6670_v12 = vld [vmem:[#allocation7 + $0x34] ss:$24 sps:$4 sm:$0xff]   ;;  %vm572_vm1 = vcmask 818176  }
 0x101   : > { %v6654_v11 = vld [vmem:[#allocation2 + $0x44] ss:$8 sps:$4 sm:$0xff]   ;;  %1230 = vmatprep.subr.bf16.mxu1 %v6664_v9  ;;  %v6672_v13 = vld [vmem:[#allocation7 + $0x30] ss:$24 sps:$4 sm:$0xff]   ;;  %v6656_v14 = vld [vmem:[#allocation2 + $0x40] ss:$8 sps:$4 sm:$0xff]  }
 0x102   : > { %589 = vmatpush1.bf16.msra.mxu0 %v6647_v4  ;;  %s8091_s2 = scalar_lea.vmem %s8434_s0, %s6511_s30  ;;  %1231 = vmatpush1.bf16.msra.mxu1 %v6666_v10  ;;  %v6657_v15 = vld [vmem:[#allocation2 + $0x54] ss:$8 sps:$4 sm:$0xff]   ;;  %v6676_v16 = vld [vmem:[#allocation7 + $0x64] ss:$24 sps:$4 sm:$0xff]   ;;  %v486_v17 = vld [vmem:[#allocation2 + $0x60] sm:$0x33] }
 0x103   : > { %590 = vmatprep.subr.bf16.mxu0 %v6648_v5  ;;  %1232 = vmatprep.subr.bf16.mxu1 %v6670_v12  ;;  %v6678_v18 = vld [vmem:[#allocation7 + $0x60] ss:$24 sps:$4 sm:$0xff]   ;;  %v6682_v19 = vld [vmem:[#allocation7 + $0x94] ss:$24 sps:$4 sm:$0xff]   ;;  %v5879_v21 = vcombine.high %v486_v17, %v486_v17  ;;  %v5878_v22 = vcombine.low %v486_v17, %v486_v17  ;;  %v6684_v23 = vld [vmem:[#allocation7 + $0x90] ss:$24 sps:$4 sm:$0xff]  }
 0x104   : > { %v6659_v20 = vld [vmem:[#allocation2 + $0x50] ss:$8 sps:$4 sm:$0xff]   ;;  %v6662_v27 = vld [vmem:[%s8091_s2] sm:$0xff]   ;;  %v6663_v36 = vld [vmem:[%s8091_s2 + $0x8] ss:$0 sps:$4 sm:$0x33]  }
 0x105   : > { %v6688_v24 = vld [vmem:[#allocation7 + $0xc4] ss:$24 sps:$4 sm:$0xff]   ;;  %v581_v25 = vsel %vm579_vm0, %v5878_v22, 0  ;;  %v6690_v28 = vld [vmem:[#allocation7 + $0xc0] ss:$24 sps:$4 sm:$0xff]   ;;  %vm1393_vm2 = vcmask 1043456  }
 0x106   : > { %591 = vmatpush1.bf16.msra.mxu0 %v6650_v6  ;;  %1233 = vmatpush1.bf16.msra.mxu1 %v6672_v13  ;;  %v6669_v26 = vld [vmem:[#allocation7 + $0xc] ss:$24 sps:$4 sm:$0xff]   ;;  %v6667_v30 = vld [vmem:[#allocation7 + $0x8] ss:$24 sps:$4 sm:$0xff]   ;;  %v6675_v31 = vld [vmem:[#allocation7 + $0x3c] ss:$24 sps:$4 sm:$0xff]  }
 0x107   : > { %592 = vmatprep.subr.bf16.mxu0 %v6651_v7  ;;  %1234 = vmatprep.subr.bf16.mxu1 %v6676_v16  ;;  %v6694_v29 = vld [vmem:[#allocation7 + $0xf4] ss:$24 sps:$4 sm:$0xff]   ;;  %v6696_v32 = vld [vmem:[#allocation7 + $0xf0] ss:$24 sps:$4 sm:$0xff]   ;;  %v6700_v33 = vld [vmem:[#allocation7 + $0x124] ss:$24 sps:$4 sm:$0xff]  }
 0x108   : > { %v6673_v34 = vld [vmem:[#allocation7 + $0x38] ss:$24 sps:$4 sm:$0xff]   ;;  %v6681_v35 = vld [vmem:[#allocation7 + $0x6c] ss:$24 sps:$4 sm:$0xff]   ;;  %v6679_v39 = vld [vmem:[#allocation7 + $0x68] ss:$24 sps:$4 sm:$0xff]  }
 0x109   : > { %v6702_v37 = vld [vmem:[#allocation7 + $0x120] ss:$24 sps:$4 sm:$0xff]   ;;  %v6706_v38 = vld [vmem:[#allocation7 + $0x154] ss:$24 sps:$4 sm:$0xff]   ;;  %v6708_v41 = vld [vmem:[#allocation7 + $0x150] ss:$24 sps:$4 sm:$0xff]  }
 0x10a   : > { %593 = vmatpush1.bf16.msra.mxu0 %v6653_v8  ;;  %1235 = vmatpush1.bf16.msra.mxu1 %v6678_v18  ;;  %v6687_v40 = vld [vmem:[#allocation7 + $0x9c] ss:$24 sps:$4 sm:$0xff]   ;;  %v6685_v43 = vld [vmem:[#allocation7 + $0x98] ss:$24 sps:$4 sm:$0xff]   ;;  %v6693_v44 = vld [vmem:[#allocation7 + $0xcc] ss:$24 sps:$4 sm:$0xff]  }
 0x10b   : > { %594 = vmatprep.subr.bf16.mxu0 %v6654_v11  ;;  %1236 = vmatprep.subr.bf16.mxu1 %v6682_v19  ;;  %v6712_v42 = vld [vmem:[#allocation7 + $0x184] ss:$24 sps:$4 sm:$0xff]   ;;  %v6714_v45 = vld [vmem:[#allocation7 + $0x180] ss:$24 sps:$4 sm:$0xff]   ;;  %v6718_v46 = vld [vmem:[#allocation7 + $0x1b4] ss:$24 sps:$4 sm:$0xff]  }
 0x10c   : > { %v6691_v47 = vld [vmem:[#allocation7 + $0xc8] ss:$24 sps:$4 sm:$0xff]   ;;  %v6699_v48 = vld [vmem:[#allocation7 + $0xfc] ss:$24 sps:$4 sm:$0xff]   ;;  %v6697_v49 = vld [vmem:[#allocation7 + $0xf8] ss:$24 sps:$4 sm:$0xff]  }
 0x10d   : > { %v6720_v50 = vld [vmem:[#allocation7 + $0x1b0] ss:$24 sps:$4 sm:$0xff]   ;;  %v6724_v51 = vld [vmem:[#allocation7 + $0x1e4] ss:$24 sps:$4 sm:$0xff]   ;;  %v6726_v53 = vld [vmem:[#allocation7 + $0x1e0] ss:$24 sps:$4 sm:$0xff]  }
 0x10e   : > { %595 = vmatpush1.bf16.msra.mxu0 %v6656_v14  ;;  %1237 = vmatpush1.bf16.msra.mxu1 %v6684_v23  ;;  %v6705_v52 = vld [vmem:[#allocation7 + $0x12c] ss:$24 sps:$4 sm:$0xff]   ;;  %v6703_v55 = vld [vmem:[#allocation7 + $0x128] ss:$24 sps:$4 sm:$0xff]   ;;  %v6711_v56 = vld [vmem:[#allocation7 + $0x15c] ss:$24 sps:$4 sm:$0xff]  }
 0x10f   : > { %596 = vmatprep.subr.bf16.mxu0 %v6657_v15  ;;  %1238 = vmatprep.subr.bf16.mxu1 %v6688_v24  ;;  %v6730_v54 = vld [vmem:[#allocation7 + $0x214] ss:$24 sps:$4 sm:$0xff]   ;;  %v6732_v57 = vld [vmem:[#allocation7 + $0x210] ss:$24 sps:$4 sm:$0xff]   ;;  %v6736_v58 = vld [vmem:[#allocation7 + $0x244] ss:$24 sps:$4 sm:$0xff]  }
 0x110   : > { %v6709_v59 = vld [vmem:[#allocation7 + $0x158] ss:$24 sps:$4 sm:$0xff]   ;;  %v6717_v60 = vld [vmem:[#allocation7 + $0x18c] ss:$24 sps:$4 sm:$0xff]   ;;  %v6715_v63 = vld [vmem:[#allocation7 + $0x188] ss:$24 sps:$4 sm:$0xff]  }
 0x111   : > { %v6738_v61 = vld [vmem:[#allocation7 + $0x240] ss:$24 sps:$4 sm:$0xff]   ;;  %v6742_v62 = vld [vmem:[#allocation7 + $0x274] ss:$24 sps:$4 sm:$0xff]   ;;  %v6744_v1 = vld [vmem:[#allocation7 + $0x270] ss:$24 sps:$4 sm:$0xff]  }
 0x112   : > { %597 = vmatpush1.bf16.msra.mxu0 %v6659_v20  ;;  %1239 = vmatpush1.bf16.msra.mxu1 %v6690_v28  ;;  %v6721_v2 = vld [vmem:[#allocation7 + $0x1b8] ss:$24 sps:$4 sm:$0xff]   ;;  %v6729_v3 = vld [vmem:[#allocation7 + $0x1ec] ss:$24 sps:$4 sm:$0xff]   ;;  %v6727_v4 = vld [vmem:[#allocation7 + $0x1e8] ss:$24 sps:$4 sm:$0xff]   ;;  %v489_v20 = vlaneseq }
 0x113   : > { %5880 = vmatprep.subr.msk.bf16.mxu0 %vm579_vm0, %v5879_v21  ;;  %1240 = vmatprep.subr.bf16.mxu1 %v6694_v29  ;;  %v6735_v5 = vld [vmem:[#allocation7 + $0x21c] ss:$24 sps:$4 sm:$0xff]   ;;  %v6733_v6 = vld [vmem:[#allocation7 + $0x218] ss:$24 sps:$4 sm:$0xff]   ;;  %v6741_v7 = vld [vmem:[#allocation7 + $0x24c] ss:$24 sps:$4 sm:$0xff]  }
 0x114   : > { %v6739_v8 = vld [vmem:[#allocation7 + $0x248] ss:$24 sps:$4 sm:$0xff]   ;;  %v6747_v9 = vld [vmem:[#allocation7 + $0x27c] ss:$24 sps:$4 sm:$0xff]   ;;  %v6745_v10 = vld [vmem:[#allocation7 + $0x278] ss:$24 sps:$4 sm:$0xff]  }
 0x115   : > { %v6748_v11 = vld [vmem:[#allocation7 + $0x2a4] ss:$24 sps:$4 sm:$0xff]   ;;  %v6750_v12 = vld [vmem:[#allocation7 + $0x2a0] ss:$24 sps:$4 sm:$0xff]   ;;  %v6754_v15 = vld [vmem:[#allocation7 + $0x2d4] ss:$24 sps:$4 sm:$0xff]  }
 0x116   : > { %599 = vmatpush1.bf16.msra.mxu0 %v581_v25  ;;  %1241 = vmatpush1.bf16.msra.mxu1 %v6696_v32  ;;  %v6753_v13 = vld [vmem:[#allocation7 + $0x2ac] ss:$24 sps:$4 sm:$0xff]   ;;  %v6751_v14 = vld [vmem:[#allocation7 + $0x2a8] ss:$24 sps:$4 sm:$0xff]   ;;  %v6759_v17 = vld [vmem:[#allocation7 + $0x2dc] ss:$24 sps:$4 sm:$0xff]  }
 0x117   : > { %1281 = vmatprep.subr.bf16.mxu0 %v6669_v26  ;;  %1242 = vmatprep.subr.bf16.mxu1 %v6700_v33  ;;  %v6756_v16 = vld [vmem:[#allocation7 + $0x2d0] ss:$24 sps:$4 sm:$0xff]   ;;  %v6762_v19 = vld [vmem:[#allocation7 + $0x14] ss:$24 sps:$4 sm:$0xff]   ;;  %v490_v21 = vshrl.u32 %v489_v20, 7  ;;  %vm1383_vm3 = vcmask 162816  }
 0x118   : > { %v6757_v18 = vld [vmem:[#allocation7 + $0x2d8] ss:$24 sps:$4 sm:$0xff]   ;;  %v487_v23 = vld [vmem:[#allocation5] sm:$0x3]  ;;  %s463_s29 = sand.u32 1, %s7752_s14   ;;  %s6454_s20 = sshll.u32 %s7857_s17, 4 }
 0x119   : > { %5881 = vmatmul.mubr.msk.bf16.vlgmr.msra.gmra.mrb[0].mxu0 %vm572_vm1, %v6662_v27  ;;  %v8098_v22 = vsub.s32 0, %v490_v21  ;;  %v8100_v24 = vsub.s32 1, %v490_v21  ;;  %s464_s21 = scalar_lea.vmem [#allocation16], %s463_s29  ;;  %s8392_s22 = scalar_lea.hbm %s8444_s10, %s6454_s20 }
 0x11a   : > { %628 = vmatprep.mubr.bf16.mxu0 %v7778_v0  ;;  %1282 = vmatpush1.bf16.msra.mxu0 %v6667_v30  ;;  %v6723_v0 = vld [vmem:[#allocation7 + $0x1bc] ss:$24 sps:$4 sm:$0xff]   ;;  %s5709_s26 = sshll.u32 %s464_s21, 4  ;;  %s5697_s12 = scalar_lea.sflag [#allocation4], %s463_s29  ;;  %s8394_s26 = int_to_ptr.vmem [resolvable:$true] %s5709_s26 }
 0x11b   : > { %1283 = vmatprep.subr.bf16.mxu0 %v6675_v31  ;;  %1243 = vmatpush1.bf16.msra.mxu1 %v6702_v37  ;;  %v492_v25 = vrot.slane %v487_v23, %v8098_v22  ;;  %v496_v26 = vrot.slane %v487_v23, %v8100_v24  ;;  %s7678_s11 = scalar_lea.vmem %s8394_s26, 16  ;;  %p8484_p11 = scmp.ne.s32.totalorder %s8461_s23, 0 }
 0x11c   : > { %1244 = vmatprep.subr.bf16.mxu1 %v6706_v38  ;;  %p7679_p8 = scmp.ne.s32.totalorder %s8394_s26, %s7678_s11  ;;  %s7780_s17 = smov [#allocation16]  }
 0x11d   : > { %s7682_s25 = sshll.u32 %s7780_s17, 4  ;;  %s7683_s25 = int_to_ptr.vmem [resolvable:$false] %s7682_s25 }
 0x11e   : > { %1284 = vmatpush1.bf16.msra.mxu0 %v6673_v34  ;;  %p7680_p13 = pnand %p7679_p8, %p8484_p11  ;;  %s7684_s30 = scalar_lea.vmem %s7683_s25, 32 }
 0x11f   : > { %1285 = vmatprep.subr.bf16.mxu0 %v6681_v35  ;;  %1245 = vmatpush1.bf16.msra.mxu1 %v6708_v41  ;;  %p7685_p0 = scmp.lt.s32.totalorder %s8394_s26, %s7683_s25  ;;  %p7686_p6 = scmp.lt.s32.totalorder %s7684_s30, %s7678_s11 }
 0x120   : > { %1246 = vmatprep.subr.bf16.mxu1 %v6712_v42  ;;  %v6760_v42 = vld [vmem:[#allocation7 + $0x10] ss:$24 sps:$4 sm:$0xff]   ;;  %p7681_p1 = pneg %p7680_p13 }
 0x121   : > { %5882 = vmatmul.mubr.msk.bf16.gmra.mrb[4].mxu0 %vm572_vm1, %v6663_v36  ;;  %p7687_p5 = por %p7686_p6, %p7685_p0 }
 0x122   : > { %1286 = vmatpush1.bf16.msra.mxu0 %v6679_v39 }
 0x123   : > { %1287 = vmatprep.subr.bf16.mxu0 %v6687_v40  ;;  %1247 = vmatpush1.bf16.msra.mxu1 %v6714_v45  ;;  %v6765_v45 = vld [vmem:[#allocation7 + $0x44] ss:$24 sps:$4 sm:$0xff]   ;;  %p7688_p9 = pnand %p7687_p5, %p7681_p1 }
 0x124   : > { %1248 = vmatprep.subr.bf16.mxu1 %v6718_v46 }
 0x126   : > { %1288 = vmatpush1.bf16.msra.mxu0 %v6685_v43 }
 0x127   : > { %1289 = vmatprep.subr.bf16.mxu0 %v6693_v44  ;;  %1249 = vmatpush1.bf16.msra.mxu1 %v6720_v50 }
 0x128   : > { %1250 = vmatprep.subr.bf16.mxu1 %v6724_v51  ;;  %v6763_v51 = vld [vmem:[#allocation7 + $0x40] ss:$24 sps:$4 sm:$0xff]  }
 0x12a   : > { %1290 = vmatpush1.bf16.msra.mxu0 %v6691_v47 }
 0x12b   : > { %1291 = vmatprep.subr.bf16.mxu0 %v6699_v48  ;;  %1251 = vmatpush1.bf16.msra.mxu1 %v6726_v53 }
 0x12c   : > { %1252 = vmatprep.subr.bf16.mxu1 %v6730_v54 }
 0x12e   : > { %1292 = vmatpush1.bf16.msra.mxu0 %v6697_v49 }
 0x12f   : > { %1293 = vmatprep.subr.bf16.mxu0 %v6705_v52  ;;  %1253 = vmatpush1.bf16.msra.mxu1 %v6732_v57  ;;  %v6768_v52 = vld [vmem:[#allocation7 + $0x74] ss:$24 sps:$4 sm:$0xff]   ;;  %v6769_v57 = vld [vmem:[#allocation7 + $0xa0] ss:$24 sps:$4 sm:$0xff]  }
 0x130   : > { %1254 = vmatprep.subr.bf16.mxu1 %v6736_v58  ;;  %v6774_v58 = vld [vmem:[#allocation7 + $0xd4] ss:$24 sps:$4 sm:$0xff]  }
 0x132   : > { %1294 = vmatpush1.bf16.msra.mxu0 %v6703_v55  ;;  %v6766_v55 = vld [vmem:[#allocation7 + $0x70] ss:$24 sps:$4 sm:$0xff]  }
 0x133   : > { %1295 = vmatprep.subr.bf16.mxu0 %v6711_v56  ;;  %1255 = vmatpush1.bf16.msra.mxu1 %v6738_v61  ;;  %v6771_v56 = vld [vmem:[#allocation7 + $0xa4] ss:$24 sps:$4 sm:$0xff]   ;;  %v6775_v61 = vld [vmem:[#allocation7 + $0x100] ss:$24 sps:$4 sm:$0xff]  }
 0x134   : > { %1256 = vmatprep.subr.bf16.mxu1 %v6742_v62  ;;  %v6780_v62 = vld [vmem:[#allocation7 + $0x134] ss:$24 sps:$4 sm:$0xff]  }
 0x136   : > { %1296 = vmatpush1.bf16.msra.mxu0 %v6709_v59  ;;  %v6772_v59 = vld [vmem:[#allocation7 + $0xd0] ss:$24 sps:$4 sm:$0xff]  }
 0x137   : > { %1297 = vmatprep.subr.bf16.mxu0 %v6717_v60  ;;  %1257 = vmatpush1.bf16.msra.mxu1 %v6744_v1  ;;  %v6777_v60 = vld [vmem:[#allocation7 + $0x104] ss:$24 sps:$4 sm:$0xff]   ;;  %v6781_v1 = vld [vmem:[#allocation7 + $0x160] ss:$24 sps:$4 sm:$0xff]  }
 0x138   : > { %1258 = vmatprep.subr.bf16.mxu1 %v6748_v11  ;;  %v6796_v11 = vld [vmem:[#allocation7 + $0x250] ss:$24 sps:$4 sm:$0xff]  }
 0x13a   : > { %1298 = vmatpush1.bf16.msra.mxu0 %v6715_v63  ;;  %v6778_v63 = vld [vmem:[#allocation7 + $0x130] ss:$24 sps:$4 sm:$0xff]  }
 0x13b   : > { %1299 = vmatprep.subr.bf16.mxu0 %v6723_v0  ;;  %1259 = vmatpush1.bf16.msra.mxu1 %v6750_v12  ;;  %v6783_v0 = vld [vmem:[#allocation7 + $0x164] ss:$24 sps:$4 sm:$0xff]  }
 0x13c   : > { %1260 = vmatprep.subr.bf16.mxu1 %v6754_v15  ;;  %v6801_v12 = vld [vmem:[#allocation7 + $0x284] ss:$24 sps:$4 sm:$0xff]   ;;  %v6802_v15 = vld [vmem:[#allocation7 + $0x2b0] ss:$24 sps:$4 sm:$0xff]  }
 0x13e   : > { %1300 = vmatpush1.bf16.msra.mxu0 %v6721_v2  ;;  %v6786_v2 = vld [vmem:[#allocation7 + $0x194] ss:$24 sps:$4 sm:$0xff]  }
 0x13f   : > { %1301 = vmatprep.subr.bf16.mxu0 %v6729_v3  ;;  %1261 = vmatpush1.bf16.msra.mxu1 %v6756_v16  ;;  %v6784_v3 = vld [vmem:[#allocation7 + $0x190] ss:$24 sps:$4 sm:$0xff]   ;;  %v6807_v16 = vld [vmem:[#allocation7 + $0x2e4] ss:$24 sps:$4 sm:$0xff]  }
 0x140   : > { %1332 = vmatprep.subr.bf16.mxu1 %v6762_v19 }
 0x142   : > { %1302 = vmatpush1.bf16.msra.mxu0 %v6727_v4  ;;  %v6789_v4 = vld [vmem:[#allocation7 + $0x1c4] ss:$24 sps:$4 sm:$0xff]  }
 0x143   : > { %1303 = vmatprep.subr.bf16.mxu0 %v6735_v5  ;;  %v6787_v5 = vld [vmem:[#allocation7 + $0x1c0] ss:$24 sps:$4 sm:$0xff]  }
 0x146   : > { %1304 = vmatpush1.bf16.msra.mxu0 %v6733_v6  ;;  %v6792_v6 = vld [vmem:[#allocation7 + $0x1f4] ss:$24 sps:$4 sm:$0xff]  }
 0x147   : > { %1305 = vmatprep.subr.bf16.mxu0 %v6741_v7  ;;  %v6790_v7 = vld [vmem:[#allocation7 + $0x1f0] ss:$24 sps:$4 sm:$0xff]  }
 0x14a   : > { %1306 = vmatpush1.bf16.msra.mxu0 %v6739_v8  ;;  %v6795_v8 = vld [vmem:[#allocation7 + $0x224] ss:$24 sps:$4 sm:$0xff]  }
 0x14b   : > { %1307 = vmatprep.subr.bf16.mxu0 %v6747_v9  ;;  %v6793_v9 = vld [vmem:[#allocation7 + $0x220] ss:$24 sps:$4 sm:$0xff]  }
 0x14e   : > { %1308 = vmatpush1.bf16.msra.mxu0 %v6745_v10  ;;  %v6798_v10 = vld [vmem:[#allocation7 + $0x254] ss:$24 sps:$4 sm:$0xff]  }
 0x14f   : > { %1309 = vmatprep.subr.bf16.mxu0 %v6753_v13  ;;  %v6799_v13 = vld [vmem:[#allocation7 + $0x280] ss:$24 sps:$4 sm:$0xff]  }
 0x152   : > { %1310 = vmatpush1.bf16.msra.mxu0 %v6751_v14  ;;  %v6804_v14 = vld [vmem:[#allocation7 + $0x2b4] ss:$24 sps:$4 sm:$0xff]  }
 0x153   : > { %1311 = vmatprep.subr.bf16.mxu0 %v6759_v17  ;;  %v6805_v17 = vld [vmem:[#allocation7 + $0x2e0] ss:$24 sps:$4 sm:$0xff]  }
 0x156   : > { %1312 = vmatpush1.bf16.msra.mxu0 %v6757_v18  ;;  %v7779_v18 = vmov 0.0  }
 0x1ec   : > { %v620_v27 = vpop.f32.mrb[0].mxu0 }
 0x1ed   : > { %v621_v28 = vadd.f32 %v620_v27, %v492_v25  ;;  %v622_v29 = vpop.f32.mrb[1].mxu0 }
 0x1ee   : > { %v623_v30 = vadd.f32 %v622_v29, %v496_v26  ;;  %v624_v31 = vpop.f32.mrb[2].mxu0 }
 0x1ef   : > { %v625_v32 = vadd.f32 %v624_v31, %v492_v25  ;;  %v626_v33 = vpop.f32.mrb[3].mxu0  ;;  %v637_v35 = vmax.f32 %v621_v28, 0.0 }
 0x1f0   : > { %v627_v34 = vadd.f32 %v626_v33, %v496_v26  ;;  %v638_v37 = vmax.f32 %v623_v30, 0.0 }
 0x1f1   : > { %v639_v36 = vmax.f32 %v625_v32, 0.0 }
 0x1f2   : > { %v640_v38 = vmax.f32 %v627_v34, 0.0  ;;  %v8133_v34 = vld [vmem:[%s8437_s3] sm:$0xff] }
 0x1f3   : > { %v8104_v39 = vpack.c.bf16 %v639_v36, %v637_v35 }
 0x1f4   : > { %v651_v40 = vpack.c.bf16 %v640_v38, %v638_v37  ;;  %v630_v41 = vpop.f32.mrb[4].mxu0 }
 0x1f5   : > { %v631_v43 = vadd.f32 %v630_v41, %v492_v25  ;;  %v632_v44 = vpop.f32.mrb[5].mxu0  ;;  %v8153_v41 = vld [vmem:[%s8437_s3 + $0x10] sm:$0xf] }
 0x1f6   : > { %1262 = vmatprep.mubr.bf16.mxu1 %v651_v40  ;;  %1313 = vmatprep.mubr.bf16.mxu0 %v651_v40  ;;  %v633_v46 = vadd.f32 %v632_v44, %v496_v26  ;;  %v634_v47 = vpop.f32.mrb[6].mxu0 }
 0x1f7   : > { %v641_v48 = vmax.f32 %v631_v43, 0.0  ;;  %1263 = vmatmul.mubr.bf16.vlgmr.msra.gmra.mrb[0].mxu1 %v8104_v39  ;;  %1314 = vmatmul.mubr.bf16.vlgmr.msra.gmra.mrb[8].mxu0 %v8104_v39  ;;  %v635_v49 = vpop.f32.mrb[7].mxu0 }
 0x1f8   : > { %v642_v50 = vmax.f32 %v633_v46, 0.0  ;;  %1333 = vmatpush1.bf16.msra.mxu1 %v6760_v42 }
 0x1f9   : > { %1334 = vmatprep.subr.bf16.mxu1 %v6765_v45  ;;  %v8110_v54 = vpack.c.bf16 %v641_v48, %v641_v48 }
 0x1fa   : > { %v8108_v53 = vpack.c.bf16 %v642_v50, %v642_v50  ;;  %v8161_v50 = vld [vmem:[%s8437_s3 + $0x18] sm:$0xff] }
 0x1fc   : > { %1335 = vmatpush1.bf16.msra.mxu1 %v6763_v51  ;;  %1272 = vmatprep.mubr.bf16.mxu1 %v8108_v53 }
 0x1fd   : > { %1336 = vmatprep.subr.bf16.mxu1 %v6768_v52  ;;  %1323 = vmatprep.mubr.bf16.mxu0 %v8108_v53 }
 0x1ff   : > { %1273 = vmatmul.mubr.bf16.gmra.mrb[4].mxu1 %v8110_v54  ;;  %1324 = vmatmul.mubr.bf16.gmra.mrb[12].mxu0 %v8110_v54 }
 0x200   : > { %1337 = vmatpush1.bf16.msra.mxu1 %v6766_v55  ;;  %1364 = vmatprep.mubr.bf16.mxu1 %v651_v40  ;;  %v8145_v40 = vld [vmem:[%s8437_s3 + $0x8] sm:$0xff]  ;;  %v6808_v55 = vld [vmem:[#allocation10] ss:$8 sps:$4 sm:$0xff]  }
 0x201   : > { %1338 = vmatprep.subr.bf16.mxu1 %v6771_v56  ;;  %1464 = vmatprep.mubr.f32.mxu0 %v7779_v18  ;;  %v6810_v56 = vld [vmem:[#allocation10 + $0x4] ss:$8 sps:$4 sm:$0xff]  }
 0x204   : > { %1339 = vmatpush1.bf16.msra.mxu1 %v6769_v57  ;;  %v6813_v57 = vld [vmem:[#allocation10 + $0x14] ss:$8 sps:$4 sm:$0xff]  }
 0x205   : > { %1340 = vmatprep.subr.bf16.mxu1 %v6774_v58  ;;  %v6811_v58 = vld [vmem:[#allocation10 + $0x10] ss:$8 sps:$4 sm:$0xff]  }
 0x208   : > { %1341 = vmatpush1.bf16.msra.mxu1 %v6772_v59  ;;  %v6816_v59 = vld [vmem:[#allocation10 + $0x24] ss:$8 sps:$4 sm:$0xff]  }
 0x209   : > { %1342 = vmatprep.subr.bf16.mxu1 %v6777_v60  ;;  %v6814_v60 = vld [vmem:[#allocation10 + $0x20] ss:$8 sps:$4 sm:$0xff]  }
 0x20c   : > { %1343 = vmatpush1.bf16.msra.mxu1 %v6775_v61  ;;  %v6819_v61 = vld [vmem:[#allocation10 + $0x34] ss:$8 sps:$4 sm:$0xff]  }
 0x20d   : > { %1344 = vmatprep.subr.bf16.mxu1 %v6780_v62  ;;  %v6817_v62 = vld [vmem:[#allocation10 + $0x30] ss:$8 sps:$4 sm:$0xff]  }
 0x210   : > { %1345 = vmatpush1.bf16.msra.mxu1 %v6778_v63  ;;  %v6822_v63 = vld [vmem:[#allocation10 + $0x44] ss:$8 sps:$4 sm:$0xff]  }
 0x211   : > { %1346 = vmatprep.subr.bf16.mxu1 %v6783_v0  ;;  %v6820_v0 = vld [vmem:[#allocation10 + $0x40] ss:$8 sps:$4 sm:$0xff]  }
 0x214   : > { %1347 = vmatpush1.bf16.msra.mxu1 %v6781_v1  ;;  %v6825_v1 = vld [vmem:[#allocation10 + $0x54] ss:$8 sps:$4 sm:$0xff]  }
 0x215   : > { %1348 = vmatprep.subr.bf16.mxu1 %v6786_v2  ;;  %v6823_v2 = vld [vmem:[#allocation10 + $0x50] ss:$8 sps:$4 sm:$0xff]  }
 0x218   : > { %1349 = vmatpush1.bf16.msra.mxu1 %v6784_v3  ;;  %v6828_v3 = vld [vmem:[#allocation10 + $0x64] ss:$8 sps:$4 sm:$0xff]  }
 0x219   : > { %1350 = vmatprep.subr.bf16.mxu1 %v6789_v4  ;;  %v6826_v4 = vld [vmem:[#allocation10 + $0x60] ss:$8 sps:$4 sm:$0xff]  }
 0x21c   : > { %1351 = vmatpush1.bf16.msra.mxu1 %v6787_v5  ;;  %v6831_v5 = vld [vmem:[#allocation10 + $0x74] ss:$8 sps:$4 sm:$0xff]  }
 0x21d   : > { %1352 = vmatprep.subr.bf16.mxu1 %v6792_v6  ;;  %v6829_v6 = vld [vmem:[#allocation10 + $0x70] ss:$8 sps:$4 sm:$0xff]  }
 0x220   : > { %1353 = vmatpush1.bf16.msra.mxu1 %v6790_v7  ;;  %v6834_v7 = vld [vmem:[#allocation10 + $0x84] ss:$8 sps:$4 sm:$0xff]  }
 0x221   : > { %1354 = vmatprep.subr.bf16.mxu1 %v6795_v8  ;;  %v6832_v8 = vld [vmem:[#allocation10 + $0x80] ss:$8 sps:$4 sm:$0xff]  }
 0x224   : > { %1355 = vmatpush1.bf16.msra.mxu1 %v6793_v9  ;;  %v6837_v9 = vld [vmem:[#allocation10 + $0x94] ss:$8 sps:$4 sm:$0xff]  }
 0x225   : > { %1356 = vmatprep.subr.bf16.mxu1 %v6798_v10  ;;  %v6835_v10 = vld [vmem:[#allocation10 + $0x90] ss:$8 sps:$4 sm:$0xff]  }
 0x228   : > { %1357 = vmatpush1.bf16.msra.mxu1 %v6796_v11  ;;  %v6840_v11 = vld [vmem:[#allocation10 + $0xa4] ss:$8 sps:$4 sm:$0xff]  }
 0x229   : > { %1358 = vmatprep.subr.bf16.mxu1 %v6801_v12  ;;  %v6838_v12 = vld [vmem:[#allocation10 + $0xa0] ss:$8 sps:$4 sm:$0xff]  }
 0x22c   : > { %1359 = vmatpush1.bf16.msra.mxu1 %v6799_v13  ;;  %v6843_v13 = vld [vmem:[#allocation10 + $0xb4] ss:$8 sps:$4 sm:$0xff]  }
 0x22d   : > { %1360 = vmatprep.subr.bf16.mxu1 %v6804_v14  ;;  %v6841_v14 = vld [vmem:[#allocation10 + $0xb0] ss:$8 sps:$4 sm:$0xff]  }
 0x230   : > { %1361 = vmatpush1.bf16.msra.mxu1 %v6802_v15  ;;  %v6846_v15 = vld [vmem:[#allocation10 + $0xc4] ss:$8 sps:$4 sm:$0xff]  }
 0x231   : > { %1362 = vmatprep.subr.bf16.mxu1 %v6807_v16  ;;  %v6844_v16 = vld [vmem:[#allocation10 + $0xc0] ss:$8 sps:$4 sm:$0xff]  }
 0x234   : > { %1363 = vmatpush1.bf16.msra.mxu1 %v6805_v17  ;;  %v6849_v17 = vld [vmem:[#allocation10 + $0xd4] ss:$8 sps:$4 sm:$0xff]  }
 0x237   : > { %1365 = vmatmul.mubr.bf16.vlgmr.msra.gmra.mrb[8].mxu1 %v8104_v39 }
 0x238   : > { %1374 = vmatprep.mubr.bf16.mxu1 %v8108_v53  ;;  %v8171_v53 = vld [vmem:[%s8437_s3 + $0x20] sm:$0xff] }
 0x23f   : > { %1375 = vmatmul.mubr.bf16.gmra.mrb[12].mxu1 %v8110_v54  ;;  %v8179_v54 = vld [vmem:[%s8437_s3 + $0x28] sm:$0xf] }
 0x2ca   : > { %v1264_v19 = vpop.f32.mrb[0].mxu1  ;;  %v8120_v20 = vpop.f32.mrb[8].mxu0 }
 0x2cb   : > { %v1266_v21 = vpop.f32.mrb[1].mxu1  ;;  %v8122_v23 = vpop.f32.mrb[9].mxu0 }
 0x2cc   : > { %v1268_v25 = vpop.f32.mrb[2].mxu1  ;;  %v8124_v26 = vpop.f32.mrb[10].mxu0 }
 0x2cd   : > { %v6481_v27 = vpack.c.bf16 %v1268_v25, %v1264_v19  ;;  %v1270_v28 = vpop.f32.mrb[3].mxu1  ;;  %v8126_v29 = vpop.f32.mrb[11].mxu0  ;;  %v6847_v19 = vld [vmem:[#allocation10 + $0xd0] ss:$8 sps:$4 sm:$0xff]   ;;  %v6850_v25 = vld [vmem:[#allocation10 + $0xe0] ss:$8 sps:$4 sm:$0xff]  }
 0x2ce   : > { %v6479_v30 = vpack.c.bf16 %v1270_v28, %v1266_v21  ;;  %v6852_v21 = vld [vmem:[#allocation10 + $0xe4] ss:$8 sps:$4 sm:$0xff]   ;;  %v6853_v28 = vld [vmem:[#allocation10 + $0xf0] ss:$8 sps:$4 sm:$0xff]  }
 0x2d0   : > { %6480 = vmatprep.subr.bf16.mxu0 %v6479_v30  ;;  %v6856_v30 = vld [vmem:[#allocation7 + $0x300] ss:$24 sps:$4 sm:$0xff]  }
 0x2d1   : > { %6482 = vmatpush1.bf16.msra.mxu0 %v6481_v27  ;;  %v6855_v27 = vld [vmem:[#allocation10 + $0xf4] ss:$8 sps:$4 sm:$0xff]  }
 0x2d2   : > { %v1274_v31 = vpop.f32.mrb[4].mxu1  ;;  %v8128_v32 = vpop.f32.mrb[12].mxu0 }
 0x2d3   : > { %v1276_v33 = vpop.f32.mrb[5].mxu1  ;;  %v8135_v35 = vpop.f32.mrb[13].mxu0 }
 0x2d4   : > { %5982 = vmatprep.subr.msk.mxu0 %vm1393_vm2, %v1276_v33  ;;  %v1278_v36 = vpop.f32.mrb[6].mxu1  ;;  %v1329_v37 = vpop.f32.mrb[14].mxu0  ;;  %v6861_v33 = vld [vmem:[#allocation7 + $0x30c] ss:$24 sps:$4 sm:$0xff]  }
 0x2d5   : > { %5983 = vmatpush1.msk.msra.mxu0 %vm1393_vm2, %v1274_v31  ;;  %v1279_v38 = vpop.f32.mrb[7].mxu1  ;;  %v1330_v39 = vpop.f32.mrb[15].mxu0  ;;  %v6858_v31 = vld [vmem:[#allocation7 + $0x304] ss:$24 sps:$4 sm:$0xff]   ;;  %v6864_v36 = vld [vmem:[#allocation7 + $0x334] ss:$24 sps:$4 sm:$0xff]  }
 0x2d6   : > { %5984 = vmatmul.mubr.msk.f32.vlgmr.msra.gmra.mrb[16].mxu0 %vm1383_vm3, %v8133_v34  ;;  %2457 = vmatprep.subr.bf16.mxu1 %v6858_v31  ;;  %v6862_v37 = vld [vmem:[#allocation7 + $0x330] ss:$24 sps:$4 sm:$0xff]   ;;  %v6870_v38 = vld [vmem:[#allocation7 + $0x364] ss:$24 sps:$4 sm:$0xff]   ;;  %v6868_v39 = vld [vmem:[#allocation7 + $0x360] ss:$24 sps:$4 sm:$0xff]  }
 0x2d7   : > { %1470 = vmatprep.mubr.f32.mxu0 %v7779_v18  ;;  %2458 = vmatpush1.bf16.msra.mxu1 %v6856_v30 }
 0x2d8   : > { %2459 = vmatprep.subr.bf16.mxu1 %v6864_v36 }
 0x2da   : > { %5985 = vmatmul.mubr.msk.f32.gmra.mrb[18].mxu0 %vm1383_vm3, %v8145_v40 }
 0x2db   : > { %1476 = vmatprep.mubr.f32.mxu0 %v7779_v18  ;;  %2460 = vmatpush1.bf16.msra.mxu1 %v6862_v37 }
 0x2dc   : > { %2461 = vmatprep.subr.bf16.mxu1 %v6870_v38 }
 0x2de   : > { %5986 = vmatmul.mubr.msk.f32.gmra.mrb[20].mxu0 %vm1383_vm3, %v8153_v41 }
 0x2df   : > { %1562 = vmatprep.mubr.f32.mxu0 %v7779_v18  ;;  %2462 = vmatpush1.bf16.msra.mxu1 %v6868_v39 }
 0x30a   : > { %v1366_v42 = vpop.f32.mrb[8].mxu1 }
 0x30b   : > { %v1368_v43 = vpop.f32.mrb[9].mxu1 }
 0x30c   : > { %v1370_v44 = vpop.f32.mrb[10].mxu1 }
 0x30d   : > { %v6485_v45 = vpack.c.bf16 %v1370_v44, %v1366_v42  ;;  %v1372_v46 = vpop.f32.mrb[11].mxu1  ;;  %v6876_v42 = vld [vmem:[#allocation7 + $0x394] ss:$24 sps:$4 sm:$0xff]   ;;  %v6882_v44 = vld [vmem:[#allocation7 + $0x3c4] ss:$24 sps:$4 sm:$0xff]  }
 0x30e   : > { %v6483_v47 = vpack.c.bf16 %v1372_v46, %v1368_v43  ;;  %v6874_v43 = vld [vmem:[#allocation7 + $0x390] ss:$24 sps:$4 sm:$0xff]   ;;  %2463 = vmatprep.subr.bf16.mxu1 %v6876_v42  ;;  %v6888_v46 = vld [vmem:[#allocation7 + $0x3f4] ss:$24 sps:$4 sm:$0xff]  }
 0x30f   : > { %2464 = vmatpush1.bf16.msra.mxu1 %v6874_v43 }
 0x310   : > { %6484 = vmatprep.subr.bf16.mxu0 %v6483_v47  ;;  %2465 = vmatprep.subr.bf16.mxu1 %v6882_v44  ;;  %v6886_v47 = vld [vmem:[#allocation7 + $0x3f0] ss:$24 sps:$4 sm:$0xff]  }
 0x311   : > { %6486 = vmatpush1.bf16.msra.mxu0 %v6485_v45  ;;  %v6880_v45 = vld [vmem:[#allocation7 + $0x3c0] ss:$24 sps:$4 sm:$0xff]  }
 0x312   : > { %v1376_v48 = vpop.f32.mrb[12].mxu1 }
 0x313   : > { %v1378_v49 = vpop.f32.mrb[13].mxu1  ;;  %2466 = vmatpush1.bf16.msra.mxu1 %v6880_v45 }
 0x314   : > { %v1380_v51 = vpop.f32.mrb[14].mxu1  ;;  %5987 = vmatprep.subr.msk.mxu0 %vm1393_vm2, %v1378_v49  ;;  %2467 = vmatprep.subr.bf16.mxu1 %v6888_v46  ;;  %v6892_v49 = vld [vmem:[#allocation7 + $0x420] ss:$24 sps:$4 sm:$0xff]  }
 0x315   : > { %v1381_v52 = vpop.f32.mrb[15].mxu1  ;;  %5988 = vmatpush1.msk.msra.mxu0 %vm1393_vm2, %v1376_v48  ;;  %v6894_v48 = vld [vmem:[#allocation7 + $0x424] ss:$24 sps:$4 sm:$0xff]   ;;  %v6900_v51 = vld [vmem:[#allocation7 + $0x454] ss:$24 sps:$4 sm:$0xff]  }
 0x316   : > { %5989 = vmatmul.mubr.msk.f32.vlgmr.msra.gmra.mrb[22].mxu0 %vm1383_vm3, %v8161_v50  ;;  %1819 = vmatprep.subr.bf16.mxu0 %v6810_v56  ;;  %v6898_v52 = vld [vmem:[#allocation7 + $0x450] ss:$24 sps:$4 sm:$0xff]   ;;  %v6904_v56 = vld [vmem:[#allocation7 + $0x480] ss:$24 sps:$4 sm:$0xff]  }
 0x317   : > { %1568 = vmatprep.mubr.f32.mxu0 %v7779_v18  ;;  %1820 = vmatpush1.bf16.msra.mxu0 %v6808_v55  ;;  %v6906_v55 = vld [vmem:[#allocation7 + $0x484] ss:$24 sps:$4 sm:$0xff]  }
 0x318   : > { %1821 = vmatprep.subr.bf16.mxu0 %v6813_v57  ;;  %2468 = vmatpush1.bf16.msra.mxu1 %v6886_v47  ;;  %v6912_v57 = vld [vmem:[#allocation7 + $0x4b4] ss:$24 sps:$4 sm:$0xff]   ;;  %v6859_v47 = vld [vmem:[#allocation7 + $0x308] ss:$24 sps:$4 sm:$0xff]  }
 0x319   : > { %2469 = vmatprep.subr.bf16.mxu1 %v6894_v48 }
 0x31a   : > { %5990 = vmatmul.mubr.msk.f32.gmra.mrb[24].mxu0 %vm1383_vm3, %v8171_v53 }
 0x31b   : > { %1574 = vmatprep.mubr.f32.mxu0 %v7779_v18  ;;  %1822 = vmatpush1.bf16.msra.mxu0 %v6811_v58  ;;  %v6910_v58 = vld [vmem:[#allocation7 + $0x4b0] ss:$24 sps:$4 sm:$0xff]  }
 0x31c   : > { %1823 = vmatprep.subr.bf16.mxu0 %v6816_v59  ;;  %2470 = vmatpush1.bf16.msra.mxu1 %v6892_v49  ;;  %v6918_v59 = vld [vmem:[#allocation7 + $0x4e4] ss:$24 sps:$4 sm:$0xff]  }
 0x31d   : > { %2471 = vmatprep.subr.bf16.mxu1 %v6900_v51  ;;  %v6867_v49 = vld [vmem:[#allocation7 + $0x33c] ss:$24 sps:$4 sm:$0xff]  }
 0x31e   : > { %5991 = vmatmul.mubr.msk.f32.gmra.mrb[26].mxu0 %vm1383_vm3, %v8179_v54 }
 0x31f   : > { %1824 = vmatpush1.bf16.msra.mxu0 %v6814_v60  ;;  %v6916_v60 = vld [vmem:[#allocation7 + $0x4e0] ss:$24 sps:$4 sm:$0xff]  }
 0x320   : > { %1825 = vmatprep.subr.bf16.mxu0 %v6819_v61  ;;  %2472 = vmatpush1.bf16.msra.mxu1 %v6898_v52  ;;  %v6924_v61 = vld [vmem:[#allocation7 + $0x514] ss:$24 sps:$4 sm:$0xff]  }
 0x321   : > { %2473 = vmatprep.subr.bf16.mxu1 %v6906_v55  ;;  %v6865_v55 = vld [vmem:[#allocation7 + $0x338] ss:$24 sps:$4 sm:$0xff]  }
 0x323   : > { %1826 = vmatpush1.bf16.msra.mxu0 %v6817_v62 }
 0x324   : > { %1827 = vmatprep.subr.bf16.mxu0 %v6822_v63  ;;  %2474 = vmatpush1.bf16.msra.mxu1 %v6904_v56 }
 0x325   : > { %2475 = vmatprep.subr.bf16.mxu1 %v6912_v57  ;;  %v6873_v57 = vld [vmem:[#allocation7 + $0x36c] ss:$24 sps:$4 sm:$0xff]  }
 0x327   : > { %1828 = vmatpush1.bf16.msra.mxu0 %v6820_v0 }
 0x328   : > { %1829 = vmatprep.subr.bf16.mxu0 %v6825_v1  ;;  %2476 = vmatpush1.bf16.msra.mxu1 %v6910_v58  ;;  %v6871_v58 = vld [vmem:[#allocation7 + $0x368] ss:$24 sps:$4 sm:$0xff]  }
 0x329   : > { %2477 = vmatprep.subr.bf16.mxu1 %v6918_v59 }
 0x32b   : > { %1830 = vmatpush1.bf16.msra.mxu0 %v6823_v2  ;;  %v6922_v2 = vld [vmem:[#allocation7 + $0x510] ss:$24 sps:$4 sm:$0xff]  }
 0x32c   : > { %1831 = vmatprep.subr.bf16.mxu0 %v6828_v3  ;;  %2478 = vmatpush1.bf16.msra.mxu1 %v6916_v60  ;;  %v6930_v3 = vld [vmem:[#allocation7 + $0x544] ss:$24 sps:$4 sm:$0xff]  }
 0x32d   : > { %2479 = vmatprep.subr.bf16.mxu1 %v6924_v61  ;;  %v6879_v60 = vld [vmem:[#allocation7 + $0x39c] ss:$24 sps:$4 sm:$0xff]   ;;  %v6877_v61 = vld [vmem:[#allocation7 + $0x398] ss:$24 sps:$4 sm:$0xff]  }
 0x32f   : > { %1832 = vmatpush1.bf16.msra.mxu0 %v6826_v4 }
 0x330   : > { %1833 = vmatprep.subr.bf16.mxu0 %v6831_v5  ;;  %2480 = vmatpush1.bf16.msra.mxu1 %v6922_v2  ;;  %v6897_v2 = vld [vmem:[#allocation7 + $0x42c] ss:$24 sps:$4 sm:$0xff]  }
 0x331   : > { %2481 = vmatprep.subr.bf16.mxu1 %v6930_v3  ;;  %v6895_v3 = vld [vmem:[#allocation7 + $0x428] ss:$24 sps:$4 sm:$0xff]  }
 0x333   : > { %1834 = vmatpush1.bf16.msra.mxu0 %v6829_v6 }
 0x334   : > { %1835 = vmatprep.subr.bf16.mxu0 %v6834_v7 }
 0x337   : > { %1836 = vmatpush1.bf16.msra.mxu0 %v6832_v8  ;;  %v6928_v8 = vld [vmem:[#allocation7 + $0x540] ss:$24 sps:$4 sm:$0xff]  }
 0x338   : > { %1837 = vmatprep.subr.bf16.mxu0 %v6837_v9  ;;  %v6936_v9 = vld [vmem:[#allocation7 + $0x574] ss:$24 sps:$4 sm:$0xff]   ;;  %2482 = vmatpush1.bf16.msra.mxu1 %v6928_v8 }
 0x339   : > { %2483 = vmatprep.subr.bf16.mxu1 %v6936_v9  ;;  %v6915_v8 = vld [vmem:[#allocation7 + $0x4bc] ss:$24 sps:$4 sm:$0xff]   ;;  %v6913_v9 = vld [vmem:[#allocation7 + $0x4b8] ss:$24 sps:$4 sm:$0xff]  }
 0x33b   : > { %1838 = vmatpush1.bf16.msra.mxu0 %v6835_v10 }
 0x33c   : > { %1839 = vmatprep.subr.bf16.mxu0 %v6840_v11 }
 0x33f   : > { %1840 = vmatpush1.bf16.msra.mxu0 %v6838_v12  ;;  %v6934_v12 = vld [vmem:[#allocation7 + $0x570] ss:$24 sps:$4 sm:$0xff]  }
 0x340   : > { %1841 = vmatprep.subr.bf16.mxu0 %v6843_v13  ;;  %2484 = vmatpush1.bf16.msra.mxu1 %v6934_v12  ;;  %v1587_v13 = vld [vmem:[#allocation8] sm:$0x3]  ;;  %v6933_v12 = vld [vmem:[#allocation7 + $0x54c] ss:$24 sps:$4 sm:$0xff]  }
 0x343   : > { %1842 = vmatpush1.bf16.msra.mxu0 %v6841_v14 }
 0x344   : > { %1843 = vmatprep.subr.bf16.mxu0 %v6846_v15  ;;  %v1592_v15 = vrot.slane %v1587_v13, %v8098_v22 }
 0x347   : > { %1844 = vmatpush1.bf16.msra.mxu0 %v6844_v16 }
 0x348   : > { %1845 = vmatprep.subr.bf16.mxu0 %v6849_v17  ;;  %v1596_v17 = vrot.slane %v1587_v13, %v8100_v24  ;;  %v6931_v13 = vld [vmem:[#allocation7 + $0x548] ss:$24 sps:$4 sm:$0xff]  }
 0x34b   : > { %1846 = vmatpush1.bf16.msra.mxu0 %v6847_v19 }
 0x34c   : > { %1847 = vmatprep.subr.bf16.mxu0 %v6852_v21 }
 0x34f   : > { %1848 = vmatpush1.bf16.msra.mxu0 %v6850_v25 }
 0x350   : > { %1849 = vmatprep.subr.bf16.mxu0 %v6855_v27 }
 0x353   : > { %1850 = vmatpush1.bf16.msra.mxu0 %v6853_v28 }
 0x354   : > { %2508 = vmatprep.subr.bf16.mxu0 %v6861_v33 }
 0x3a9   : > { %v1466_v62 = vpop.f32.mrb[16].mxu0 }
 0x3aa   : > { %v1467_v63 = vadd.f32 %v1466_v62, %v8120_v20  ;;  %v1468_v0 = vpop.f32.mrb[17].mxu0  ;;  %v6885_v62 = vld [vmem:[#allocation7 + $0x3cc] ss:$24 sps:$4 sm:$0xff]  }
 0x3ab   : > { %v1469_v1 = vadd.f32 %v1468_v0, %v8122_v23  ;;  %v6891_v0 = vld [vmem:[#allocation7 + $0x3fc] ss:$24 sps:$4 sm:$0xff]  }
 0x3ad   : > { %v1472_v4 = vpop.f32.mrb[18].mxu0 }
 0x3ae   : > { %v1473_v5 = vadd.f32 %v1472_v4, %v8124_v26  ;;  %v1474_v6 = vpop.f32.mrb[19].mxu0  ;;  %v6903_v4 = vld [vmem:[#allocation7 + $0x45c] ss:$24 sps:$4 sm:$0xff]  }
 0x3af   : > { %v1475_v7 = vadd.f32 %v1474_v6, %v8126_v29  ;;  %v6909_v6 = vld [vmem:[#allocation7 + $0x48c] ss:$24 sps:$4 sm:$0xff]  }
 0x3b1   : > { %v1478_v10 = vpop.f32.mrb[20].mxu0 }
 0x3b2   : > { %v1479_v20 = vadd.f32 %v1478_v10, %v8128_v32  ;;  %v1480_v11 = vpop.f32.mrb[21].mxu0  ;;  %v6921_v10 = vld [vmem:[#allocation7 + $0x4ec] ss:$24 sps:$4 sm:$0xff]  }
 0x3b3   : > { %v1481_v23 = vadd.f32 %v1480_v11, %v8135_v35  ;;  %v6927_v11 = vld [vmem:[#allocation7 + $0x51c] ss:$24 sps:$4 sm:$0xff]  }
 0x3e9   : > { %v1564_v14 = vpop.f32.mrb[22].mxu0 }
 0x3ea   : > { %v1581_v26 = vadd.f32 %v1564_v14, %v1467_v63  ;;  %v1566_v29 = vpop.f32.mrb[23].mxu0  ;;  %v6883_v63 = vld [vmem:[#allocation7 + $0x3c8] ss:$24 sps:$4 sm:$0xff]   ;;  %v6939_v14 = vld [vmem:[#allocation7 + $0x57c] ss:$24 sps:$4 sm:$0xff]  }
 0x3eb   : > { %v1582_v16 = vadd.f32 %v1566_v29, %v1469_v1  ;;  %v6889_v1 = vld [vmem:[#allocation7 + $0x3f8] ss:$24 sps:$4 sm:$0xff]  }
 0x3ec   : > { %v1599_v21 = vadd.f32 %v1592_v15, %v1581_v26  ;;  %v6937_v26 = vld [vmem:[#allocation7 + $0x578] ss:$24 sps:$4 sm:$0xff]  }
 0x3ed   : > { %v1570_v19 = vpop.f32.mrb[24].mxu0  ;;  %v1600_v27 = vadd.f32 %v1596_v17, %v1582_v16  ;;  %v6940_v29 = vld [vmem:[#allocation7 + $0x5a0] ss:$24 sps:$4 sm:$0xff]   ;;  %v6945_v16 = vld [vmem:[#allocation7 + $0x5ac] ss:$24 sps:$4 sm:$0xff]  }
 0x3ee   : > { %v1583_v25 = vadd.f32 %v1570_v19, %v1473_v5  ;;  %v1572_v32 = vpop.f32.mrb[25].mxu0  ;;  %v1605_v33 = vmax.f32 %v1599_v21, 0.0  ;;  %v6901_v5 = vld [vmem:[#allocation7 + $0x458] ss:$24 sps:$4 sm:$0xff]   ;;  %v6948_v19 = vld [vmem:[#allocation7 + $0x5d4] ss:$24 sps:$4 sm:$0xff]  }
 0x3ef   : > { %v1584_v28 = vadd.f32 %v1572_v32, %v1475_v7  ;;  %v1606_v39 = vmax.f32 %v1600_v27, 0.0  ;;  %v6907_v7 = vld [vmem:[#allocation7 + $0x488] ss:$24 sps:$4 sm:$0xff]   ;;  %v6949_v32 = vld [vmem:[#allocation7 + $0x5d8] ss:$24 sps:$4 sm:$0xff]  }
 0x3f0   : > { %v1601_v35 = vadd.f32 %v1592_v15, %v1583_v25  ;;  %v6946_v21 = vld [vmem:[#allocation7 + $0x5d0] ss:$24 sps:$4 sm:$0xff]   ;;  %v6951_v25 = vld [vmem:[#allocation7 + $0x5dc] ss:$24 sps:$4 sm:$0xff]  }
 0x3f1   : > { %v1602_v30 = vadd.f32 %v1596_v17, %v1584_v28  ;;  %v1576_v31 = vpop.f32.mrb[26].mxu0  ;;  %v6954_v27 = vld [vmem:[#allocation7 + $0x314] ss:$24 sps:$4 sm:$0xff]   ;;  %v1647_v28 = vld [vmem:[#allocation11] sm:$0x3] }
 0x3f2   : > { %v1607_v36 = vmax.f32 %v1601_v35, 0.0  ;;  %v1585_v37 = vadd.f32 %v1576_v31, %v1479_v20  ;;  %v1578_v38 = vpop.f32.mrb[27].mxu0  ;;  %v6919_v20 = vld [vmem:[#allocation7 + $0x4e8] ss:$24 sps:$4 sm:$0xff]   ;;  %v1652_v35 = vrot.slane %v1647_v28, %v8098_v22 }
 0x3f3   : > { %v1608_v42 = vmax.f32 %v1602_v30, 0.0  ;;  %v1586_v43 = vadd.f32 %v1578_v38, %v1481_v23  ;;  %v6925_v23 = vld [vmem:[#allocation7 + $0x518] ss:$24 sps:$4 sm:$0xff]   ;;  %v1656_v30 = vrot.slane %v1647_v28, %v8100_v24 }
 0x3f4   : > { %v1611_v44 = vpack.c.bf16 %v1607_v36, %v1605_v33  ;;  %v1603_v48 = vadd.f32 %v1592_v15, %v1585_v37  ;;  %v6942_v15 = vld [vmem:[#allocation7 + $0x5a4] ss:$24 sps:$4 sm:$0xff]   ;;  %v6994_v28 = vld [vmem:[#allocation7 + $0x5b0] ss:$24 sps:$4 sm:$0xff]  }
 0x3f5   : > { %v1604_v45 = vadd.f32 %v1596_v17, %v1586_v43  ;;  %v1612_v46 = vpack.c.bf16 %v1608_v42, %v1606_v39  ;;  %2485 = vmatprep.subr.bf16.mxu1 %v6942_v15  ;;  %v6943_v17 = vld [vmem:[#allocation7 + $0x5a8] ss:$24 sps:$4 sm:$0xff]   ;;  %v6984_v15 = vld [vmem:[#allocation7 + $0x4f4] ss:$24 sps:$4 sm:$0xff]  }
 0x3f6   : > { %v1609_v56 = vmax.f32 %v1603_v48, 0.0  ;;  %2486 = vmatpush1.bf16.msra.mxu1 %v6940_v29  ;;  %v6982_v29 = vld [vmem:[#allocation7 + $0x4f0] ss:$24 sps:$4 sm:$0xff]  }
 0x3f7   : > { %v1610_v51 = vmax.f32 %v1604_v45, 0.0  ;;  %1851 = vmatprep.mubr.bf16.mxu0 %v1612_v46  ;;  %2487 = vmatprep.subr.bf16.mxu1 %v6948_v19  ;;  %v6990_v19 = vld [vmem:[#allocation7 + $0x554] ss:$24 sps:$4 sm:$0xff]  }
 0x3f8   : > { %1852 = vmatmul.mubr.bf16.vlgmr.msra.gmra.mrb[28].mxu0 %v1611_v44  ;;  %v1613_v59 = vpack.c.bf16 %v1609_v56, %v1609_v56 }
 0x3f9   : > { %v1614_v52 = vpack.c.bf16 %v1610_v51, %v1610_v51  ;;  %2509 = vmatpush1.bf16.msra.mxu0 %v6859_v47 }
 0x3fa   : > { %2510 = vmatprep.subr.bf16.mxu0 %v6867_v49  ;;  %2488 = vmatpush1.bf16.msra.mxu1 %v6946_v21  ;;  %v6988_v21 = vld [vmem:[#allocation7 + $0x550] ss:$24 sps:$4 sm:$0xff]  }
 0x3fb   : > { %1861 = vmatprep.mubr.bf16.mxu0 %v1614_v52  ;;  %2559 = vmatprep.subr.bf16.mxu1 %v6954_v27  ;;  %v6952_v52 = vld [vmem:[#allocation7 + $0x310] ss:$24 sps:$4 sm:$0xff]   ;;  %v6996_v27 = vld [vmem:[#allocation7 + $0x5b4] ss:$24 sps:$4 sm:$0xff]  }
 0x3fd   : > { %2511 = vmatpush1.bf16.msra.mxu0 %v6865_v55 }
 0x3fe   : > { %2512 = vmatprep.subr.bf16.mxu0 %v6873_v57  ;;  %v6957_v57 = vld [vmem:[#allocation7 + $0x344] ss:$24 sps:$4 sm:$0xff]  }
 0x400   : > { %1862 = vmatmul.mubr.bf16.gmra.mrb[32].mxu0 %v1613_v59 }
 0x401   : > { %2513 = vmatpush1.bf16.msra.mxu0 %v6871_v58 }
 0x402   : > { %2514 = vmatprep.subr.bf16.mxu0 %v6879_v60 }
 0x405   : > { %2515 = vmatpush1.bf16.msra.mxu0 %v6877_v61 }
 0x406   : > { %2516 = vmatprep.subr.bf16.mxu0 %v6885_v62  ;;  %v6955_v62 = vld [vmem:[#allocation7 + $0x340] ss:$24 sps:$4 sm:$0xff]  }
 0x409   : > { %2517 = vmatpush1.bf16.msra.mxu0 %v6883_v63 }
 0x40a   : > { %2518 = vmatprep.subr.bf16.mxu0 %v6891_v0  ;;  %v6960_v0 = vld [vmem:[#allocation7 + $0x374] ss:$24 sps:$4 sm:$0xff]  }
 0x40d   : > { %2519 = vmatpush1.bf16.msra.mxu0 %v6889_v1 }
 0x40e   : > { %2520 = vmatprep.subr.bf16.mxu0 %v6897_v2  ;;  %v6958_v2 = vld [vmem:[#allocation7 + $0x370] ss:$24 sps:$4 sm:$0xff]  }
 0x411   : > { %2521 = vmatpush1.bf16.msra.mxu0 %v6895_v3 }
 0x412   : > { %2522 = vmatprep.subr.bf16.mxu0 %v6903_v4  ;;  %v6963_v4 = vld [vmem:[#allocation7 + $0x3a4] ss:$24 sps:$4 sm:$0xff]  }
 0x415   : > { %2523 = vmatpush1.bf16.msra.mxu0 %v6901_v5  ;;  %v6961_v5 = vld [vmem:[#allocation7 + $0x3a0] ss:$24 sps:$4 sm:$0xff]  }
 0x416   : > { %2524 = vmatprep.subr.bf16.mxu0 %v6909_v6  ;;  %v6966_v6 = vld [vmem:[#allocation7 + $0x3d4] ss:$24 sps:$4 sm:$0xff]  }
 0x419   : > { %2525 = vmatpush1.bf16.msra.mxu0 %v6907_v7  ;;  %v6964_v7 = vld [vmem:[#allocation7 + $0x3d0] ss:$24 sps:$4 sm:$0xff]  }
 0x41a   : > { %2526 = vmatprep.subr.bf16.mxu0 %v6915_v8  ;;  %v6969_v8 = vld [vmem:[#allocation7 + $0x404] ss:$24 sps:$4 sm:$0xff]  }
 0x41d   : > { %2527 = vmatpush1.bf16.msra.mxu0 %v6913_v9  ;;  %v6967_v9 = vld [vmem:[#allocation7 + $0x400] ss:$24 sps:$4 sm:$0xff]  }
 0x41e   : > { %2528 = vmatprep.subr.bf16.mxu0 %v6921_v10  ;;  %v6972_v10 = vld [vmem:[#allocation7 + $0x434] ss:$24 sps:$4 sm:$0xff]  }
 0x421   : > { %2529 = vmatpush1.bf16.msra.mxu0 %v6919_v20  ;;  %v6970_v20 = vld [vmem:[#allocation7 + $0x430] ss:$24 sps:$4 sm:$0xff]  }
 0x422   : > { %2530 = vmatprep.subr.bf16.mxu0 %v6927_v11  ;;  %v6975_v11 = vld [vmem:[#allocation7 + $0x464] ss:$24 sps:$4 sm:$0xff]  }
 0x425   : > { %2531 = vmatpush1.bf16.msra.mxu0 %v6925_v23  ;;  %v6973_v23 = vld [vmem:[#allocation7 + $0x460] ss:$24 sps:$4 sm:$0xff]  }
 0x426   : > { %2532 = vmatprep.subr.bf16.mxu0 %v6933_v12  ;;  %v6978_v12 = vld [vmem:[#allocation7 + $0x494] ss:$24 sps:$4 sm:$0xff]  }
 0x429   : > { %2533 = vmatpush1.bf16.msra.mxu0 %v6931_v13  ;;  %v6976_v13 = vld [vmem:[#allocation7 + $0x490] ss:$24 sps:$4 sm:$0xff]  }
 0x42a   : > { %2534 = vmatprep.subr.bf16.mxu0 %v6939_v14  ;;  %v6981_v14 = vld [vmem:[#allocation7 + $0x4c4] ss:$24 sps:$4 sm:$0xff]  }
 0x42d   : > { %2535 = vmatpush1.bf16.msra.mxu0 %v6937_v26  ;;  %v6979_v26 = vld [vmem:[#allocation7 + $0x4c0] ss:$24 sps:$4 sm:$0xff]  }
 0x42e   : > { %2536 = vmatprep.subr.bf16.mxu0 %v6945_v16  ;;  %v6987_v16 = vld [vmem:[#allocation7 + $0x524] ss:$24 sps:$4 sm:$0xff]  }
 0x431   : > { %2537 = vmatpush1.bf16.msra.mxu0 %v6943_v17  ;;  %v6985_v17 = vld [vmem:[#allocation7 + $0x520] ss:$24 sps:$4 sm:$0xff]  }
 0x432   : > { %2538 = vmatprep.subr.bf16.mxu0 %v6951_v25  ;;  %v6993_v25 = vld [vmem:[#allocation7 + $0x584] ss:$24 sps:$4 sm:$0xff]  }
 0x435   : > { %2539 = vmatpush1.bf16.msra.mxu0 %v6949_v32  ;;  %v6991_v32 = vld [vmem:[#allocation7 + $0x580] ss:$24 sps:$4 sm:$0xff]  }
 0x4cb   : > { %v1853_v31 = vpop.f32.mrb[28].mxu0 }
 0x4cc   : > { %v1854_v33 = vadd.f32 %v1853_v31, %v1652_v35  ;;  %v1855_v36 = vpop.f32.mrb[29].mxu0 }
 0x4cd   : > { %v1856_v37 = vadd.f32 %v1855_v36, %v1656_v30  ;;  %v1857_v38 = vpop.f32.mrb[30].mxu0 }
 0x4ce   : > { %v1858_v39 = vadd.f32 %v1857_v38, %v1652_v35  ;;  %v1859_v42 = vpop.f32.mrb[31].mxu0  ;;  %v1870_v44 = vmax.f32 %v1854_v33, 0.0 }
 0x4cf   : > { %v1860_v43 = vadd.f32 %v1859_v42, %v1656_v30  ;;  %v1871_v46 = vmax.f32 %v1856_v37, 0.0 }
 0x4d0   : > { %v1872_v45 = vmax.f32 %v1858_v39, 0.0 }
 0x4d1   : > { %v1873_v47 = vmax.f32 %v1860_v43, 0.0 }
 0x4d2   : > { %v8193_v48 = vpack.c.bf16 %v1872_v45, %v1870_v44 }
 0x4d3   : > { %v1877_v49 = vpack.c.bf16 %v1873_v47, %v1871_v46  ;;  %v1863_v51 = vpop.f32.mrb[32].mxu0 }
 0x4d4   : > { %v1864_v55 = vadd.f32 %v1863_v51, %v1652_v35  ;;  %v1865_v56 = vpop.f32.mrb[33].mxu0  ;;  %v6999_v35 = vld [vmem:[#allocation7 + $0x5e4] ss:$24 sps:$4 sm:$0xff]  }
 0x4d5   : > { %v1866_v58 = vadd.f32 %v1865_v56, %v1656_v30  ;;  %v1867_v59 = vpop.f32.mrb[34].mxu0  ;;  %2489 = vmatprep.mubr.bf16.mxu1 %v1877_v49  ;;  %2540 = vmatprep.mubr.bf16.mxu0 %v1877_v49  ;;  %v6997_v30 = vld [vmem:[#allocation7 + $0x5e0] ss:$24 sps:$4 sm:$0xff]  }
 0x4d6   : > { %v1868_v60 = vpop.f32.mrb[35].mxu0  ;;  %2490 = vmatmul.mubr.bf16.vlgmr.msra.gmra.mrb[16].mxu1 %v8193_v48  ;;  %2541 = vmatmul.mubr.bf16.vlgmr.msra.gmra.mrb[36].mxu0 %v8193_v48  ;;  %v1874_v63 = vmax.f32 %v1864_v55, 0.0 }
 0x4d7   : > { %v1875_v61 = vmax.f32 %v1866_v58, 0.0  ;;  %2560 = vmatpush1.bf16.msra.mxu1 %v6952_v52 }
 0x4d8   : > { %2561 = vmatprep.subr.bf16.mxu1 %v6957_v57  ;;  %v1878_v3 = vpack.c.bf16 %v1874_v63, %v1874_v63 }
 0x4d9   : > { %v8197_v1 = vpack.c.bf16 %v1875_v61, %v1875_v61 }
 0x4db   : > { %2562 = vmatpush1.bf16.msra.mxu1 %v6955_v62  ;;  %2499 = vmatprep.mubr.bf16.mxu1 %v8197_v1 }
 0x4dc   : > { %2550 = vmatprep.mubr.bf16.mxu0 %v8197_v1  ;;  %2563 = vmatprep.subr.bf16.mxu1 %v6960_v0 }
 0x4de   : > { %2500 = vmatmul.mubr.bf16.gmra.mrb[20].mxu1 %v1878_v3  ;;  %2551 = vmatmul.mubr.bf16.gmra.mrb[40].mxu0 %v1878_v3 }
 0x4df   : > { %2564 = vmatpush1.bf16.msra.mxu1 %v6958_v2  ;;  %2591 = vmatprep.mubr.bf16.mxu1 %v1877_v49  ;;  %v7005_v2 = vld [vmem:[#allocation10 + $0x114] ss:$8 sps:$4 sm:$0xff]  }
 0x4e0   : > { %2565 = vmatprep.subr.bf16.mxu1 %v6963_v4  ;;  %v7008_v4 = vld [vmem:[#allocation10 + $0x124] ss:$8 sps:$4 sm:$0xff]  }
 0x4e3   : > { %2566 = vmatpush1.bf16.msra.mxu1 %v6961_v5  ;;  %v7011_v5 = vld [vmem:[#allocation10 + $0x134] ss:$8 sps:$4 sm:$0xff]  }
 0x4e4   : > { %2567 = vmatprep.subr.bf16.mxu1 %v6966_v6  ;;  %v7009_v6 = vld [vmem:[#allocation10 + $0x130] ss:$8 sps:$4 sm:$0xff]  }
 0x4e7   : > { %2568 = vmatpush1.bf16.msra.mxu1 %v6964_v7  ;;  %v7012_v7 = vld [vmem:[#allocation10 + $0x140] ss:$8 sps:$4 sm:$0xff]  }
 0x4e8   : > { %2569 = vmatprep.subr.bf16.mxu1 %v6969_v8  ;;  %v7015_v8 = vld [vmem:[#allocation10 + $0x150] ss:$8 sps:$4 sm:$0xff]  }
 0x4eb   : > { %2570 = vmatpush1.bf16.msra.mxu1 %v6967_v9  ;;  %v7020_v9 = vld [vmem:[#allocation10 + $0x164] ss:$8 sps:$4 sm:$0xff]  }
 0x4ec   : > { %2571 = vmatprep.subr.bf16.mxu1 %v6972_v10  ;;  %v7018_v10 = vld [vmem:[#allocation10 + $0x160] ss:$8 sps:$4 sm:$0xff]  }
 0x4ef   : > { %2572 = vmatpush1.bf16.msra.mxu1 %v6970_v20  ;;  %v7023_v20 = vld [vmem:[#allocation10 + $0x174] ss:$8 sps:$4 sm:$0xff]  }
 0x4f0   : > { %2573 = vmatprep.subr.bf16.mxu1 %v6975_v11  ;;  %v7021_v11 = vld [vmem:[#allocation10 + $0x170] ss:$8 sps:$4 sm:$0xff]  }
 0x4f3   : > { %2574 = vmatpush1.bf16.msra.mxu1 %v6973_v23  ;;  %v7026_v23 = vld [vmem:[#allocation10 + $0x184] ss:$8 sps:$4 sm:$0xff]  }
 0x4f4   : > { %2575 = vmatprep.subr.bf16.mxu1 %v6978_v12  ;;  %v7024_v12 = vld [vmem:[#allocation10 + $0x180] ss:$8 sps:$4 sm:$0xff]  }
 0x4f7   : > { %2576 = vmatpush1.bf16.msra.mxu1 %v6976_v13  ;;  %v7029_v13 = vld [vmem:[#allocation10 + $0x194] ss:$8 sps:$4 sm:$0xff]  }
 0x4f8   : > { %2577 = vmatprep.subr.bf16.mxu1 %v6981_v14  ;;  %v7027_v14 = vld [vmem:[#allocation10 + $0x190] ss:$8 sps:$4 sm:$0xff]  }
 0x4fb   : > { %2578 = vmatpush1.bf16.msra.mxu1 %v6979_v26  ;;  %v7032_v26 = vld [vmem:[#allocation10 + $0x1a4] ss:$8 sps:$4 sm:$0xff]  }
 0x4fc   : > { %2579 = vmatprep.subr.bf16.mxu1 %v6984_v15  ;;  %v7030_v15 = vld [vmem:[#allocation10 + $0x1a0] ss:$8 sps:$4 sm:$0xff]  }
 0x4ff   : > { %2580 = vmatpush1.bf16.msra.mxu1 %v6982_v29  ;;  %v7035_v29 = vld [vmem:[#allocation10 + $0x1b4] ss:$8 sps:$4 sm:$0xff]  }
 0x500   : > { %2581 = vmatprep.subr.bf16.mxu1 %v6987_v16  ;;  %v7033_v16 = vld [vmem:[#allocation10 + $0x1b0] ss:$8 sps:$4 sm:$0xff]  }
 0x503   : > { %2582 = vmatpush1.bf16.msra.mxu1 %v6985_v17  ;;  %v7038_v17 = vld [vmem:[#allocation10 + $0x1c4] ss:$8 sps:$4 sm:$0xff]  }
 0x504   : > { %2583 = vmatprep.subr.bf16.mxu1 %v6990_v19  ;;  %v7036_v19 = vld [vmem:[#allocation10 + $0x1c0] ss:$8 sps:$4 sm:$0xff]  }
 0x507   : > { %2584 = vmatpush1.bf16.msra.mxu1 %v6988_v21  ;;  %v7041_v21 = vld [vmem:[#allocation10 + $0x1d4] ss:$8 sps:$4 sm:$0xff]  }
 0x508   : > { %2585 = vmatprep.subr.bf16.mxu1 %v6993_v25  ;;  %v7039_v25 = vld [vmem:[#allocation10 + $0x1d0] ss:$8 sps:$4 sm:$0xff]  }
 0x50b   : > { %2586 = vmatpush1.bf16.msra.mxu1 %v6991_v32  ;;  %v7044_v32 = vld [vmem:[#allocation10 + $0x1e4] ss:$8 sps:$4 sm:$0xff]  }
 0x50c   : > { %2587 = vmatprep.subr.bf16.mxu1 %v6996_v27  ;;  %v7042_v27 = vld [vmem:[#allocation10 + $0x1e0] ss:$8 sps:$4 sm:$0xff]  }
 0x50f   : > { %2588 = vmatpush1.bf16.msra.mxu1 %v6994_v28  ;;  %v7047_v28 = vld [vmem:[#allocation10 + $0x1f4] ss:$8 sps:$4 sm:$0xff]  }
 0x510   : > { %2589 = vmatprep.subr.bf16.mxu1 %v6999_v35  ;;  %v7045_v35 = vld [vmem:[#allocation10 + $0x1f0] ss:$8 sps:$4 sm:$0xff]  }
 0x513   : > { %2590 = vmatpush1.bf16.msra.mxu1 %v6997_v30  ;;  %v7048_v30 = vld [vmem:[#allocation7 + $0x600] ss:$24 sps:$4 sm:$0xff]  }
 0x516   : > { %2592 = vmatmul.mubr.bf16.vlgmr.msra.gmra.mrb[24].mxu1 %v8193_v48 }
 0x517   : > { %2601 = vmatprep.mubr.bf16.mxu1 %v8197_v1  ;;  %v7002_v1 = vld [vmem:[#allocation10 + $0x104] ss:$8 sps:$4 sm:$0xff]  }
 0x518   : > { %3029 = vmatprep.subr.bf16.mxu0 %v7002_v1 }
 0x51e   : > { %2602 = vmatmul.mubr.bf16.gmra.mrb[28].mxu1 %v1878_v3  ;;  %v7003_v3 = vld [vmem:[#allocation10 + $0x110] ss:$8 sps:$4 sm:$0xff]  }
 0x51f   : > { %2680 = vmatprep.mubr.f32.mxu1 %v7779_v18 }
 0x5a9   : > { %v2491_v31 = vpop.f32.mrb[16].mxu1  ;;  %v8204_v33 = vpop.f32.mrb[36].mxu0 }
 0x5aa   : > { %v2493_v36 = vpop.f32.mrb[17].mxu1  ;;  %v8206_v37 = vpop.f32.mrb[37].mxu0 }
 0x5ab   : > { %v2495_v38 = vpop.f32.mrb[18].mxu1  ;;  %v8208_v39 = vpop.f32.mrb[38].mxu0 }
 0x5ac   : > { %v6489_v42 = vpack.c.bf16 %v2495_v38, %v2491_v31  ;;  %v2497_v43 = vpop.f32.mrb[19].mxu1  ;;  %v8210_v44 = vpop.f32.mrb[39].mxu0  ;;  %v7050_v31 = vld [vmem:[#allocation7 + $0x604] ss:$24 sps:$4 sm:$0xff]   ;;  %v7056_v38 = vld [vmem:[#allocation7 + $0x634] ss:$24 sps:$4 sm:$0xff]  }
 0x5ad   : > { %v6487_v45 = vpack.c.bf16 %v2497_v43, %v2493_v36  ;;  %v7053_v36 = vld [vmem:[#allocation7 + $0x60c] ss:$24 sps:$4 sm:$0xff]  }
 0x5ae   : > { %v7062_v43 = vld [vmem:[#allocation7 + $0x664] ss:$24 sps:$4 sm:$0xff]  }
 0x5af   : > { %6488 = vmatprep.subr.bf16.mxu1 %v6487_v45  ;;  %v7060_v45 = vld [vmem:[#allocation7 + $0x660] ss:$24 sps:$4 sm:$0xff]  }
 0x5b0   : > { %6490 = vmatpush1.bf16.msra.mxu1 %v6489_v42  ;;  %v7054_v42 = vld [vmem:[#allocation7 + $0x630] ss:$24 sps:$4 sm:$0xff]  }
 0x5b1   : > { %v2501_v46 = vpop.f32.mrb[20].mxu1  ;;  %v8212_v47 = vpop.f32.mrb[40].mxu0 }
 0x5b2   : > { %v2503_v48 = vpop.f32.mrb[21].mxu1  ;;  %v8214_v49 = vpop.f32.mrb[41].mxu0 }
 0x5b3   : > { %v2505_v51 = vpop.f32.mrb[22].mxu1  ;;  %v2556_v52 = vpop.f32.mrb[42].mxu0  ;;  %6120 = vmatprep.subr.msk.mxu1 %vm1393_vm2, %v2503_v48  ;;  %v7066_v48 = vld [vmem:[#allocation7 + $0x690] ss:$24 sps:$4 sm:$0xff]  }
 0x5b4   : > { %v2506_v55 = vpop.f32.mrb[23].mxu1  ;;  %v2557_v56 = vpop.f32.mrb[43].mxu0  ;;  %6121 = vmatpush1.msk.msra.mxu1 %vm1393_vm2, %v2501_v46  ;;  %v7068_v46 = vld [vmem:[#allocation7 + $0x694] ss:$24 sps:$4 sm:$0xff]   ;;  %v7074_v51 = vld [vmem:[#allocation7 + $0x6c4] ss:$24 sps:$4 sm:$0xff]  }
 0x5b5   : > { %6122 = vmatmul.mubr.msk.f32.vlgmr.msra.gmra.mrb[32].mxu1 %vm1383_vm3, %v8133_v34  ;;  %v7072_v52 = vld [vmem:[#allocation7 + $0x6c0] ss:$24 sps:$4 sm:$0xff]   ;;  %v7080_v55 = vld [vmem:[#allocation7 + $0x6f4] ss:$24 sps:$4 sm:$0xff]   ;;  %v7078_v56 = vld [vmem:[#allocation7 + $0x6f0] ss:$24 sps:$4 sm:$0xff]  }
 0x5b6   : > { %2686 = vmatprep.mubr.f32.mxu1 %v7779_v18 }
 0x5b9   : > { %6123 = vmatmul.mubr.msk.f32.gmra.mrb[34].mxu1 %vm1383_vm3, %v8145_v40 }
 0x5ba   : > { %2692 = vmatprep.mubr.f32.mxu1 %v7779_v18 }
 0x5bd   : > { %6124 = vmatmul.mubr.msk.f32.gmra.mrb[36].mxu1 %vm1383_vm3, %v8153_v41  ;;  %v7000_v41 = vld [vmem:[#allocation10 + $0x100] ss:$8 sps:$4 sm:$0xff]  }
 0x5be   : > { %2769 = vmatprep.mubr.f32.mxu1 %v7779_v18  ;;  %3030 = vmatpush1.bf16.msra.mxu0 %v7000_v41  ;;  %v7116_v41 = vld [vmem:[#allocation7 + $0x814] ss:$24 sps:$4 sm:$0xff]  }
 0x5bf   : > { %3031 = vmatprep.subr.bf16.mxu0 %v7005_v2 }
 0x5c2   : > { %3032 = vmatpush1.bf16.msra.mxu0 %v7003_v3 }
 0x5c3   : > { %3033 = vmatprep.subr.bf16.mxu0 %v7008_v4 }
 0x5e9   : > { %v2593_v57 = vpop.f32.mrb[24].mxu1 }
 0x5ea   : > { %v2595_v58 = vpop.f32.mrb[25].mxu1 }
 0x5eb   : > { %v2597_v59 = vpop.f32.mrb[26].mxu1 }
 0x5ec   : > { %v6493_v60 = vpack.c.bf16 %v2597_v59, %v2593_v57  ;;  %v2599_v61 = vpop.f32.mrb[27].mxu1  ;;  %v7086_v57 = vld [vmem:[#allocation7 + $0x724] ss:$24 sps:$4 sm:$0xff]   ;;  %v7092_v59 = vld [vmem:[#allocation7 + $0x754] ss:$24 sps:$4 sm:$0xff]  }
 0x5ed   : > { %v6491_v62 = vpack.c.bf16 %v2599_v61, %v2595_v58  ;;  %v7084_v58 = vld [vmem:[#allocation7 + $0x720] ss:$24 sps:$4 sm:$0xff]   ;;  %v7098_v61 = vld [vmem:[#allocation7 + $0x784] ss:$24 sps:$4 sm:$0xff]  }
 0x5ef   : > { %6492 = vmatprep.subr.bf16.mxu1 %v6491_v62  ;;  %v7096_v62 = vld [vmem:[#allocation7 + $0x780] ss:$24 sps:$4 sm:$0xff]  }
 0x5f0   : > { %6494 = vmatpush1.bf16.msra.mxu1 %v6493_v60  ;;  %v7090_v60 = vld [vmem:[#allocation7 + $0x750] ss:$24 sps:$4 sm:$0xff]  }
 0x5f1   : > { %v2603_v34 = vpop.f32.mrb[28].mxu1 }
 0x5f2   : > { %v2605_v63 = vpop.f32.mrb[29].mxu1 }
 0x5f3   : > { %v2607_v0 = vpop.f32.mrb[30].mxu1  ;;  %6125 = vmatprep.subr.msk.mxu1 %vm1393_vm2, %v2605_v63  ;;  %v7102_v63 = vld [vmem:[#allocation7 + $0x7b0] ss:$24 sps:$4 sm:$0xff]  }
 0x5f4   : > { %v2608_v40 = vpop.f32.mrb[31].mxu1  ;;  %6126 = vmatpush1.msk.msra.mxu1 %vm1393_vm2, %v2603_v34  ;;  %v7104_v34 = vld [vmem:[#allocation7 + $0x7b4] ss:$24 sps:$4 sm:$0xff]   ;;  %v7110_v0 = vld [vmem:[#allocation7 + $0x7e4] ss:$24 sps:$4 sm:$0xff]  }
 0x5f5   : > { %6127 = vmatmul.mubr.msk.f32.vlgmr.msra.gmra.mrb[38].mxu1 %vm1383_vm3, %v8161_v50  ;;  %v7006_v50 = vld [vmem:[#allocation10 + $0x120] ss:$8 sps:$4 sm:$0xff]   ;;  %3667 = vmatprep.subr.bf16.mxu1 %v7050_v31  ;;  %v7108_v40 = vld [vmem:[#allocation7 + $0x7e0] ss:$24 sps:$4 sm:$0xff]  }
 0x5f6   : > { %2775 = vmatprep.mubr.f32.mxu1 %v7779_v18  ;;  %3034 = vmatpush1.bf16.msra.mxu0 %v7006_v50  ;;  %v7114_v50 = vld [vmem:[#allocation7 + $0x810] ss:$24 sps:$4 sm:$0xff]  }
 0x5f7   : > { %3035 = vmatprep.subr.bf16.mxu0 %v7011_v5  ;;  %3668 = vmatpush1.bf16.msra.mxu1 %v7048_v30  ;;  %v7122_v5 = vld [vmem:[#allocation7 + $0x844] ss:$24 sps:$4 sm:$0xff]  }
 0x5f8   : > { %3669 = vmatprep.subr.bf16.mxu1 %v7056_v38 }
 0x5f9   : > { %6128 = vmatmul.mubr.msk.f32.gmra.mrb[40].mxu1 %vm1383_vm3, %v8171_v53  ;;  %v7014_v53 = vld [vmem:[#allocation10 + $0x144] ss:$8 sps:$4 sm:$0xff]  }
 0x5fa   : > { %2781 = vmatprep.mubr.f32.mxu1 %v7779_v18  ;;  %3036 = vmatpush1.bf16.msra.mxu0 %v7009_v6 }
 0x5fb   : > { %3037 = vmatprep.subr.bf16.mxu0 %v7014_v53  ;;  %3670 = vmatpush1.bf16.msra.mxu1 %v7054_v42 }
 0x5fc   : > { %3671 = vmatprep.subr.bf16.mxu1 %v7062_v43 }
 0x5fd   : > { %6129 = vmatmul.mubr.msk.f32.gmra.mrb[42].mxu1 %vm1383_vm3, %v8179_v54  ;;  %v7017_v54 = vld [vmem:[#allocation10 + $0x154] ss:$8 sps:$4 sm:$0xff]  }
 0x5fe   : > { %3038 = vmatpush1.bf16.msra.mxu0 %v7012_v7 }
 0x5ff   : > { %3039 = vmatprep.subr.bf16.mxu0 %v7017_v54  ;;  %3672 = vmatpush1.bf16.msra.mxu1 %v7060_v45  ;;  %v7051_v45 = vld [vmem:[#allocation7 + $0x608] ss:$24 sps:$4 sm:$0xff]  }
 0x600   : > { %3673 = vmatprep.subr.bf16.mxu1 %v7068_v46 }
 0x602   : > { %3040 = vmatpush1.bf16.msra.mxu0 %v7015_v8  ;;  %v7120_v8 = vld [vmem:[#allocation7 + $0x840] ss:$24 sps:$4 sm:$0xff]  }
 0x603   : > { %3041 = vmatprep.subr.bf16.mxu0 %v7020_v9  ;;  %3674 = vmatpush1.bf16.msra.mxu1 %v7066_v48  ;;  %v7128_v9 = vld [vmem:[#allocation7 + $0x874] ss:$24 sps:$4 sm:$0xff]  }
 0x604   : > { %3675 = vmatprep.subr.bf16.mxu1 %v7074_v51  ;;  %v7059_v48 = vld [vmem:[#allocation7 + $0x63c] ss:$24 sps:$4 sm:$0xff]  }
 0x606   : > { %3042 = vmatpush1.bf16.msra.mxu0 %v7018_v10 }
 0x607   : > { %3043 = vmatprep.subr.bf16.mxu0 %v7023_v20  ;;  %3676 = vmatpush1.bf16.msra.mxu1 %v7072_v52 }
 0x608   : > { %3677 = vmatprep.subr.bf16.mxu1 %v7080_v55  ;;  %v7057_v55 = vld [vmem:[#allocation7 + $0x638] ss:$24 sps:$4 sm:$0xff]  }
 0x60a   : > { %3044 = vmatpush1.bf16.msra.mxu0 %v7021_v11  ;;  %v7126_v11 = vld [vmem:[#allocation7 + $0x870] ss:$24 sps:$4 sm:$0xff]  }
 0x60b   : > { %3045 = vmatprep.subr.bf16.mxu0 %v7026_v23  ;;  %3678 = vmatpush1.bf16.msra.mxu1 %v7078_v56  ;;  %v2795_v23 = vld [vmem:[#allocation8 + $0x2] sm:$0x3] }
 0x60c   : > { %3679 = vmatprep.subr.bf16.mxu1 %v7086_v57  ;;  %v7065_v57 = vld [vmem:[#allocation7 + $0x66c] ss:$24 sps:$4 sm:$0xff]  }
 0x60e   : > { %3046 = vmatpush1.bf16.msra.mxu0 %v7024_v12 }
 0x60f   : > { %3047 = vmatprep.subr.bf16.mxu0 %v7029_v13  ;;  %3680 = vmatpush1.bf16.msra.mxu1 %v7084_v58  ;;  %v2800_v13 = vrot.slane %v2795_v23, %v8098_v22  ;;  %v7063_v58 = vld [vmem:[#allocation7 + $0x668] ss:$24 sps:$4 sm:$0xff]  }
 0x610   : > { %3681 = vmatprep.subr.bf16.mxu1 %v7092_v59 }
 0x612   : > { %3048 = vmatpush1.bf16.msra.mxu0 %v7027_v14 }
 0x613   : > { %3049 = vmatprep.subr.bf16.mxu0 %v7032_v26  ;;  %3682 = vmatpush1.bf16.msra.mxu1 %v7090_v60  ;;  %v2804_v26 = vrot.slane %v2795_v23, %v8100_v24  ;;  %v7071_v60 = vld [vmem:[#allocation7 + $0x69c] ss:$24 sps:$4 sm:$0xff]   ;;  %v7135_v23 = vld [vmem:[#allocation7 + $0x8a8] ss:$24 sps:$4 sm:$0xff]  }
 0x614   : > { %3683 = vmatprep.subr.bf16.mxu1 %v7098_v61  ;;  %v7069_v61 = vld [vmem:[#allocation7 + $0x698] ss:$24 sps:$4 sm:$0xff]  }
 0x616   : > { %3050 = vmatpush1.bf16.msra.mxu0 %v7030_v15 }
 0x617   : > { %3051 = vmatprep.subr.bf16.mxu0 %v7035_v29  ;;  %3684 = vmatpush1.bf16.msra.mxu1 %v7096_v62  ;;  %v7077_v62 = vld [vmem:[#allocation7 + $0x6cc] ss:$24 sps:$4 sm:$0xff]  }
 0x618   : > { %3685 = vmatprep.subr.bf16.mxu1 %v7104_v34  ;;  %v7075_v34 = vld [vmem:[#allocation7 + $0x6c8] ss:$24 sps:$4 sm:$0xff]  }
 0x61a   : > { %3052 = vmatpush1.bf16.msra.mxu0 %v7033_v16 }
 0x61b   : > { %3053 = vmatprep.subr.bf16.mxu0 %v7038_v17  ;;  %3686 = vmatpush1.bf16.msra.mxu1 %v7102_v63  ;;  %v7083_v63 = vld [vmem:[#allocation7 + $0x6fc] ss:$24 sps:$4 sm:$0xff]  }
 0x61c   : > { %3687 = vmatprep.subr.bf16.mxu1 %v7110_v0  ;;  %v7081_v0 = vld [vmem:[#allocation7 + $0x6f8] ss:$24 sps:$4 sm:$0xff]  }
 0x61e   : > { %3054 = vmatpush1.bf16.msra.mxu0 %v7036_v19 }
 0x61f   : > { %3055 = vmatprep.subr.bf16.mxu0 %v7041_v21  ;;  %3688 = vmatpush1.bf16.msra.mxu1 %v7108_v40  ;;  %v7089_v40 = vld [vmem:[#allocation7 + $0x72c] ss:$24 sps:$4 sm:$0xff]  }
 0x620   : > { %3689 = vmatprep.subr.bf16.mxu1 %v7116_v41  ;;  %v7087_v41 = vld [vmem:[#allocation7 + $0x728] ss:$24 sps:$4 sm:$0xff]  }
 0x622   : > { %3056 = vmatpush1.bf16.msra.mxu0 %v7039_v25 }
 0x623   : > { %3057 = vmatprep.subr.bf16.mxu0 %v7044_v32  ;;  %3690 = vmatpush1.bf16.msra.mxu1 %v7114_v50  ;;  %v7107_v50 = vld [vmem:[#allocation7 + $0x7bc] ss:$24 sps:$4 sm:$0xff]  }
 0x624   : > { %3691 = vmatprep.subr.bf16.mxu1 %v7122_v5  ;;  %v7105_v5 = vld [vmem:[#allocation7 + $0x7b8] ss:$24 sps:$4 sm:$0xff]  }
 0x626   : > { %3058 = vmatpush1.bf16.msra.mxu0 %v7042_v27 }
 0x627   : > { %3059 = vmatprep.subr.bf16.mxu0 %v7047_v28  ;;  %3692 = vmatpush1.bf16.msra.mxu1 %v7120_v8  ;;  %v7125_v8 = vld [vmem:[#allocation7 + $0x84c] ss:$24 sps:$4 sm:$0xff]  }
 0x628   : > { %3693 = vmatprep.subr.bf16.mxu1 %v7128_v9  ;;  %v7123_v9 = vld [vmem:[#allocation7 + $0x848] ss:$24 sps:$4 sm:$0xff]  }
 0x62a   : > { %3060 = vmatpush1.bf16.msra.mxu0 %v7045_v35 }
 0x62b   : > { %3718 = vmatprep.subr.bf16.mxu0 %v7053_v36  ;;  %3694 = vmatpush1.bf16.msra.mxu1 %v7126_v11  ;;  %v7137_v11 = vld [vmem:[#allocation7 + $0x8ac] ss:$24 sps:$4 sm:$0xff]  }
 0x688   : > { %v2682_v1 = vpop.f32.mrb[32].mxu1 }
 0x689   : > { %v2683_v2 = vadd.f32 %v2682_v1, %v8204_v33  ;;  %v2684_v3 = vpop.f32.mrb[33].mxu1  ;;  %v7095_v1 = vld [vmem:[#allocation7 + $0x75c] ss:$24 sps:$4 sm:$0xff]  }
 0x68a   : > { %v2685_v4 = vadd.f32 %v2684_v3, %v8206_v37  ;;  %v7101_v3 = vld [vmem:[#allocation7 + $0x78c] ss:$24 sps:$4 sm:$0xff]  }
 0x68c   : > { %v2688_v6 = vpop.f32.mrb[34].mxu1 }
 0x68d   : > { %v2689_v53 = vadd.f32 %v2688_v6, %v8208_v39  ;;  %v2690_v7 = vpop.f32.mrb[35].mxu1  ;;  %v7113_v6 = vld [vmem:[#allocation7 + $0x7ec] ss:$24 sps:$4 sm:$0xff]  }
 0x68e   : > { %v2691_v54 = vadd.f32 %v2690_v7, %v8210_v44  ;;  %v7119_v7 = vld [vmem:[#allocation7 + $0x81c] ss:$24 sps:$4 sm:$0xff]  }
 0x690   : > { %v2694_v10 = vpop.f32.mrb[36].mxu1 }
 0x691   : > { %v2695_v33 = vadd.f32 %v2694_v10, %v8212_v47  ;;  %v2696_v20 = vpop.f32.mrb[37].mxu1  ;;  %v7131_v10 = vld [vmem:[#allocation7 + $0x87c] ss:$24 sps:$4 sm:$0xff]  }
 0x692   : > { %v2697_v37 = vadd.f32 %v2696_v20, %v8214_v49  ;;  %v7134_v20 = vld [vmem:[#allocation7 + $0x8a4] ss:$24 sps:$4 sm:$0xff]  }
 0x693   : > { %3695 = vmatprep.subr.bf16.mxu1 %v7134_v20  ;;  %v7185_v20 = vld [vmem:[#allocation7 + $0x884] ss:$24 sps:$4 sm:$0xff]  }
 0x6c8   : > { %v2771_v12 = vpop.f32.mrb[38].mxu1 }
 0x6c9   : > { %v2788_v39 = vadd.f32 %v2771_v12, %v2683_v2  ;;  %v2773_v44 = vpop.f32.mrb[39].mxu1  ;;  %v7093_v2 = vld [vmem:[#allocation7 + $0x758] ss:$24 sps:$4 sm:$0xff]   ;;  %v7140_v12 = vld [vmem:[#allocation7 + $0x8d4] ss:$24 sps:$4 sm:$0xff]  }
 0x6ca   : > { %v2789_v14 = vadd.f32 %v2773_v44, %v2685_v4  ;;  %v7099_v4 = vld [vmem:[#allocation7 + $0x788] ss:$24 sps:$4 sm:$0xff]   ;;  %v7141_v44 = vld [vmem:[#allocation7 + $0x8d8] ss:$24 sps:$4 sm:$0xff]  }
 0x6cb   : > { %v2807_v29 = vadd.f32 %v2800_v13, %v2788_v39  ;;  %v7138_v39 = vld [vmem:[#allocation7 + $0x8d0] ss:$24 sps:$4 sm:$0xff]  }
 0x6cc   : > { %v2777_v15 = vpop.f32.mrb[40].mxu1  ;;  %v2808_v17 = vadd.f32 %v2804_v26, %v2789_v14  ;;  %v7146_v14 = vld [vmem:[#allocation7 + $0x614] ss:$24 sps:$4 sm:$0xff]  }
 0x6cd   : > { %v2790_v16 = vadd.f32 %v2777_v15, %v2689_v53  ;;  %v2779_v47 = vpop.f32.mrb[41].mxu1  ;;  %v2813_v32 = vmax.f32 %v2807_v29, 0.0  ;;  %v7111_v53 = vld [vmem:[#allocation7 + $0x7e8] ss:$24 sps:$4 sm:$0xff]  }
 0x6ce   : > { %v2791_v19 = vadd.f32 %v2779_v47, %v2691_v54  ;;  %v2814_v30 = vmax.f32 %v2808_v17, 0.0  ;;  %v7117_v54 = vld [vmem:[#allocation7 + $0x818] ss:$24 sps:$4 sm:$0xff]  }
 0x6cf   : > { %v2809_v49 = vadd.f32 %v2800_v13, %v2790_v16 }
 0x6d0   : > { %v2810_v21 = vadd.f32 %v2804_v26, %v2791_v19  ;;  %v2783_v25 = vpop.f32.mrb[42].mxu1 }
 0x6d1   : > { %v2815_v27 = vmax.f32 %v2809_v49, 0.0  ;;  %v2792_v28 = vadd.f32 %v2783_v25, %v2695_v33  ;;  %v2785_v35 = vpop.f32.mrb[43].mxu1  ;;  %v7129_v33 = vld [vmem:[#allocation7 + $0x878] ss:$24 sps:$4 sm:$0xff]  }
 0x6d2   : > { %v2816_v31 = vmax.f32 %v2810_v21, 0.0  ;;  %v2793_v36 = vadd.f32 %v2785_v35, %v2697_v37  ;;  %v7132_v37 = vld [vmem:[#allocation7 + $0x8a0] ss:$24 sps:$4 sm:$0xff]  }
 0x6d3   : > { %v2819_v38 = vpack.c.bf16 %v2815_v27, %v2813_v32  ;;  %v2811_v46 = vadd.f32 %v2800_v13, %v2792_v28  ;;  %3696 = vmatpush1.bf16.msra.mxu1 %v7132_v37  ;;  %v7143_v13 = vld [vmem:[#allocation7 + $0x8dc] ss:$24 sps:$4 sm:$0xff]   ;;  %v7183_v37 = vld [vmem:[#allocation7 + $0x880] ss:$24 sps:$4 sm:$0xff]  }
 0x6d4   : > { %v2812_v42 = vadd.f32 %v2804_v26, %v2793_v36  ;;  %v2820_v43 = vpack.c.bf16 %v2816_v31, %v2814_v30  ;;  %3697 = vmatprep.subr.bf16.mxu1 %v7140_v12  ;;  %v2857_v26 = vld [vmem:[#allocation11 + $0x2] sm:$0x3]  ;;  %v7191_v12 = vld [vmem:[#allocation7 + $0x8e4] ss:$24 sps:$4 sm:$0xff]  }
 0x6d5   : > { %v2817_v56 = vmax.f32 %v2811_v46, 0.0  ;;  %v2862_v15 = vrot.slane %v2857_v26, %v8098_v22  ;;  %v2866_v29 = vrot.slane %v2857_v26, %v8100_v24  ;;  %v7149_v46 = vld [vmem:[#allocation7 + $0x644] ss:$24 sps:$4 sm:$0xff]  }
 0x6d6   : > { %v2818_v51 = vmax.f32 %v2812_v42, 0.0  ;;  %3061 = vmatprep.mubr.bf16.mxu0 %v2820_v43  ;;  %v7144_v42 = vld [vmem:[#allocation7 + $0x610] ss:$24 sps:$4 sm:$0xff]  }
 0x6d7   : > { %3062 = vmatmul.mubr.bf16.vlgmr.msra.gmra.mrb[44].mxu0 %v2819_v38  ;;  %v2821_v59 = vpack.c.bf16 %v2817_v56, %v2817_v56  ;;  %3698 = vmatpush1.bf16.msra.mxu1 %v7138_v39  ;;  %v7147_v56 = vld [vmem:[#allocation7 + $0x640] ss:$24 sps:$4 sm:$0xff]  }
 0x6d8   : > { %v2822_v52 = vpack.c.bf16 %v2818_v51, %v2818_v51  ;;  %3719 = vmatpush1.bf16.msra.mxu0 %v7051_v45  ;;  %3769 = vmatprep.subr.bf16.mxu1 %v7146_v14  ;;  %v7189_v39 = vld [vmem:[#allocation7 + $0x8e0] ss:$24 sps:$4 sm:$0xff]  }
 0x6d9   : > { %3720 = vmatprep.subr.bf16.mxu0 %v7059_v48 }
 0x6da   : > { %3071 = vmatprep.mubr.bf16.mxu0 %v2822_v52 }
 0x6dc   : > { %3721 = vmatpush1.bf16.msra.mxu0 %v7057_v55 }
 0x6dd   : > { %3722 = vmatprep.subr.bf16.mxu0 %v7065_v57 }
 0x6df   : > { %3072 = vmatmul.mubr.bf16.gmra.mrb[48].mxu0 %v2821_v59 }
 0x6e0   : > { %3723 = vmatpush1.bf16.msra.mxu0 %v7063_v58  ;;  %v7152_v58 = vld [vmem:[#allocation7 + $0x674] ss:$24 sps:$4 sm:$0xff]  }
 0x6e1   : > { %3724 = vmatprep.subr.bf16.mxu0 %v7071_v60  ;;  %v7150_v60 = vld [vmem:[#allocation7 + $0x670] ss:$24 sps:$4 sm:$0xff]  }
 0x6e4   : > { %3725 = vmatpush1.bf16.msra.mxu0 %v7069_v61 }
 0x6e5   : > { %3726 = vmatprep.subr.bf16.mxu0 %v7077_v62  ;;  %v7155_v62 = vld [vmem:[#allocation7 + $0x6a4] ss:$24 sps:$4 sm:$0xff]  }
 0x6e8   : > { %3727 = vmatpush1.bf16.msra.mxu0 %v7075_v34  ;;  %v7153_v34 = vld [vmem:[#allocation7 + $0x6a0] ss:$24 sps:$4 sm:$0xff]  }
 0x6e9   : > { %3728 = vmatprep.subr.bf16.mxu0 %v7083_v63  ;;  %v7158_v63 = vld [vmem:[#allocation7 + $0x6d4] ss:$24 sps:$4 sm:$0xff]  }
 0x6ec   : > { %3729 = vmatpush1.bf16.msra.mxu0 %v7081_v0  ;;  %v7156_v0 = vld [vmem:[#allocation7 + $0x6d0] ss:$24 sps:$4 sm:$0xff]  }
 0x6ed   : > { %3730 = vmatprep.subr.bf16.mxu0 %v7089_v40  ;;  %v7161_v40 = vld [vmem:[#allocation7 + $0x704] ss:$24 sps:$4 sm:$0xff]  }
 0x6f0   : > { %3731 = vmatpush1.bf16.msra.mxu0 %v7087_v41  ;;  %v7159_v41 = vld [vmem:[#allocation7 + $0x700] ss:$24 sps:$4 sm:$0xff]  }
 0x6f1   : > { %3732 = vmatprep.subr.bf16.mxu0 %v7095_v1  ;;  %v7164_v1 = vld [vmem:[#allocation7 + $0x734] ss:$24 sps:$4 sm:$0xff]  }
 0x6f4   : > { %3733 = vmatpush1.bf16.msra.mxu0 %v7093_v2  ;;  %v7162_v2 = vld [vmem:[#allocation7 + $0x730] ss:$24 sps:$4 sm:$0xff]  }
 0x6f5   : > { %3734 = vmatprep.subr.bf16.mxu0 %v7101_v3  ;;  %v7167_v3 = vld [vmem:[#allocation7 + $0x764] ss:$24 sps:$4 sm:$0xff]  }
 0x6f8   : > { %3735 = vmatpush1.bf16.msra.mxu0 %v7099_v4  ;;  %v7165_v4 = vld [vmem:[#allocation7 + $0x760] ss:$24 sps:$4 sm:$0xff]  }
 0x6f9   : > { %3736 = vmatprep.subr.bf16.mxu0 %v7107_v50  ;;  %v7170_v50 = vld [vmem:[#allocation7 + $0x794] ss:$24 sps:$4 sm:$0xff]  }
 0x6fc   : > { %3737 = vmatpush1.bf16.msra.mxu0 %v7105_v5  ;;  %v7168_v5 = vld [vmem:[#allocation7 + $0x790] ss:$24 sps:$4 sm:$0xff]  }
 0x6fd   : > { %3738 = vmatprep.subr.bf16.mxu0 %v7113_v6  ;;  %v7173_v6 = vld [vmem:[#allocation7 + $0x7c4] ss:$24 sps:$4 sm:$0xff]  }
 0x700   : > { %3739 = vmatpush1.bf16.msra.mxu0 %v7111_v53  ;;  %v7171_v53 = vld [vmem:[#allocation7 + $0x7c0] ss:$24 sps:$4 sm:$0xff]  }
 0x701   : > { %3740 = vmatprep.subr.bf16.mxu0 %v7119_v7  ;;  %v7176_v7 = vld [vmem:[#allocation7 + $0x7f4] ss:$24 sps:$4 sm:$0xff]  }
 0x704   : > { %3741 = vmatpush1.bf16.msra.mxu0 %v7117_v54  ;;  %v7174_v54 = vld [vmem:[#allocation7 + $0x7f0] ss:$24 sps:$4 sm:$0xff]  }
 0x705   : > { %3742 = vmatprep.subr.bf16.mxu0 %v7125_v8  ;;  %v7179_v8 = vld [vmem:[#allocation7 + $0x824] ss:$24 sps:$4 sm:$0xff]  }
 0x708   : > { %3743 = vmatpush1.bf16.msra.mxu0 %v7123_v9  ;;  %v7177_v9 = vld [vmem:[#allocation7 + $0x820] ss:$24 sps:$4 sm:$0xff]  }
 0x709   : > { %3744 = vmatprep.subr.bf16.mxu0 %v7131_v10  ;;  %v7182_v10 = vld [vmem:[#allocation7 + $0x854] ss:$24 sps:$4 sm:$0xff]  }
 0x70c   : > { %3745 = vmatpush1.bf16.msra.mxu0 %v7129_v33  ;;  %v7180_v33 = vld [vmem:[#allocation7 + $0x850] ss:$24 sps:$4 sm:$0xff]  }
 0x70d   : > { %3746 = vmatprep.subr.bf16.mxu0 %v7137_v11  ;;  %v7188_v11 = vld [vmem:[#allocation7 + $0x8b4] ss:$24 sps:$4 sm:$0xff]  }
 0x710   : > { %3747 = vmatpush1.bf16.msra.mxu0 %v7135_v23  ;;  %v7186_v23 = vld [vmem:[#allocation7 + $0x8b0] ss:$24 sps:$4 sm:$0xff]  }
 0x711   : > { %3748 = vmatprep.subr.bf16.mxu0 %v7143_v13 }
 0x714   : > { %3749 = vmatpush1.bf16.msra.mxu0 %v7141_v44 }
 0x7aa   : > { %v3063_v16 = vpop.f32.mrb[44].mxu0 }
 0x7ab   : > { %v3064_v47 = vadd.f32 %v3063_v16, %v2862_v15  ;;  %v3065_v17 = vpop.f32.mrb[45].mxu0 }
 0x7ac   : > { %v3066_v19 = vadd.f32 %v3065_v17, %v2866_v29  ;;  %v3067_v49 = vpop.f32.mrb[46].mxu0 }
 0x7ad   : > { %v3068_v21 = vadd.f32 %v3067_v49, %v2862_v15  ;;  %v3069_v25 = vpop.f32.mrb[47].mxu0  ;;  %v3080_v27 = vmax.f32 %v3064_v47, 0.0 }
 0x7ae   : > { %v3070_v32 = vadd.f32 %v3069_v25, %v2866_v29  ;;  %v3081_v35 = vmax.f32 %v3066_v19, 0.0 }
 0x7af   : > { %v3082_v28 = vmax.f32 %v3068_v21, 0.0 }
 0x7b0   : > { %v3083_v30 = vmax.f32 %v3070_v32, 0.0 }
 0x7b1   : > { %v8247_v31 = vpack.c.bf16 %v3082_v28, %v3080_v27 }
 0x7b2   : > { %v3087_v36 = vpack.c.bf16 %v3083_v30, %v3081_v35  ;;  %v3073_v38 = vpop.f32.mrb[48].mxu0 }
 0x7b3   : > { %v3074_v43 = vadd.f32 %v3073_v38, %v2862_v15  ;;  %v3075_v45 = vpop.f32.mrb[49].mxu0  ;;  %v8292_v38 = vld [vmem:[%s8437_s3 + $0x10] sm:$0xf] }
 0x7b4   : > { %v3076_v48 = vadd.f32 %v3075_v45, %v2866_v29  ;;  %v3077_v51 = vpop.f32.mrb[50].mxu0  ;;  %3699 = vmatprep.mubr.bf16.mxu1 %v3087_v36  ;;  %3750 = vmatprep.mubr.bf16.mxu0 %v3087_v36 }
 0x7b5   : > { %v3078_v52 = vpop.f32.mrb[51].mxu0  ;;  %3700 = vmatmul.mubr.bf16.vlgmr.msra.gmra.mrb[44].mxu1 %v8247_v31  ;;  %3751 = vmatmul.mubr.bf16.vlgmr.msra.gmra.mrb[52].mxu0 %v8247_v31  ;;  %v3084_v57 = vmax.f32 %v3074_v43, 0.0 }
 0x7b6   : > { %v3085_v55 = vmax.f32 %v3076_v48, 0.0  ;;  %3770 = vmatpush1.bf16.msra.mxu1 %v7144_v42 }
 0x7b7   : > { %3771 = vmatprep.subr.bf16.mxu1 %v7149_v46  ;;  %v3088_v61 = vpack.c.bf16 %v3084_v57, %v3084_v57 }
 0x7b8   : > { %v8251_v59 = vpack.c.bf16 %v3085_v55, %v3085_v55 }
 0x7ba   : > { %3772 = vmatpush1.bf16.msra.mxu1 %v7147_v56  ;;  %3709 = vmatprep.mubr.bf16.mxu1 %v8251_v59 }
 0x7bb   : > { %3760 = vmatprep.mubr.bf16.mxu0 %v8251_v59  ;;  %3773 = vmatprep.subr.bf16.mxu1 %v7152_v58  ;;  %v8301_v58 = vld [vmem:[%s8437_s3 + $0x18] sm:$0xff] }
 0x7bd   : > { %3710 = vmatmul.mubr.bf16.gmra.mrb[48].mxu1 %v3088_v61  ;;  %3761 = vmatmul.mubr.bf16.gmra.mrb[56].mxu0 %v3088_v61 }
 0x7be   : > { %3774 = vmatpush1.bf16.msra.mxu1 %v7150_v60  ;;  %3801 = vmatprep.mubr.bf16.mxu1 %v3087_v36  ;;  %v8284_v36 = vld [vmem:[%s8437_s3 + $0x8] sm:$0xff] }
 0x7bf   : > { %3775 = vmatprep.subr.bf16.mxu1 %v7155_v62  ;;  %3890 = vmatprep.mubr.f32.mxu0 %v7779_v18  ;;  %v8317_v60 = vld [vmem:[%s8437_s3 + $0x28] sm:$0xf]  ;;  %v7194_v62 = vld [vmem:[#allocation10 + $0x204] ss:$8 sps:$4 sm:$0xff]  }
 0x7c2   : > { %3776 = vmatpush1.bf16.msra.mxu1 %v7153_v34  ;;  %v7197_v34 = vld [vmem:[#allocation10 + $0x214] ss:$8 sps:$4 sm:$0xff]  }
 0x7c3   : > { %3777 = vmatprep.subr.bf16.mxu1 %v7158_v63  ;;  %v7195_v63 = vld [vmem:[#allocation10 + $0x210] ss:$8 sps:$4 sm:$0xff]  }
 0x7c6   : > { %3778 = vmatpush1.bf16.msra.mxu1 %v7156_v0  ;;  %v7200_v0 = vld [vmem:[#allocation10 + $0x224] ss:$8 sps:$4 sm:$0xff]  }
 0x7c7   : > { %3779 = vmatprep.subr.bf16.mxu1 %v7161_v40  ;;  %v7198_v40 = vld [vmem:[#allocation10 + $0x220] ss:$8 sps:$4 sm:$0xff]  }
 0x7ca   : > { %3780 = vmatpush1.bf16.msra.mxu1 %v7159_v41  ;;  %v7203_v41 = vld [vmem:[#allocation10 + $0x234] ss:$8 sps:$4 sm:$0xff]  }
 0x7cb   : > { %3781 = vmatprep.subr.bf16.mxu1 %v7164_v1  ;;  %v7201_v1 = vld [vmem:[#allocation10 + $0x230] ss:$8 sps:$4 sm:$0xff]  }
 0x7ce   : > { %3782 = vmatpush1.bf16.msra.mxu1 %v7162_v2  ;;  %v7206_v2 = vld [vmem:[#allocation10 + $0x244] ss:$8 sps:$4 sm:$0xff]  }
 0x7cf   : > { %3783 = vmatprep.subr.bf16.mxu1 %v7167_v3  ;;  %v7204_v3 = vld [vmem:[#allocation10 + $0x240] ss:$8 sps:$4 sm:$0xff]  }
 0x7d2   : > { %3784 = vmatpush1.bf16.msra.mxu1 %v7165_v4  ;;  %v7209_v4 = vld [vmem:[#allocation10 + $0x254] ss:$8 sps:$4 sm:$0xff]  }
 0x7d3   : > { %3785 = vmatprep.subr.bf16.mxu1 %v7170_v50  ;;  %v7207_v50 = vld [vmem:[#allocation10 + $0x250] ss:$8 sps:$4 sm:$0xff]  }
 0x7d6   : > { %3786 = vmatpush1.bf16.msra.mxu1 %v7168_v5  ;;  %v7212_v5 = vld [vmem:[#allocation10 + $0x264] ss:$8 sps:$4 sm:$0xff]  }
 0x7d7   : > { %3787 = vmatprep.subr.bf16.mxu1 %v7173_v6  ;;  %v7210_v6 = vld [vmem:[#allocation10 + $0x260] ss:$8 sps:$4 sm:$0xff]  }
 0x7da   : > { %3788 = vmatpush1.bf16.msra.mxu1 %v7171_v53  ;;  %v7215_v53 = vld [vmem:[#allocation10 + $0x274] ss:$8 sps:$4 sm:$0xff]  }
 0x7db   : > { %3789 = vmatprep.subr.bf16.mxu1 %v7176_v7  ;;  %v7213_v7 = vld [vmem:[#allocation10 + $0x270] ss:$8 sps:$4 sm:$0xff]  }
 0x7de   : > { %3790 = vmatpush1.bf16.msra.mxu1 %v7174_v54  ;;  %v7218_v54 = vld [vmem:[#allocation10 + $0x284] ss:$8 sps:$4 sm:$0xff]  }
 0x7df   : > { %3791 = vmatprep.subr.bf16.mxu1 %v7179_v8  ;;  %v7216_v8 = vld [vmem:[#allocation10 + $0x280] ss:$8 sps:$4 sm:$0xff]  }
 0x7e2   : > { %3792 = vmatpush1.bf16.msra.mxu1 %v7177_v9  ;;  %v7221_v9 = vld [vmem:[#allocation10 + $0x294] ss:$8 sps:$4 sm:$0xff]  }
 0x7e3   : > { %3793 = vmatprep.subr.bf16.mxu1 %v7182_v10  ;;  %v7219_v10 = vld [vmem:[#allocation10 + $0x290] ss:$8 sps:$4 sm:$0xff]  }
 0x7e6   : > { %3794 = vmatpush1.bf16.msra.mxu1 %v7180_v33  ;;  %v7224_v33 = vld [vmem:[#allocation10 + $0x2a4] ss:$8 sps:$4 sm:$0xff]  }
 0x7e7   : > { %3795 = vmatprep.subr.bf16.mxu1 %v7185_v20  ;;  %v7222_v20 = vld [vmem:[#allocation10 + $0x2a0] ss:$8 sps:$4 sm:$0xff]  }
 0x7ea   : > { %3796 = vmatpush1.bf16.msra.mxu1 %v7183_v37  ;;  %v7227_v37 = vld [vmem:[#allocation10 + $0x2b4] ss:$8 sps:$4 sm:$0xff]  }
 0x7eb   : > { %3797 = vmatprep.subr.bf16.mxu1 %v7188_v11  ;;  %v7225_v11 = vld [vmem:[#allocation10 + $0x2b0] ss:$8 sps:$4 sm:$0xff]  }
 0x7ee   : > { %3798 = vmatpush1.bf16.msra.mxu1 %v7186_v23  ;;  %v7230_v23 = vld [vmem:[#allocation10 + $0x2c4] ss:$8 sps:$4 sm:$0xff]  }
 0x7ef   : > { %3799 = vmatprep.subr.bf16.mxu1 %v7191_v12  ;;  %v7228_v12 = vld [vmem:[#allocation10 + $0x2c0] ss:$8 sps:$4 sm:$0xff]  }
 0x7f2   : > { %3800 = vmatpush1.bf16.msra.mxu1 %v7189_v39  ;;  %v7233_v39 = vld [vmem:[#allocation10 + $0x2d4] ss:$8 sps:$4 sm:$0xff]  }
 0x7f5   : > { %3802 = vmatmul.mubr.bf16.vlgmr.msra.gmra.mrb[52].mxu1 %v8247_v31  ;;  %v8276_v31 = vld [vmem:[%s8437_s3] sm:$0xff] }
 0x7f6   : > { %3811 = vmatprep.mubr.bf16.mxu1 %v8251_v59  ;;  %v8309_v59 = vld [vmem:[%s8437_s3 + $0x20] sm:$0xff] }
 0x7fd   : > { %3812 = vmatmul.mubr.bf16.gmra.mrb[56].mxu1 %v3088_v61  ;;  %v7192_v61 = vld [vmem:[#allocation10 + $0x200] ss:$8 sps:$4 sm:$0xff]  }
 0x7fe   : > { %3979 = vmatprep.mubr.f32.mxu1 %v7779_v18 }
 0x888   : > { %v3701_v13 = vpop.f32.mrb[44].mxu1  ;;  %v8259_v44 = vpop.f32.mrb[52].mxu0 }
 0x889   : > { %v3703_v14 = vpop.f32.mrb[45].mxu1  ;;  %v8261_v26 = vpop.f32.mrb[53].mxu0 }
 0x88a   : > { %v3705_v15 = vpop.f32.mrb[46].mxu1  ;;  %v8263_v29 = vpop.f32.mrb[54].mxu0 }
 0x88b   : > { %v6497_v16 = vpack.c.bf16 %v3705_v15, %v3701_v13  ;;  %v3707_v47 = vpop.f32.mrb[47].mxu1  ;;  %v8265_v17 = vpop.f32.mrb[55].mxu0  ;;  %v7231_v13 = vld [vmem:[#allocation10 + $0x2d0] ss:$8 sps:$4 sm:$0xff]   ;;  %v7234_v15 = vld [vmem:[#allocation10 + $0x2e0] ss:$8 sps:$4 sm:$0xff]  }
 0x88c   : > { %v6495_v19 = vpack.c.bf16 %v3707_v47, %v3703_v14  ;;  %v7236_v14 = vld [vmem:[#allocation10 + $0x2e4] ss:$8 sps:$4 sm:$0xff]   ;;  %v7237_v47 = vld [vmem:[#allocation10 + $0x2f0] ss:$8 sps:$4 sm:$0xff]  }
 0x88e   : > { %6496 = vmatprep.subr.bf16.mxu0 %v6495_v19  ;;  %v7240_v19 = vld [vmem:[#allocation7 + $0x900] ss:$24 sps:$4 sm:$0xff]  }
 0x88f   : > { %6498 = vmatpush1.bf16.msra.mxu0 %v6497_v16  ;;  %v7239_v16 = vld [vmem:[#allocation10 + $0x2f4] ss:$8 sps:$4 sm:$0xff]  }
 0x890   : > { %v3711_v49 = vpop.f32.mrb[48].mxu1  ;;  %v8267_v21 = vpop.f32.mrb[56].mxu0 }
 0x891   : > { %v3713_v25 = vpop.f32.mrb[49].mxu1  ;;  %v8269_v32 = vpop.f32.mrb[57].mxu0 }
 0x892   : > { %v3715_v27 = vpop.f32.mrb[50].mxu1  ;;  %v3766_v28 = vpop.f32.mrb[58].mxu0  ;;  %6258 = vmatprep.subr.msk.mxu0 %vm1393_vm2, %v3713_v25  ;;  %v7245_v25 = vld [vmem:[#allocation7 + $0x90c] ss:$24 sps:$4 sm:$0xff]  }
 0x893   : > { %v3716_v35 = vpop.f32.mrb[51].mxu1  ;;  %v3767_v30 = vpop.f32.mrb[59].mxu0  ;;  %6259 = vmatpush1.msk.msra.mxu0 %vm1393_vm2, %v3711_v49  ;;  %v7242_v49 = vld [vmem:[#allocation7 + $0x904] ss:$24 sps:$4 sm:$0xff]   ;;  %v7248_v27 = vld [vmem:[#allocation7 + $0x934] ss:$24 sps:$4 sm:$0xff]  }
 0x894   : > { %6260 = vmatmul.mubr.msk.f32.vlgmr.msra.gmra.mrb[60].mxu0 %vm1383_vm3, %v8276_v31  ;;  %4239 = vmatprep.subr.bf16.mxu0 %v7194_v62  ;;  %v7246_v28 = vld [vmem:[#allocation7 + $0x930] ss:$24 sps:$4 sm:$0xff]   ;;  %v7254_v35 = vld [vmem:[#allocation7 + $0x964] ss:$24 sps:$4 sm:$0xff]   ;;  %v7252_v30 = vld [vmem:[#allocation7 + $0x960] ss:$24 sps:$4 sm:$0xff]  }
 0x895   : > { %3896 = vmatprep.mubr.f32.mxu0 %v7779_v18  ;;  %4240 = vmatpush1.bf16.msra.mxu0 %v7192_v61  ;;  %v7290_v61 = vld [vmem:[#allocation7 + $0xa84] ss:$24 sps:$4 sm:$0xff]   ;;  %v7288_v62 = vld [vmem:[#allocation7 + $0xa80] ss:$24 sps:$4 sm:$0xff]  }
 0x896   : > { %4241 = vmatprep.subr.bf16.mxu0 %v7197_v34  ;;  %v7296_v34 = vld [vmem:[#allocation7 + $0xab4] ss:$24 sps:$4 sm:$0xff]  }
 0x898   : > { %6261 = vmatmul.mubr.msk.f32.gmra.mrb[62].mxu0 %vm1383_vm3, %v8284_v36 }
 0x899   : > { %3902 = vmatprep.mubr.f32.mxu0 %v7779_v18  ;;  %4242 = vmatpush1.bf16.msra.mxu0 %v7195_v63  ;;  %v7294_v63 = vld [vmem:[#allocation7 + $0xab0] ss:$24 sps:$4 sm:$0xff]  }
 0x89a   : > { %4243 = vmatprep.subr.bf16.mxu0 %v7200_v0  ;;  %v7302_v0 = vld [vmem:[#allocation7 + $0xae4] ss:$24 sps:$4 sm:$0xff]  }
 0x89c   : > { %6262 = vmatmul.mubr.msk.f32.gmra.mrb[64].mxu0 %vm1383_vm3, %v8292_v38 }
 0x89d   : > { %4244 = vmatpush1.bf16.msra.mxu0 %v7198_v40  ;;  %v7300_v40 = vld [vmem:[#allocation7 + $0xae0] ss:$24 sps:$4 sm:$0xff]  }
 0x89e   : > { %4245 = vmatprep.subr.bf16.mxu0 %v7203_v41  ;;  %v7308_v41 = vld [vmem:[#allocation7 + $0xb14] ss:$24 sps:$4 sm:$0xff]  }
 0x8a1   : > { %4246 = vmatpush1.bf16.msra.mxu0 %v7201_v1 }
 0x8a2   : > { %4247 = vmatprep.subr.bf16.mxu0 %v7206_v2 }
 0x8a5   : > { %4248 = vmatpush1.bf16.msra.mxu0 %v7204_v3 }
 0x8a6   : > { %4249 = vmatprep.subr.bf16.mxu0 %v7209_v4 }
 0x8a9   : > { %4250 = vmatpush1.bf16.msra.mxu0 %v7207_v50  ;;  %v7306_v50 = vld [vmem:[#allocation7 + $0xb10] ss:$24 sps:$4 sm:$0xff]  }
 0x8aa   : > { %4251 = vmatprep.subr.bf16.mxu0 %v7212_v5  ;;  %v7314_v5 = vld [vmem:[#allocation7 + $0xb44] ss:$24 sps:$4 sm:$0xff]  }
 0x8ad   : > { %4252 = vmatpush1.bf16.msra.mxu0 %v7210_v6 }
 0x8ae   : > { %4253 = vmatprep.subr.bf16.mxu0 %v7215_v53 }
 0x8b1   : > { %4254 = vmatpush1.bf16.msra.mxu0 %v7213_v7 }
 0x8b2   : > { %4255 = vmatprep.subr.bf16.mxu0 %v7218_v54 }
 0x8b5   : > { %4256 = vmatpush1.bf16.msra.mxu0 %v7216_v8  ;;  %v7312_v8 = vld [vmem:[#allocation7 + $0xb40] ss:$24 sps:$4 sm:$0xff]  }
 0x8b6   : > { %4257 = vmatprep.subr.bf16.mxu0 %v7221_v9  ;;  %v7320_v9 = vld [vmem:[#allocation7 + $0xb74] ss:$24 sps:$4 sm:$0xff]  }
 0x8b9   : > { %4258 = vmatpush1.bf16.msra.mxu0 %v7219_v10 }
 0x8ba   : > { %4259 = vmatprep.subr.bf16.mxu0 %v7224_v33 }
 0x8bd   : > { %4260 = vmatpush1.bf16.msra.mxu0 %v7222_v20  ;;  %v7318_v20 = vld [vmem:[#allocation7 + $0xb70] ss:$24 sps:$4 sm:$0xff]  }
 0x8be   : > { %4261 = vmatprep.subr.bf16.mxu0 %v7227_v37  ;;  %v4005_v37 = vld [vmem:[#allocation8 + $0x4] sm:$0x3] }
 0x8c1   : > { %4262 = vmatpush1.bf16.msra.mxu0 %v7225_v11 }
 0x8c2   : > { %4263 = vmatprep.subr.bf16.mxu0 %v7230_v23  ;;  %v4010_v23 = vrot.slane %v4005_v37, %v8098_v22 }
 0x8c5   : > { %4264 = vmatpush1.bf16.msra.mxu0 %v7228_v12 }
 0x8c6   : > { %4265 = vmatprep.subr.bf16.mxu0 %v7233_v39  ;;  %v4014_v39 = vrot.slane %v4005_v37, %v8100_v24  ;;  %v7315_v37 = vld [vmem:[#allocation7 + $0xb48] ss:$24 sps:$4 sm:$0xff]  }
 0x8c8   : > { %v3803_v42 = vpop.f32.mrb[52].mxu1 }
 0x8c9   : > { %v3805_v43 = vpop.f32.mrb[53].mxu1  ;;  %4266 = vmatpush1.bf16.msra.mxu0 %v7231_v13 }
 0x8ca   : > { %v3807_v45 = vpop.f32.mrb[54].mxu1  ;;  %4267 = vmatprep.subr.bf16.mxu0 %v7236_v14 }
 0x8cb   : > { %v6501_v46 = vpack.c.bf16 %v3807_v45, %v3803_v42  ;;  %v3809_v48 = vpop.f32.mrb[55].mxu1  ;;  %v7260_v42 = vld [vmem:[#allocation7 + $0x994] ss:$24 sps:$4 sm:$0xff]   ;;  %v7266_v45 = vld [vmem:[#allocation7 + $0x9c4] ss:$24 sps:$4 sm:$0xff]  }
 0x8cc   : > { %v6499_v51 = vpack.c.bf16 %v3809_v48, %v3805_v43  ;;  %v7258_v43 = vld [vmem:[#allocation7 + $0x990] ss:$24 sps:$4 sm:$0xff]   ;;  %v7272_v48 = vld [vmem:[#allocation7 + $0x9f4] ss:$24 sps:$4 sm:$0xff]  }
 0x8cd   : > { %4268 = vmatpush1.bf16.msra.mxu0 %v7234_v15 }
 0x8ce   : > { %6500 = vmatprep.subr.bf16.mxu1 %v6499_v51  ;;  %4269 = vmatprep.subr.bf16.mxu0 %v7239_v16  ;;  %v7270_v51 = vld [vmem:[#allocation7 + $0x9f0] ss:$24 sps:$4 sm:$0xff]  }
 0x8cf   : > { %6502 = vmatpush1.bf16.msra.mxu1 %v6501_v46  ;;  %v7264_v46 = vld [vmem:[#allocation7 + $0x9c0] ss:$24 sps:$4 sm:$0xff]  }
 0x8d0   : > { %v3813_v52 = vpop.f32.mrb[56].mxu1 }
 0x8d1   : > { %v3815_v55 = vpop.f32.mrb[57].mxu1  ;;  %4270 = vmatpush1.bf16.msra.mxu0 %v7237_v47 }
 0x8d2   : > { %v3817_v56 = vpop.f32.mrb[58].mxu1  ;;  %6263 = vmatprep.subr.msk.mxu1 %vm1393_vm2, %v3815_v55  ;;  %4928 = vmatprep.subr.bf16.mxu0 %v7245_v25  ;;  %v7276_v55 = vld [vmem:[#allocation7 + $0xa20] ss:$24 sps:$4 sm:$0xff]  }
 0x8d3   : > { %v3818_v57 = vpop.f32.mrb[59].mxu1  ;;  %6264 = vmatpush1.msk.msra.mxu1 %vm1393_vm2, %v3813_v52  ;;  %v7278_v52 = vld [vmem:[#allocation7 + $0xa24] ss:$24 sps:$4 sm:$0xff]   ;;  %v7284_v56 = vld [vmem:[#allocation7 + $0xa54] ss:$24 sps:$4 sm:$0xff]  }
 0x8d4   : > { %6265 = vmatmul.mubr.msk.f32.vlgmr.msra.gmra.mrb[60].mxu1 %vm1383_vm3, %v8301_v58  ;;  %4877 = vmatprep.subr.bf16.mxu1 %v7242_v49  ;;  %v7282_v57 = vld [vmem:[#allocation7 + $0xa50] ss:$24 sps:$4 sm:$0xff]  }
 0x8d5   : > { %3985 = vmatprep.mubr.f32.mxu1 %v7779_v18  ;;  %4878 = vmatpush1.bf16.msra.mxu1 %v7240_v19 }
 0x8d6   : > { %4879 = vmatprep.subr.bf16.mxu1 %v7248_v27 }
 0x8d8   : > { %6266 = vmatmul.mubr.msk.f32.gmra.mrb[62].mxu1 %vm1383_vm3, %v8309_v59 }
 0x8d9   : > { %3991 = vmatprep.mubr.f32.mxu1 %v7779_v18  ;;  %4880 = vmatpush1.bf16.msra.mxu1 %v7246_v28 }
 0x8da   : > { %4881 = vmatprep.subr.bf16.mxu1 %v7254_v35 }
 0x8dc   : > { %6267 = vmatmul.mubr.msk.f32.gmra.mrb[64].mxu1 %vm1383_vm3, %v8317_v60 }
 0x8dd   : > { %4882 = vmatpush1.bf16.msra.mxu1 %v7252_v30 }
 0x8de   : > { %4883 = vmatprep.subr.bf16.mxu1 %v7260_v42 }
 0x8e1   : > { %4884 = vmatpush1.bf16.msra.mxu1 %v7258_v43 }
 0x8e2   : > { %4885 = vmatprep.subr.bf16.mxu1 %v7266_v45 }
 0x8e5   : > { %4886 = vmatpush1.bf16.msra.mxu1 %v7264_v46 }
 0x8e6   : > { %4887 = vmatprep.subr.bf16.mxu1 %v7272_v48 }
 0x8e9   : > { %4888 = vmatpush1.bf16.msra.mxu1 %v7270_v51  ;;  %v7243_v51 = vld [vmem:[#allocation7 + $0x908] ss:$24 sps:$4 sm:$0xff]  }
 0x8ea   : > { %4889 = vmatprep.subr.bf16.mxu1 %v7278_v52 }
 0x8ed   : > { %4890 = vmatpush1.bf16.msra.mxu1 %v7276_v55  ;;  %v7251_v55 = vld [vmem:[#allocation7 + $0x93c] ss:$24 sps:$4 sm:$0xff]  }
 0x8ee   : > { %4891 = vmatprep.subr.bf16.mxu1 %v7284_v56 }
 0x8f1   : > { %4892 = vmatpush1.bf16.msra.mxu1 %v7282_v57 }
 0x8f2   : > { %4893 = vmatprep.subr.bf16.mxu1 %v7290_v61  ;;  %v7249_v61 = vld [vmem:[#allocation7 + $0x938] ss:$24 sps:$4 sm:$0xff]  }
 0x8f5   : > { %4894 = vmatpush1.bf16.msra.mxu1 %v7288_v62 }
 0x8f6   : > { %4895 = vmatprep.subr.bf16.mxu1 %v7296_v34  ;;  %v7257_v34 = vld [vmem:[#allocation7 + $0x96c] ss:$24 sps:$4 sm:$0xff]  }
 0x8f9   : > { %4896 = vmatpush1.bf16.msra.mxu1 %v7294_v63  ;;  %v7255_v63 = vld [vmem:[#allocation7 + $0x968] ss:$24 sps:$4 sm:$0xff]  }
 0x8fa   : > { %4897 = vmatprep.subr.bf16.mxu1 %v7302_v0 }
 0x8fd   : > { %4898 = vmatpush1.bf16.msra.mxu1 %v7300_v40  ;;  %v7263_v40 = vld [vmem:[#allocation7 + $0x99c] ss:$24 sps:$4 sm:$0xff]  }
 0x8fe   : > { %4899 = vmatprep.subr.bf16.mxu1 %v7308_v41  ;;  %v7261_v41 = vld [vmem:[#allocation7 + $0x998] ss:$24 sps:$4 sm:$0xff]  }
 0x901   : > { %4900 = vmatpush1.bf16.msra.mxu1 %v7306_v50  ;;  %v7281_v50 = vld [vmem:[#allocation7 + $0xa2c] ss:$24 sps:$4 sm:$0xff]  }
 0x902   : > { %4901 = vmatprep.subr.bf16.mxu1 %v7314_v5  ;;  %v7279_v5 = vld [vmem:[#allocation7 + $0xa28] ss:$24 sps:$4 sm:$0xff]  }
 0x905   : > { %4902 = vmatpush1.bf16.msra.mxu1 %v7312_v8  ;;  %v7299_v8 = vld [vmem:[#allocation7 + $0xabc] ss:$24 sps:$4 sm:$0xff]  }
 0x906   : > { %4903 = vmatprep.subr.bf16.mxu1 %v7320_v9  ;;  %v7297_v9 = vld [vmem:[#allocation7 + $0xab8] ss:$24 sps:$4 sm:$0xff]  }
 0x909   : > { %4904 = vmatpush1.bf16.msra.mxu1 %v7318_v20  ;;  %v7317_v20 = vld [vmem:[#allocation7 + $0xb4c] ss:$24 sps:$4 sm:$0xff]  }
 0x967   : > { %v3892_v1 = vpop.f32.mrb[60].mxu0 }
 0x968   : > { %v3893_v2 = vadd.f32 %v3892_v1, %v8259_v44  ;;  %v3894_v3 = vpop.f32.mrb[61].mxu0  ;;  %v7269_v1 = vld [vmem:[#allocation7 + $0x9cc] ss:$24 sps:$4 sm:$0xff]  }
 0x969   : > { %v3895_v4 = vadd.f32 %v3894_v3, %v8261_v26  ;;  %v7275_v3 = vld [vmem:[#allocation7 + $0x9fc] ss:$24 sps:$4 sm:$0xff]  }
 0x96b   : > { %v3898_v6 = vpop.f32.mrb[62].mxu0 }
 0x96c   : > { %v3899_v53 = vadd.f32 %v3898_v6, %v8263_v29  ;;  %v3900_v7 = vpop.f32.mrb[63].mxu0  ;;  %v7287_v6 = vld [vmem:[#allocation7 + $0xa5c] ss:$24 sps:$4 sm:$0xff]  }
 0x96d   : > { %v3901_v54 = vadd.f32 %v3900_v7, %v8265_v17  ;;  %v7293_v7 = vld [vmem:[#allocation7 + $0xa8c] ss:$24 sps:$4 sm:$0xff]  }
 0x96f   : > { %v3904_v10 = vpop.f32.mrb[64].mxu0 }
 0x970   : > { %v3905_v44 = vadd.f32 %v3904_v10, %v8267_v21  ;;  %v3906_v33 = vpop.f32.mrb[65].mxu0  ;;  %v7305_v10 = vld [vmem:[#allocation7 + $0xaec] ss:$24 sps:$4 sm:$0xff]  }
 0x971   : > { %v3907_v26 = vadd.f32 %v3906_v33, %v8269_v32  ;;  %v7311_v33 = vld [vmem:[#allocation7 + $0xb1c] ss:$24 sps:$4 sm:$0xff]  }
 0x9a7   : > { %v3981_v11 = vpop.f32.mrb[60].mxu1 }
 0x9a8   : > { %v3998_v29 = vadd.f32 %v3981_v11, %v3893_v2  ;;  %v3983_v17 = vpop.f32.mrb[61].mxu1  ;;  %v7267_v2 = vld [vmem:[#allocation7 + $0x9c8] ss:$24 sps:$4 sm:$0xff]   ;;  %v7323_v11 = vld [vmem:[#allocation7 + $0xb7c] ss:$24 sps:$4 sm:$0xff]  }
 0x9a9   : > { %v3999_v12 = vadd.f32 %v3983_v17, %v3895_v4  ;;  %v7273_v4 = vld [vmem:[#allocation7 + $0x9f8] ss:$24 sps:$4 sm:$0xff]  }
 0x9aa   : > { %v4017_v14 = vadd.f32 %v4010_v23, %v3998_v29  ;;  %v7321_v29 = vld [vmem:[#allocation7 + $0xb78] ss:$24 sps:$4 sm:$0xff]  }
 0x9ab   : > { %v3987_v13 = vpop.f32.mrb[62].mxu1  ;;  %v4018_v16 = vadd.f32 %v4014_v39, %v3999_v12  ;;  %v7324_v17 = vld [vmem:[#allocation7 + $0xba0] ss:$24 sps:$4 sm:$0xff]   ;;  %v7329_v12 = vld [vmem:[#allocation7 + $0xbac] ss:$24 sps:$4 sm:$0xff]  }
 0x9ac   : > { %v4000_v15 = vadd.f32 %v3987_v13, %v3899_v53  ;;  %v3989_v21 = vpop.f32.mrb[63].mxu1  ;;  %v4023_v25 = vmax.f32 %v4017_v14, 0.0  ;;  %v7285_v53 = vld [vmem:[#allocation7 + $0xa58] ss:$24 sps:$4 sm:$0xff]   ;;  %v7332_v13 = vld [vmem:[#allocation7 + $0xbd4] ss:$24 sps:$4 sm:$0xff]  }
 0x9ad   : > { %v4001_v47 = vadd.f32 %v3989_v21, %v3901_v54  ;;  %v4024_v30 = vmax.f32 %v4018_v16, 0.0  ;;  %v7291_v54 = vld [vmem:[#allocation7 + $0xa88] ss:$24 sps:$4 sm:$0xff]   ;;  %v7333_v21 = vld [vmem:[#allocation7 + $0xbd8] ss:$24 sps:$4 sm:$0xff]  }
 0x9ae   : > { %v4019_v32 = vadd.f32 %v4010_v23, %v4000_v15  ;;  %v7330_v14 = vld [vmem:[#allocation7 + $0xbd0] ss:$24 sps:$4 sm:$0xff]   ;;  %v7335_v15 = vld [vmem:[#allocation7 + $0xbdc] ss:$24 sps:$4 sm:$0xff]  }
 0x9af   : > { %v4020_v19 = vadd.f32 %v4014_v39, %v4001_v47  ;;  %v3993_v49 = vpop.f32.mrb[64].mxu1  ;;  %v7338_v16 = vld [vmem:[#allocation7 + $0x914] ss:$24 sps:$4 sm:$0xff]  }
 0x9b0   : > { %v4025_v27 = vmax.f32 %v4019_v32, 0.0  ;;  %v4002_v28 = vadd.f32 %v3993_v49, %v3905_v44  ;;  %v3995_v35 = vpop.f32.mrb[65].mxu1  ;;  %v7303_v44 = vld [vmem:[#allocation7 + $0xae8] ss:$24 sps:$4 sm:$0xff]   ;;  %v4067_v47 = vld [vmem:[#allocation11 + $0x4] sm:$0x3] }
 0x9b1   : > { %v4026_v42 = vmax.f32 %v4020_v19, 0.0  ;;  %v4003_v43 = vadd.f32 %v3995_v35, %v3907_v26  ;;  %v7309_v26 = vld [vmem:[#allocation7 + $0xb18] ss:$24 sps:$4 sm:$0xff]   ;;  %v4072_v32 = vrot.slane %v4067_v47, %v8098_v22  ;;  %v4076_v19 = vrot.slane %v4067_v47, %v8100_v24 }
 0x9b2   : > { %v4029_v45 = vpack.c.bf16 %v4025_v27, %v4023_v25  ;;  %v4021_v52 = vadd.f32 %v4010_v23, %v4002_v28  ;;  %v7326_v23 = vld [vmem:[#allocation7 + $0xba4] ss:$24 sps:$4 sm:$0xff]   ;;  %v7378_v47 = vld [vmem:[#allocation7 + $0xbb0] ss:$24 sps:$4 sm:$0xff]  }
 0x9b3   : > { %v4022_v46 = vadd.f32 %v4014_v39, %v4003_v43  ;;  %v4030_v48 = vpack.c.bf16 %v4026_v42, %v4024_v30  ;;  %4905 = vmatprep.subr.bf16.mxu1 %v7326_v23  ;;  %v7327_v39 = vld [vmem:[#allocation7 + $0xba8] ss:$24 sps:$4 sm:$0xff]   ;;  %v7368_v23 = vld [vmem:[#allocation7 + $0xaf4] ss:$24 sps:$4 sm:$0xff]  }
 0x9b4   : > { %v4027_v62 = vmax.f32 %v4021_v52, 0.0  ;;  %4906 = vmatpush1.bf16.msra.mxu1 %v7324_v17  ;;  %v7366_v17 = vld [vmem:[#allocation7 + $0xaf0] ss:$24 sps:$4 sm:$0xff]  }
 0x9b5   : > { %v4028_v56 = vmax.f32 %v4022_v46, 0.0  ;;  %4271 = vmatprep.mubr.bf16.mxu0 %v4030_v48  ;;  %4907 = vmatprep.subr.bf16.mxu1 %v7332_v13  ;;  %v7374_v13 = vld [vmem:[#allocation7 + $0xb54] ss:$24 sps:$4 sm:$0xff]  }
 0x9b6   : > { %4272 = vmatmul.mubr.bf16.vlgmr.msra.gmra.mrb[68].mxu0 %v4029_v45  ;;  %v4031_v0 = vpack.c.bf16 %v4027_v62, %v4027_v62 }
 0x9b7   : > { %v4032_v57 = vpack.c.bf16 %v4028_v56, %v4028_v56  ;;  %4929 = vmatpush1.bf16.msra.mxu0 %v7243_v51 }
 0x9b8   : > { %4930 = vmatprep.subr.bf16.mxu0 %v7251_v55  ;;  %4908 = vmatpush1.bf16.msra.mxu1 %v7330_v14  ;;  %v7372_v14 = vld [vmem:[#allocation7 + $0xb50] ss:$24 sps:$4 sm:$0xff]  }
 0x9b9   : > { %4281 = vmatprep.mubr.bf16.mxu0 %v4032_v57  ;;  %4979 = vmatprep.subr.bf16.mxu1 %v7338_v16  ;;  %v7336_v57 = vld [vmem:[#allocation7 + $0x910] ss:$24 sps:$4 sm:$0xff]   ;;  %v7380_v16 = vld [vmem:[#allocation7 + $0xbb4] ss:$24 sps:$4 sm:$0xff]  }
 0x9bb   : > { %4931 = vmatpush1.bf16.msra.mxu0 %v7249_v61 }
 0x9bc   : > { %4932 = vmatprep.subr.bf16.mxu0 %v7257_v34  ;;  %v7341_v34 = vld [vmem:[#allocation7 + $0x944] ss:$24 sps:$4 sm:$0xff]  }
 0x9be   : > { %4282 = vmatmul.mubr.bf16.gmra.mrb[72].mxu0 %v4031_v0 }
 0x9bf   : > { %4933 = vmatpush1.bf16.msra.mxu0 %v7255_v63 }
 0x9c0   : > { %4934 = vmatprep.subr.bf16.mxu0 %v7263_v40 }
 0x9c3   : > { %4935 = vmatpush1.bf16.msra.mxu0 %v7261_v41 }
 0x9c4   : > { %4936 = vmatprep.subr.bf16.mxu0 %v7269_v1  ;;  %v7339_v1 = vld [vmem:[#allocation7 + $0x940] ss:$24 sps:$4 sm:$0xff]  }
 0x9c7   : > { %4937 = vmatpush1.bf16.msra.mxu0 %v7267_v2 }
 0x9c8   : > { %4938 = vmatprep.subr.bf16.mxu0 %v7275_v3  ;;  %v7344_v3 = vld [vmem:[#allocation7 + $0x974] ss:$24 sps:$4 sm:$0xff]  }
 0x9cb   : > { %4939 = vmatpush1.bf16.msra.mxu0 %v7273_v4 }
 0x9cc   : > { %4940 = vmatprep.subr.bf16.mxu0 %v7281_v50  ;;  %v7342_v50 = vld [vmem:[#allocation7 + $0x970] ss:$24 sps:$4 sm:$0xff]  }
 0x9cf   : > { %4941 = vmatpush1.bf16.msra.mxu0 %v7279_v5 }
 0x9d0   : > { %4942 = vmatprep.subr.bf16.mxu0 %v7287_v6  ;;  %v7347_v6 = vld [vmem:[#allocation7 + $0x9a4] ss:$24 sps:$4 sm:$0xff]  }
 0x9d3   : > { %4943 = vmatpush1.bf16.msra.mxu0 %v7285_v53  ;;  %v7345_v53 = vld [vmem:[#allocation7 + $0x9a0] ss:$24 sps:$4 sm:$0xff]  }
 0x9d4   : > { %4944 = vmatprep.subr.bf16.mxu0 %v7293_v7  ;;  %v7350_v7 = vld [vmem:[#allocation7 + $0x9d4] ss:$24 sps:$4 sm:$0xff]  }
 0x9d7   : > { %4945 = vmatpush1.bf16.msra.mxu0 %v7291_v54  ;;  %v7348_v54 = vld [vmem:[#allocation7 + $0x9d0] ss:$24 sps:$4 sm:$0xff]  }
 0x9d8   : > { %4946 = vmatprep.subr.bf16.mxu0 %v7299_v8  ;;  %v7353_v8 = vld [vmem:[#allocation7 + $0xa04] ss:$24 sps:$4 sm:$0xff]  }
 0x9db   : > { %4947 = vmatpush1.bf16.msra.mxu0 %v7297_v9  ;;  %v7351_v9 = vld [vmem:[#allocation7 + $0xa00] ss:$24 sps:$4 sm:$0xff]  }
 0x9dc   : > { %4948 = vmatprep.subr.bf16.mxu0 %v7305_v10  ;;  %v7356_v10 = vld [vmem:[#allocation7 + $0xa34] ss:$24 sps:$4 sm:$0xff]  }
 0x9df   : > { %4949 = vmatpush1.bf16.msra.mxu0 %v7303_v44  ;;  %v7354_v44 = vld [vmem:[#allocation7 + $0xa30] ss:$24 sps:$4 sm:$0xff]  }
 0x9e0   : > { %4950 = vmatprep.subr.bf16.mxu0 %v7311_v33  ;;  %v7359_v33 = vld [vmem:[#allocation7 + $0xa64] ss:$24 sps:$4 sm:$0xff]  }
 0x9e3   : > { %4951 = vmatpush1.bf16.msra.mxu0 %v7309_v26  ;;  %v7357_v26 = vld [vmem:[#allocation7 + $0xa60] ss:$24 sps:$4 sm:$0xff]  }
 0x9e4   : > { %4952 = vmatprep.subr.bf16.mxu0 %v7317_v20  ;;  %v7362_v20 = vld [vmem:[#allocation7 + $0xa94] ss:$24 sps:$4 sm:$0xff]  }
 0x9e7   : > { %4953 = vmatpush1.bf16.msra.mxu0 %v7315_v37  ;;  %v7360_v37 = vld [vmem:[#allocation7 + $0xa90] ss:$24 sps:$4 sm:$0xff]  }
 0x9e8   : > { %4954 = vmatprep.subr.bf16.mxu0 %v7323_v11  ;;  %v7365_v11 = vld [vmem:[#allocation7 + $0xac4] ss:$24 sps:$4 sm:$0xff]  }
 0x9eb   : > { %4955 = vmatpush1.bf16.msra.mxu0 %v7321_v29  ;;  %v7363_v29 = vld [vmem:[#allocation7 + $0xac0] ss:$24 sps:$4 sm:$0xff]  }
 0x9ec   : > { %4956 = vmatprep.subr.bf16.mxu0 %v7329_v12  ;;  %v7371_v12 = vld [vmem:[#allocation7 + $0xb24] ss:$24 sps:$4 sm:$0xff]  }
 0x9ef   : > { %4957 = vmatpush1.bf16.msra.mxu0 %v7327_v39  ;;  %v7369_v39 = vld [vmem:[#allocation7 + $0xb20] ss:$24 sps:$4 sm:$0xff]  }
 0x9f0   : > { %4958 = vmatprep.subr.bf16.mxu0 %v7335_v15  ;;  %v7377_v15 = vld [vmem:[#allocation7 + $0xb84] ss:$24 sps:$4 sm:$0xff]  }
 0x9f3   : > { %4959 = vmatpush1.bf16.msra.mxu0 %v7333_v21  ;;  %v7375_v21 = vld [vmem:[#allocation7 + $0xb80] ss:$24 sps:$4 sm:$0xff]  }
 0xa89   : > { %v4273_v49 = vpop.f32.mrb[68].mxu0 }
 0xa8a   : > { %v4274_v25 = vadd.f32 %v4273_v49, %v4072_v32  ;;  %v4275_v27 = vpop.f32.mrb[69].mxu0 }
 0xa8b   : > { %v4276_v28 = vadd.f32 %v4275_v27, %v4076_v19  ;;  %v4277_v35 = vpop.f32.mrb[70].mxu0 }
 0xa8c   : > { %v4278_v30 = vadd.f32 %v4277_v35, %v4072_v32  ;;  %v4279_v42 = vpop.f32.mrb[71].mxu0  ;;  %v4290_v45 = vmax.f32 %v4274_v25, 0.0 }
 0xa8d   : > { %v4280_v43 = vadd.f32 %v4279_v42, %v4076_v19  ;;  %v4291_v48 = vmax.f32 %v4276_v28, 0.0 }
 0xa8e   : > { %v4292_v46 = vmax.f32 %v4278_v30, 0.0 }
 0xa8f   : > { %v4293_v51 = vmax.f32 %v4280_v43, 0.0 }
 0xa90   : > { %v8331_v52 = vpack.c.bf16 %v4292_v46, %v4290_v45 }
 0xa91   : > { %v4297_v55 = vpack.c.bf16 %v4293_v51, %v4291_v48  ;;  %v4283_v56 = vpop.f32.mrb[72].mxu0 }
 0xa92   : > { %v4284_v61 = vadd.f32 %v4283_v56, %v4072_v32  ;;  %v4285_v62 = vpop.f32.mrb[73].mxu0  ;;  %v7383_v32 = vld [vmem:[#allocation7 + $0xbe4] ss:$24 sps:$4 sm:$0xff]  }
 0xa93   : > { %v4286_v63 = vadd.f32 %v4285_v62, %v4076_v19  ;;  %v4287_v0 = vpop.f32.mrb[74].mxu0  ;;  %4909 = vmatprep.mubr.bf16.mxu1 %v4297_v55  ;;  %4960 = vmatprep.mubr.bf16.mxu0 %v4297_v55  ;;  %v7381_v19 = vld [vmem:[#allocation7 + $0xbe0] ss:$24 sps:$4 sm:$0xff]  }
 0xa94   : > { %v4288_v40 = vpop.f32.mrb[75].mxu0  ;;  %4910 = vmatmul.mubr.bf16.vlgmr.msra.gmra.mrb[68].mxu1 %v8331_v52  ;;  %4961 = vmatmul.mubr.bf16.vlgmr.msra.gmra.mrb[76].mxu0 %v8331_v52  ;;  %v4294_v2 = vmax.f32 %v4284_v61, 0.0 }
 0xa95   : > { %v4295_v41 = vmax.f32 %v4286_v63, 0.0  ;;  %4980 = vmatpush1.bf16.msra.mxu1 %v7336_v57 }
 0xa96   : > { %4981 = vmatprep.subr.bf16.mxu1 %v7341_v34  ;;  %v4298_v5 = vpack.c.bf16 %v4294_v2, %v4294_v2 }
 0xa97   : > { %v8335_v4 = vpack.c.bf16 %v4295_v41, %v4295_v41 }
 0xa99   : > { %4982 = vmatpush1.bf16.msra.mxu1 %v7339_v1  ;;  %4919 = vmatprep.mubr.bf16.mxu1 %v8335_v4 }
 0xa9a   : > { %4970 = vmatprep.mubr.bf16.mxu0 %v8335_v4  ;;  %4983 = vmatprep.subr.bf16.mxu1 %v7344_v3 }
 0xa9c   : > { %4920 = vmatmul.mubr.bf16.gmra.mrb[72].mxu1 %v4298_v5  ;;  %4971 = vmatmul.mubr.bf16.gmra.mrb[80].mxu0 %v4298_v5 }
 0xa9d   : > { %4984 = vmatpush1.bf16.msra.mxu1 %v7342_v50  ;;  %5011 = vmatprep.mubr.bf16.mxu1 %v4297_v55  ;;  %v7389_v50 = vld [vmem:[#allocation10 + $0x314] ss:$8 sps:$4 sm:$0xff]  }
 0xa9e   : > { %4985 = vmatprep.subr.bf16.mxu1 %v7347_v6  ;;  %5100 = vmatprep.mubr.f32.mxu0 %v7779_v18  ;;  %v7392_v6 = vld [vmem:[#allocation10 + $0x324] ss:$8 sps:$4 sm:$0xff]  }
 0xaa1   : > { %4986 = vmatpush1.bf16.msra.mxu1 %v7345_v53  ;;  %v7395_v53 = vld [vmem:[#allocation10 + $0x334] ss:$8 sps:$4 sm:$0xff]  }
 0xaa2   : > { %4987 = vmatprep.subr.bf16.mxu1 %v7350_v7  ;;  %v7393_v7 = vld [vmem:[#allocation10 + $0x330] ss:$8 sps:$4 sm:$0xff]  }
 0xaa5   : > { %4988 = vmatpush1.bf16.msra.mxu1 %v7348_v54  ;;  %v7399_v54 = vld [vmem:[#allocation10 + $0x350] ss:$8 sps:$4 sm:$0xff]  }
 0xaa6   : > { %4989 = vmatprep.subr.bf16.mxu1 %v7353_v8  ;;  %v7404_v8 = vld [vmem:[#allocation10 + $0x364] ss:$8 sps:$4 sm:$0xff]  }
 0xaa9   : > { %4990 = vmatpush1.bf16.msra.mxu1 %v7351_v9  ;;  %v7402_v9 = vld [vmem:[#allocation10 + $0x360] ss:$8 sps:$4 sm:$0xff]  }
 0xaaa   : > { %4991 = vmatprep.subr.bf16.mxu1 %v7356_v10  ;;  %v7407_v10 = vld [vmem:[#allocation10 + $0x374] ss:$8 sps:$4 sm:$0xff]  }
 0xaad   : > { %4992 = vmatpush1.bf16.msra.mxu1 %v7354_v44  ;;  %v7405_v44 = vld [vmem:[#allocation10 + $0x370] ss:$8 sps:$4 sm:$0xff]  }
 0xaae   : > { %4993 = vmatprep.subr.bf16.mxu1 %v7359_v33  ;;  %v7410_v33 = vld [vmem:[#allocation10 + $0x384] ss:$8 sps:$4 sm:$0xff]  }
 0xab1   : > { %4994 = vmatpush1.bf16.msra.mxu1 %v7357_v26  ;;  %v7408_v26 = vld [vmem:[#allocation10 + $0x380] ss:$8 sps:$4 sm:$0xff]  }
 0xab2   : > { %4995 = vmatprep.subr.bf16.mxu1 %v7362_v20  ;;  %v7413_v20 = vld [vmem:[#allocation10 + $0x394] ss:$8 sps:$4 sm:$0xff]  }
 0xab5   : > { %4996 = vmatpush1.bf16.msra.mxu1 %v7360_v37  ;;  %v7411_v37 = vld [vmem:[#allocation10 + $0x390] ss:$8 sps:$4 sm:$0xff]  }
 0xab6   : > { %4997 = vmatprep.subr.bf16.mxu1 %v7365_v11  ;;  %v7416_v11 = vld [vmem:[#allocation10 + $0x3a4] ss:$8 sps:$4 sm:$0xff]  }
 0xab9   : > { %4998 = vmatpush1.bf16.msra.mxu1 %v7363_v29  ;;  %v7414_v29 = vld [vmem:[#allocation10 + $0x3a0] ss:$8 sps:$4 sm:$0xff]  }
 0xaba   : > { %4999 = vmatprep.subr.bf16.mxu1 %v7368_v23  ;;  %v7419_v23 = vld [vmem:[#allocation10 + $0x3b4] ss:$8 sps:$4 sm:$0xff]  }
 0xabd   : > { %5000 = vmatpush1.bf16.msra.mxu1 %v7366_v17  ;;  %v7417_v17 = vld [vmem:[#allocation10 + $0x3b0] ss:$8 sps:$4 sm:$0xff]  }
 0xabe   : > { %5001 = vmatprep.subr.bf16.mxu1 %v7371_v12  ;;  %v7422_v12 = vld [vmem:[#allocation10 + $0x3c4] ss:$8 sps:$4 sm:$0xff]  }
 0xac1   : > { %5002 = vmatpush1.bf16.msra.mxu1 %v7369_v39  ;;  %v7420_v39 = vld [vmem:[#allocation10 + $0x3c0] ss:$8 sps:$4 sm:$0xff]  }
 0xac2   : > { %5003 = vmatprep.subr.bf16.mxu1 %v7374_v13  ;;  %v7425_v13 = vld [vmem:[#allocation10 + $0x3d4] ss:$8 sps:$4 sm:$0xff]  }
 0xac5   : > { %5004 = vmatpush1.bf16.msra.mxu1 %v7372_v14  ;;  %v7423_v14 = vld [vmem:[#allocation10 + $0x3d0] ss:$8 sps:$4 sm:$0xff]  }
 0xac6   : > { %5005 = vmatprep.subr.bf16.mxu1 %v7377_v15  ;;  %v7428_v15 = vld [vmem:[#allocation10 + $0x3e4] ss:$8 sps:$4 sm:$0xff]  }
 0xac9   : > { %5006 = vmatpush1.bf16.msra.mxu1 %v7375_v21  ;;  %v7426_v21 = vld [vmem:[#allocation10 + $0x3e0] ss:$8 sps:$4 sm:$0xff]  }
 0xaca   : > { %5007 = vmatprep.subr.bf16.mxu1 %v7380_v16  ;;  %v7431_v16 = vld [vmem:[#allocation10 + $0x3f4] ss:$8 sps:$4 sm:$0xff]  }
 0xacd   : > { %5008 = vmatpush1.bf16.msra.mxu1 %v7378_v47  ;;  %v7429_v47 = vld [vmem:[#allocation10 + $0x3f0] ss:$8 sps:$4 sm:$0xff]  }
 0xace   : > { %5009 = vmatprep.subr.bf16.mxu1 %v7383_v32 }
 0xad1   : > { %5010 = vmatpush1.bf16.msra.mxu1 %v7381_v19 }
 0xad4   : > { %5012 = vmatmul.mubr.bf16.vlgmr.msra.gmra.mrb[76].mxu1 %v8331_v52 }
 0xad5   : > { %5021 = vmatprep.mubr.bf16.mxu1 %v8335_v4 }
 0xadc   : > { %5022 = vmatmul.mubr.bf16.gmra.mrb[80].mxu1 %v4298_v5  ;;  %v7387_v5 = vld [vmem:[#allocation10 + $0x310] ss:$8 sps:$4 sm:$0xff]  }
 0xadd   : > { %5189 = vmatprep.mubr.f32.mxu1 %v7779_v18 }
 0xb67   : > { %v4911_v49 = vpop.f32.mrb[68].mxu1  ;;  %v8343_v25 = vpop.f32.mrb[76].mxu0 }
 0xb68   : > { %v4913_v27 = vpop.f32.mrb[69].mxu1  ;;  %v8345_v28 = vpop.f32.mrb[77].mxu0 }
 0xb69   : > { %v4915_v35 = vpop.f32.mrb[70].mxu1  ;;  %v8347_v30 = vpop.f32.mrb[78].mxu0 }
 0xb6a   : > { %v6505_v42 = vpack.c.bf16 %v4915_v35, %v4911_v49  ;;  %v4917_v43 = vpop.f32.mrb[71].mxu1  ;;  %v8349_v45 = vpop.f32.mrb[79].mxu0 }
 0xb6b   : > { %v6503_v46 = vpack.c.bf16 %v4917_v43, %v4913_v27 }
 0xb6d   : > { %6504 = vmatprep.subr.bf16.mxu0 %v6503_v46 }
 0xb6e   : > { %6506 = vmatpush1.bf16.msra.mxu0 %v6505_v42 }
 0xb6f   : > { %v4921_v48 = vpop.f32.mrb[72].mxu1  ;;  %v8351_v51 = vpop.f32.mrb[80].mxu0 }
 0xb70   : > { %v4923_v52 = vpop.f32.mrb[73].mxu1  ;;  %v8353_v55 = vpop.f32.mrb[81].mxu0 }
 0xb71   : > { %v4925_v56 = vpop.f32.mrb[74].mxu1  ;;  %v4976_v57 = vpop.f32.mrb[82].mxu0  ;;  %6396 = vmatprep.subr.msk.mxu0 %vm1393_vm2, %v4923_v52 }
 0xb72   : > { %v4926_v61 = vpop.f32.mrb[75].mxu1  ;;  %v4977_v62 = vpop.f32.mrb[83].mxu0  ;;  %6397 = vmatpush1.msk.msra.mxu0 %vm1393_vm2, %v4921_v48 }
 0xb73   : > { %6398 = vmatmul.mubr.msk.f32.vlgmr.msra.gmra.mrb[66].mxu0 %vm1383_vm3, %v8276_v31  ;;  %v5215_v61 = vld [vmem:[#allocation8 + $0x6] sm:$0x3] }
 0xb74   : > { %5106 = vmatprep.mubr.f32.mxu0 %v7779_v18 }
 0xb77   : > { %6399 = vmatmul.mubr.msk.f32.gmra.mrb[84].mxu0 %vm1383_vm3, %v8284_v36  ;;  %v7384_v36 = vld [vmem:[#allocation10 + $0x300] ss:$8 sps:$4 sm:$0xff]  }
 0xb78   : > { %5112 = vmatprep.mubr.f32.mxu0 %v7779_v18 }
 0xb7b   : > { %6400 = vmatmul.mubr.msk.f32.gmra.mrb[86].mxu0 %vm1383_vm3, %v8292_v38  ;;  %v7386_v38 = vld [vmem:[#allocation10 + $0x304] ss:$8 sps:$4 sm:$0xff]  }
 0xb7c   : > { %5449 = vmatprep.subr.bf16.mxu0 %v7386_v38 }
 0xb7d   : > { %5450 = vmatpush1.bf16.msra.mxu0 %v7384_v36 }
 0xb7e   : > { %5451 = vmatprep.subr.bf16.mxu0 %v7389_v50 }
 0xb81   : > { %5452 = vmatpush1.bf16.msra.mxu0 %v7387_v5 }
 0xb82   : > { %5453 = vmatprep.subr.bf16.mxu0 %v7392_v6 }
 0xba7   : > { %v5013_v34 = vpop.f32.mrb[76].mxu1 }
 0xba8   : > { %v5015_v63 = vpop.f32.mrb[77].mxu1 }
 0xba9   : > { %v5017_v0 = vpop.f32.mrb[78].mxu1 }
 0xbaa   : > { %v6509_v40 = vpack.c.bf16 %v5017_v0, %v5013_v34  ;;  %v5019_v41 = vpop.f32.mrb[79].mxu1 }
 0xbab   : > { %v6507_v1 = vpack.c.bf16 %v5019_v41, %v5015_v63 }
 0xbad   : > { %6508 = vmatprep.subr.bf16.mxu1 %v6507_v1 }
 0xbae   : > { %6510 = vmatpush1.bf16.msra.mxu1 %v6509_v40 }
 0xbaf   : > { %v5023_v2 = vpop.f32.mrb[80].mxu1 }
 0xbb0   : > { %v5025_v31 = vpop.f32.mrb[81].mxu1 }
 0xbb1   : > { %v5027_v3 = vpop.f32.mrb[82].mxu1  ;;  %6401 = vmatprep.subr.msk.mxu1 %vm1393_vm2, %v5025_v31 }
 0xbb2   : > { %v5028_v4 = vpop.f32.mrb[83].mxu1  ;;  %6402 = vmatpush1.msk.msra.mxu1 %vm1393_vm2, %v5023_v2 }
 0xbb3   : > { %6403 = vmatmul.mubr.msk.f32.vlgmr.msra.gmra.mrb[66].mxu1 %vm1383_vm3, %v8301_v58  ;;  %v7390_v58 = vld [vmem:[#allocation10 + $0x320] ss:$8 sps:$4 sm:$0xff]  }
 0xbb4   : > { %5195 = vmatprep.mubr.f32.mxu1 %v7779_v18  ;;  %5454 = vmatpush1.bf16.msra.mxu0 %v7390_v58 }
 0xbb5   : > { %5455 = vmatprep.subr.bf16.mxu0 %v7395_v53 }
 0xbb7   : > { %6404 = vmatmul.mubr.msk.f32.gmra.mrb[84].mxu1 %vm1383_vm3, %v8309_v59  ;;  %v7398_v59 = vld [vmem:[#allocation10 + $0x344] ss:$8 sps:$4 sm:$0xff]  }
 0xbb8   : > { %5201 = vmatprep.mubr.f32.mxu1 %v7779_v18  ;;  %5456 = vmatpush1.bf16.msra.mxu0 %v7393_v7  ;;  %v7396_v18 = vld [vmem:[#allocation10 + $0x340] ss:$8 sps:$4 sm:$0xff]  }
 0xbb9   : > { %5457 = vmatprep.subr.bf16.mxu0 %v7398_v59 }
 0xbbb   : > { %6405 = vmatmul.mubr.msk.f32.gmra.mrb[86].mxu1 %vm1383_vm3, %v8317_v60  ;;  %v7401_v60 = vld [vmem:[#allocation10 + $0x354] ss:$8 sps:$4 sm:$0xff]  }
 0xbbc   : > { %5458 = vmatpush1.bf16.msra.mxu0 %v7396_v18 }
 0xbbd   : > { %5459 = vmatprep.subr.bf16.mxu0 %v7401_v60 }
 0xbc0   : > { %5460 = vmatpush1.bf16.msra.mxu0 %v7399_v54 }
 0xbc1   : > { %5461 = vmatprep.subr.bf16.mxu0 %v7404_v8 }
 0xbc4   : > { %5462 = vmatpush1.bf16.msra.mxu0 %v7402_v9  ;;  %v7432_v9 = vld [vmem:[#allocation13 + $0x40] sm:$0xff]  }
 0xbc5   : > { %5463 = vmatprep.subr.bf16.mxu0 %v7407_v10  ;;  %v7433_v10 = vld [vmem:[#allocation13] sm:$0xff]   ;;  %6457 = vmatprep.subr.bf16.mxu1 %v7432_v9 }
 0xbc6   : > { %6458 = vmatpush3.bf16.msra.mxu1 %v7433_v10 }
 0xbc8   : > { %5464 = vmatpush1.bf16.msra.mxu0 %v7405_v44  ;;  %v7434_v44 = vld [vmem:[#allocation13 + $0x48] sm:$0xff]  }
 0xbc9   : > { %5465 = vmatprep.subr.bf16.mxu0 %v7410_v33  ;;  %v7435_v33 = vld [vmem:[#allocation13 + $0x8] sm:$0xff]   ;;  %6459 = vmatprep.subr.bf16.mxu1 %v7434_v44 }
 0xbca   : > { %6460 = vmatpush3.bf16.msra.mxu1 %v7435_v33 }
 0xbcc   : > { %5466 = vmatpush1.bf16.msra.mxu0 %v7408_v26  ;;  %v7436_v26 = vld [vmem:[#allocation13 + $0x50] sm:$0xff]  }
 0xbcd   : > { %5467 = vmatprep.subr.bf16.mxu0 %v7413_v20  ;;  %v7437_v20 = vld [vmem:[#allocation13 + $0x10] sm:$0xff]   ;;  %6461 = vmatprep.subr.bf16.mxu1 %v7436_v26 }
 0xbce   : > { %6462 = vmatpush3.bf16.msra.mxu1 %v7437_v20 }
 0xbd0   : > { %5468 = vmatpush1.bf16.msra.mxu0 %v7411_v37  ;;  %v7438_v37 = vld [vmem:[#allocation13 + $0x58] sm:$0xff]  }
 0xbd1   : > { %5469 = vmatprep.subr.bf16.mxu0 %v7416_v11  ;;  %v7439_v11 = vld [vmem:[#allocation13 + $0x18] sm:$0xff]   ;;  %6463 = vmatprep.subr.bf16.mxu1 %v7438_v37 }
 0xbd2   : > { %6464 = vmatpush3.bf16.msra.mxu1 %v7439_v11 }
 0xbd4   : > { %5470 = vmatpush1.bf16.msra.mxu0 %v7414_v29  ;;  %v7440_v29 = vld [vmem:[#allocation13 + $0x60] sm:$0xff]  }
 0xbd5   : > { %5471 = vmatprep.subr.bf16.mxu0 %v7419_v23  ;;  %v7441_v23 = vld [vmem:[#allocation13 + $0x20] sm:$0xff]   ;;  %6465 = vmatprep.subr.bf16.mxu1 %v7440_v29 }
 0xbd6   : > { %6466 = vmatpush3.bf16.msra.mxu1 %v7441_v23 }
 0xbd8   : > { %5472 = vmatpush1.bf16.msra.mxu0 %v7417_v17  ;;  %v7442_v17 = vld [vmem:[#allocation13 + $0x68] sm:$0xff]  }
 0xbd9   : > { %5473 = vmatprep.subr.bf16.mxu0 %v7422_v12  ;;  %v7443_v12 = vld [vmem:[#allocation13 + $0x28] sm:$0xff]   ;;  %6467 = vmatprep.subr.bf16.mxu1 %v7442_v17 }
 0xbda   : > { %6468 = vmatpush3.bf16.msra.mxu1 %v7443_v12 }
 0xbdc   : > { %5474 = vmatpush1.bf16.msra.mxu0 %v7420_v39  ;;  %v7444_v39 = vld [vmem:[#allocation13 + $0x70] sm:$0xff]  }
 0xbdd   : > { %5475 = vmatprep.subr.bf16.mxu0 %v7425_v13  ;;  %v7445_v13 = vld [vmem:[#allocation13 + $0x30] sm:$0xff]   ;;  %6469 = vmatprep.subr.bf16.mxu1 %v7444_v39 }
 0xbde   : > { %6470 = vmatpush3.bf16.msra.mxu1 %v7445_v13 }
 0xbe0   : > { %5476 = vmatpush1.bf16.msra.mxu0 %v7423_v14  ;;  %v7446_v14 = vld [vmem:[#allocation13 + $0x78] sm:$0xff]  }
 0xbe1   : > { %5477 = vmatprep.subr.bf16.mxu0 %v7428_v15  ;;  %v7447_v15 = vld [vmem:[#allocation13 + $0x38] sm:$0xff]   ;;  %6471 = vmatprep.subr.bf16.mxu1 %v7446_v14 }
 0xbe2   : > { %6472 = vmatpush3.bf16.msra.mxu1 %v7447_v15 }
 0xbe4   : > { %5478 = vmatpush1.bf16.msra.mxu0 %v7426_v21  ;;  %v5277_v21 = vld [vmem:[#allocation11 + $0x6] sm:$0x3] }
 0xbe5   : > { %5479 = vmatprep.subr.bf16.mxu0 %v7431_v16  ;;  %v5282_v16 = vrot.slane %v5277_v21, %v8098_v22 }
 0xbe8   : > { %5480 = vmatpush1.bf16.msra.mxu0 %v7429_v47  ;;  %v5286_v47 = vrot.slane %v5277_v21, %v8100_v24 }
 0xc46   : > { %v5102_v32 = vpop.f32.mrb[66].mxu0 }
 0xc47   : > { %v5103_v19 = vadd.f32 %v5102_v32, %v8343_v25  ;;  %v5104_v49 = vpop.f32.mrb[67].mxu0  ;;  %v5220_v25 = vrot.slane %v5215_v61, %v8098_v22 }
 0xc48   : > { %v5105_v27 = vadd.f32 %v5104_v49, %v8345_v28  ;;  %v5224_v28 = vrot.slane %v5215_v61, %v8100_v24 }
 0xc4a   : > { %v5108_v35 = vpop.f32.mrb[84].mxu0 }
 0xc4b   : > { %v5109_v42 = vadd.f32 %v5108_v35, %v8347_v30  ;;  %v5110_v43 = vpop.f32.mrb[85].mxu0 }
 0xc4c   : > { %v5111_v46 = vadd.f32 %v5110_v43, %v8349_v45 }
 0xc4e   : > { %v5114_v48 = vpop.f32.mrb[86].mxu0 }
 0xc4f   : > { %v5115_v52 = vadd.f32 %v5114_v48, %v8351_v51  ;;  %v5116_v56 = vpop.f32.mrb[87].mxu0 }
 0xc50   : > { %v5117_v57 = vadd.f32 %v5116_v56, %v8353_v55 }
 0xc86   : > { %v5191_v62 = vpop.f32.mrb[66].mxu1 }
 0xc87   : > { %v5208_v34 = vadd.f32 %v5191_v62, %v5103_v19  ;;  %v5193_v63 = vpop.f32.mrb[67].mxu1 }
 0xc88   : > { %v5209_v0 = vadd.f32 %v5193_v63, %v5105_v27 }
 0xc89   : > { %v5227_v30 = vadd.f32 %v5220_v25, %v5208_v34 }
 0xc8a   : > { %v5197_v40 = vpop.f32.mrb[84].mxu1  ;;  %v5228_v45 = vadd.f32 %v5224_v28, %v5209_v0 }
 0xc8b   : > { %v5210_v41 = vadd.f32 %v5197_v40, %v5109_v42  ;;  %v5199_v1 = vpop.f32.mrb[85].mxu1  ;;  %v5233_v4 = vmax.f32 %v5227_v30, 0.0 }
 0xc8c   : > { %v5211_v2 = vadd.f32 %v5199_v1, %v5111_v46  ;;  %v5234_v50 = vmax.f32 %v5228_v45, 0.0 }
 0xc8d   : > { %v5229_v31 = vadd.f32 %v5220_v25, %v5210_v41 }
 0xc8e   : > { %v5230_v51 = vadd.f32 %v5224_v28, %v5211_v2  ;;  %v5203_v3 = vpop.f32.mrb[86].mxu1 }
 0xc8f   : > { %v5235_v55 = vmax.f32 %v5229_v31, 0.0  ;;  %v5212_v36 = vadd.f32 %v5203_v3, %v5115_v52  ;;  %v5205_v38 = vpop.f32.mrb[87].mxu1 }
 0xc90   : > { %v5236_v5 = vmax.f32 %v5230_v51, 0.0  ;;  %v5213_v6 = vadd.f32 %v5205_v38, %v5117_v57 }
 0xc91   : > { %v5239_v58 = vpack.c.bf16 %v5235_v55, %v5233_v4  ;;  %v5231_v59 = vadd.f32 %v5220_v25, %v5212_v36 }
 0xc92   : > { %v5232_v53 = vadd.f32 %v5224_v28, %v5213_v6  ;;  %v5240_v7 = vpack.c.bf16 %v5236_v5, %v5234_v50 }
 0xc93   : > { %v5237_v54 = vmax.f32 %v5231_v59, 0.0 }
 0xc94   : > { %v5238_v18 = vmax.f32 %v5232_v53, 0.0  ;;  %5481 = vmatprep.mubr.bf16.mxu0 %v5240_v7 }
 0xc95   : > { %5482 = vmatmul.mubr.bf16.vlgmr.msra.gmra.mrb[88].mxu0 %v5239_v58  ;;  %v5241_v8 = vpack.c.bf16 %v5237_v54, %v5237_v54 }
 0xc96   : > { %v5242_v60 = vpack.c.bf16 %v5238_v18, %v5238_v18  ;;  %v5558_v18 = vld [vmem:[#allocation14] sm:$0x1] }
 0xc98   : > { %5491 = vmatprep.mubr.bf16.mxu0 %v5242_v60 }
 0xc9d   : > { %5492 = vmatmul.mubr.bf16.gmra.mrb[92].mxu0 %v5241_v8 }
 0xd68   : > { %v5483_v32 = vpop.f32.mrb[88].mxu0 }
 0xd69   : > { %v5484_v19 = vadd.f32 %v5483_v32, %v5282_v16  ;;  %v5485_v49 = vpop.f32.mrb[89].mxu0 }
 0xd6a   : > { %v5486_v27 = vadd.f32 %v5485_v49, %v5286_v47  ;;  %v5487_v35 = vpop.f32.mrb[90].mxu0 }
 0xd6b   : > { %v5488_v42 = vadd.f32 %v5487_v35, %v5282_v16  ;;  %v5489_v43 = vpop.f32.mrb[91].mxu0  ;;  %v5500_v48 = vmax.f32 %v5484_v19, 0.0 }
 0xd6c   : > { %v5490_v46 = vadd.f32 %v5489_v43, %v5286_v47  ;;  %v5501_v56 = vmax.f32 %v5486_v27, 0.0 }
 0xd6d   : > { %v5502_v52 = vmax.f32 %v5488_v42, 0.0 }
 0xd6e   : > { %v5503_v57 = vmax.f32 %v5490_v46, 0.0 }
 0xd6f   : > { %v5506_v61 = vadd.f32 %v5502_v52, %v5500_v48 }
 0xd70   : > { %v5515_v62 = vadd.f32 %v5503_v57, %v5501_v56  ;;  %v5493_v34 = vpop.f32.mrb[92].mxu0 }
 0xd71   : > { %v5494_v25 = vadd.f32 %v5493_v34, %v5282_v16  ;;  %v5495_v63 = vpop.f32.mrb[93].mxu0 }
 0xd72   : > { %v5496_v22 = vadd.f32 %v5495_v63, %v5286_v47  ;;  %v5497_v0 = vpop.f32.mrb[94].mxu0 }
 0xd73   : > { %v5504_v24 = vmax.f32 %v5494_v25, 0.0  ;;  %v5498_v28 = vpop.f32.mrb[95].mxu0 }
 0xd74   : > { %v5505_v40 = vmax.f32 %v5496_v22, 0.0 }
 0xd75   : > { %v5507_v30 = vsel %vm1393_vm2, %v5504_v24, 0.0 }
 0xd76   : > { %v5508_v41 = vadd.f32 %v5507_v30, %v5506_v61  ;;  %v5516_v1 = vsel %vm1393_vm2, %v5505_v40, 0.0 }
 0xd77   : > { %v5517_v45 = vadd.f32 %v5516_v1, %v5515_v62 }
 0xd78   : > { %v5509_v2 = vrot.slane %v5508_v41, 4 }
 0xd79   : > { %v5518_v31 = vrot.slane %v5517_v45, 4 }
 0xd7a   : > { %v5510_v51 = vadd.f32 %v5509_v2, %v5508_v41 }
 0xd7b   : > { %v5519_v3 = vadd.f32 %v5518_v31, %v5517_v45 }
 0xd7c   : > { %v5511_v4 = vrot.slane %v5510_v51, 2 }
 0xd7d   : > { %v5520_v55 = vrot.slane %v5519_v3, 2 }
 0xd7e   : > { %v5512_v36 = vadd.f32 %v5511_v4, %v5510_v51 }
 0xd7f   : > { %v5521_v38 = vadd.f32 %v5520_v55, %v5519_v3 }
 0xd80   : > { %v5513_v50 = vrot.slane %v5512_v36, 1 }
 0xd81   : > { %v5522_v5 = vrot.slane %v5521_v38, 1 }
 0xd82   : > { %v5514_v6 = vadd.f32 %v5513_v50, %v5512_v36 }
 0xd83   : > { %v5523_v58 = vadd.f32 %v5522_v5, %v5521_v38 }
 0xd84   : > { %v5524_v7 = vpack.c.bf16 %v5514_v6, %v5514_v6 }
 0xd85   : > { %v5525_v53 = vpack.c.bf16 %v5523_v58, %v5523_v58 }
 0xd87   : > { %5687 = vmatprep.mubr.bf16.mxu1 %v5525_v53 }
 0xd88   : > { %5688 = vmatmul.mubr.bf16.vlgmr.msra.gmra.mrb[88].mxu1 %v5524_v7 }
 0xe5b   : > { %v6473_v59 = vpop.f32.mrb[88].mxu1 }
 0xe5c   : > { %v6474_v60 = vpop.f32.mrb[89].mxu1 }
 0xe5d   : > { %v6475_v54 = vadd.f32 %v6474_v60, %v6473_v59  ;;  %v6476_v8 = vpop.f32.mrb[90].mxu1 }
 0xe5e   : > { %v6477_v9 = vpop.f32.mrb[91].mxu1 }
 0xe5f   : > { %v5690_v10 = vadd.f32 %v6475_v54, %v5558_v18 }
 0xe61   : > { %5695 = vst [vmem:[%s464_s21] sm:$0x1] %v5690_v10 }
 0xe62   : > { %7691 = shalt.err (!%p7688_p9)
}
 0xe63   : > { %s7692_s28 = scalar_lea.hbm %s8392_s22, 16  ;;  %s7696_s19 = scalar_lea.hbm %s8444_s10, 32 }
 0xe64   : > { %p7693_p12 = scmp.ne.s32.totalorder %s8392_s22, %s7692_s28  ;;  %p7697_p3 = scmp.lt.u32.totalorder %s8392_s22, %s8444_s10 }
 0xe65   : > { %p7698_p4 = scmp.lt.u32.totalorder %s7696_s19, %s7692_s28  ;;  %p7700_p8 = scmp.lt.u32.totalorder %s7692_s28, %s8392_s22 }
 0xe66   : > { %p7694_p10 = pnand %p7693_p12, %p8484_p11 }
 0xe67   : > { %p7699_p7 = por %p7698_p4, %p7697_p3 }
 0xe68   : > { %p7695_p2 = pneg %p7694_p10 }
 0xe69   : > { %p7701_p13 = por %p7700_p8, %p7699_p7 }
 0xe6b   : > { %p7702_p1 = pnand %p7701_p13, %p7695_p2 }
 0xe6d   : > { %7705 = shalt.err (!%p7702_p1)
}
 0xe6e   : > { %6544 = dma.vmem_to_hbm [thread:$0]  (%p8484_p11), %s8394_s26, 16, %s8392_s22, %s5697_s12  }
 0xe6f PF: > { %s8485_s7 = sld [smem:[#allocation26_spill]]  ;;  %p6591_p0 = scmp.ge.s32.totalorder %s7760_s16, 2 }
 0xe70   : > { %s5721_s5 = sand.u32 1, %s7748_s13  }
 0xe71   : > { %s5722_s29 = scalar_lea.sflag [#allocation4], %s5721_s5 }
 0xe75   : > { %p8486_p6 = scmp.ne.s32.totalorder %s8485_s7, 0 }
 0xe77   : > { %p6572_p5 = pnand %p6591_p0, %p8486_p6 }
 0xe79   : > { %7743 = dma.done.wait (!%p6572_p5), %s5722_s29, 16  }
 0xe7a   : > { %7745 = vsyncadd (!%p6572_p5), %s5722_s29, 4294967280  ;;  %s8487_s16 = sld [smem:[#allocation24_spill]]  ;;  %s8488_s20 = sld [smem:[#allocation23_spill]] }
 0xe7b   : > { %s8489_s15 = sld [smem:[#allocation25_spill]]  ;;  %s8490_s13 = smov %s7752_s14 }
 0xe80   : > { %p25_p9 = scmp.ge.s32.totalorder %s8487_s16, 4   ;;  %s8491_s14 = smov %s8488_s20 }
 0xe82   :  { %27 = sbr.rel (!%p25_p9) target bundleno = 13 (0xd), region = 141 }
 0xe89   :  { %5726 = vsyncpa [#allocation3], 1 }
 0xe8a   :  { %5728 = vsyncpa [#allocation3 + $0x1], 1 }
 0xe8b   :  { %5729 = vsyncpa [#allocation6], 1 }
 0xe8c   :  { %5730 = vsyncpa [#allocation9], 1 }
 0xe8d   :  { %5731 = vsyncpa [#allocation12], 1 }
 0xe8e   :  { %5732 = vsyncpa [#allocation15], 1 }
 0xe8f   :  { %5733 = vsyncpa [#allocation4], 1 }
 0xe90   :  { %5735 = vsyncpa [#allocation4 + $0x1], 1 }

</bundles_post_ra>
